<compile_context>
chip_gen: v5e
topology: v5e:2x2
jax: 0.10.0
libtpu: 0.0.40
codegen_flags: <defaults>
</compile_context>

<pallas_src>
import functools

import jax
import jax.numpy as jnp
from jax import lax
from jax.experimental import pallas as pl
from jax.experimental.pallas import tpu as pltpu


def _resblock_kernel(x_ref, w1_ref, s1_ref, b1_ref, w2_ref, s2_ref, b2_ref,
                     o_ref, ext_ref, pat_ref, *, H, W, C, NB, pad):
    """Fused residual block for NB batched images (channel-major, flat spatial).

    x_ref  : (NB, C, H*W)        f32 input block (also the residual)
    w1_ref : (C, 9*C)            conv1 weights, MXU dtype (unscaled)
    s1_ref : (C, 1)              BN1 scale  (f32, applied post-matmul)
    b1_ref : (C, 1)              BN1 folded bias (f32)
    w2_ref : (C, 9*C)            conv2 weights, MXU dtype (unscaled)
    s2_ref : (C, 1)              BN2 scale  (f32)
    b2_ref : (C, 1)              BN2 folded bias (f32)
    o_ref  : (NB, C, H*W)        output block (f32)
    ext_ref: (C, H*W + 2*pad)    MXU-dtype scratch: lane-halo'd source
    pat_ref: (9*C, NB*H*W)       MXU-dtype im2col patch matrix
    """
    HW = H * W

    # Zero only the two halo strips (row-out-of-range taps land here; the
    # column-out-of-range taps are masked below).  Not gated on program_id:
    # under "parallel" megacore sharding a core may never see step 0.
    zeros_halo = jnp.zeros((C, pad), ext_ref.dtype)
    ext_ref[:, :pad] = zeros_halo
    ext_ref[:, pad + HW:] = zeros_halo

    # Column-validity masks (row OOB is covered by the zeroed halo: any tap
    # whose row is out of range either lands in the halo or also has an
    # out-of-range column and is masked here).
    col = lax.broadcasted_iota(jnp.int32, (1, HW), 1) % W
    mask_l = col >= 1          # tap dx = -1 valid
    mask_r = col <= W - 2      # tap dx = +1 valid

    def im2col(src_f32, b):
        """src_f32: (C, HW) f32 for image b -> fills pat_ref[:, b*HW:(b+1)*HW]."""
        ext_ref[:, pad:pad + HW] = src_f32.astype(ext_ref.dtype)
        for k in range(9):
            dy, dx = k // 3 - 1, k % 3 - 1
            s = dy * W + dx
            shifted = ext_ref[:, pad + s: pad + s + HW]          # (C, HW) mxu dt
            if dx == -1:
                shifted = jnp.where(mask_l, shifted, 0.0)
            elif dx == 1:
                shifted = jnp.where(mask_r, shifted, 0.0)
            pat_ref[k * C:(k + 1) * C, b * HW:(b + 1) * HW] = (
                shifted.astype(pat_ref.dtype))

    # ---- conv1: one im2col matmul over all NB images, BN1 (f32) + ReLU -----
    for b in range(NB):
        im2col(x_ref[b], b)
    acc1 = jnp.dot(w1_ref[...], pat_ref[...],
                   preferred_element_type=jnp.float32)           # (C, NB*HW) f32
    out1 = jnp.maximum(acc1 * s1_ref[...] + b1_ref[...], 0.0)

    # ---- conv2: same, BN2 (f32) + residual + ReLU ---------------------------
    for b in range(NB):
        im2col(out1[:, b * HW:(b + 1) * HW], b)
    acc2 = jnp.dot(w2_ref[...], pat_ref[...],
                   preferred_element_type=jnp.float32)           # (C, NB*HW) f32
    for b in range(NB):
        res = x_ref[b]                                           # (C, HW) f32
        o_img = jnp.maximum(
            acc2[:, b * HW:(b + 1) * HW] * s2_ref[...] + b2_ref[...] + res, 0.0)
        o_ref[b] = o_img.astype(o_ref.dtype)


def residual_block_pallas(x_nchw, w1_oihw, g1, be1, m1, v1,
                          w2_oihw, g2, be2, m2, v2,
                          eps=1e-5, mxu_dtype=jnp.bfloat16,
                          images_per_step=None):
    """stride=1, downsample=None (in_channels == out_channels)."""
    N, C, H, W = x_nchw.shape
    HW = H * W
    pad = ((W + 1 + 127) // 128) * 128        # lane-aligned halo (>= W+1 taps)

    # Free reshape (contiguous): keep PyTorch NCHW, flatten spatial to lanes.
    x_flat = x_nchw.reshape(N, C, HW).astype(jnp.float32)

    # BN (inference form): y = conv * scale + (beta - mean*scale).
    # Scale is applied in f32 AFTER the matmul (weights stay unscaled in the
    # MXU dtype), bias is a folded f32 per-channel vector.
    s1 = g1 / jnp.sqrt(v1 + eps)
    s2 = g2 / jnp.sqrt(v2 + eps)
    b1 = (be1 - m1 * s1).reshape(C, 1).astype(jnp.float32)
    b2 = (be2 - m2 * s2).reshape(C, 1).astype(jnp.float32)
    s1 = s1.reshape(C, 1).astype(jnp.float32)
    s2 = s2.reshape(C, 1).astype(jnp.float32)

    def prep_w(w):
        # OIHW -> (C_out, 9*C_in); column index = (ky*3+kx)*C_in + c_in.
        return jnp.transpose(w, (0, 2, 3, 1)).reshape(C, 9 * C).astype(mxu_dtype)

    w1m = prep_w(w1_oihw)
    w2m = prep_w(w2_oihw)

    # --- choose images per grid step -----------------------------------------
    # Single-TC chips (v5e/v6e): fuse the whole batch into one step (per-step
    # overhead dominates sub-microsecond steps).  2-TC v7x: keep >= 2 parallel
    # steps so both TensorCores get work.
    if images_per_step is None:
        try:
            kind = jax.devices()[0].device_kind
        except Exception:
            kind = ""
        n_tc = 2 if "7" in kind else 1
        images_per_step = -(-N // n_tc)                    # ceil(N / n_tc)
    images_per_step = max(1, min(int(images_per_step), N))
    # Cap so the im2col scratch stays modest (matters for large batches).
    itemsize = jnp.finfo(mxu_dtype).bits // 8
    max_ips = max(1, (4 * 1024 * 1024) // (9 * C * HW * itemsize))
    images_per_step = min(images_per_step, max_ips)
    while N % images_per_step:                             # keep full blocks
        images_per_step -= 1
    num_steps = N // images_per_step

    # --- VMEM limit: derived per generation, not hard-coded ------------------
    try:
        vmem_cap = int(pltpu.get_tpu_info().vmem_capacity_bytes)
    except Exception:
        vmem_cap = 64 * 1024 * 1024
    vmem_limit = min(max(vmem_cap // 2, 16 * 1024 * 1024), 64 * 1024 * 1024)

    kernel = functools.partial(_resblock_kernel, H=H, W=W, C=C,
                               NB=images_per_step, pad=pad)

    out_flat = pl.pallas_call(
        kernel,
        out_shape=jax.ShapeDtypeStruct((N, C, HW), jnp.float32),
        grid_spec=pltpu.PrefetchScalarGridSpec(
            num_scalar_prefetch=0,
            grid=(num_steps,),
            in_specs=[
                pl.BlockSpec((images_per_step, C, HW), lambda g: (g, 0, 0)),  # x
                pl.BlockSpec((C, 9 * C), lambda g: (0, 0)),                   # w1
                pl.BlockSpec((C, 1), lambda g: (0, 0)),                       # s1
                pl.BlockSpec((C, 1), lambda g: (0, 0)),                       # b1
                pl.BlockSpec((C, 9 * C), lambda g: (0, 0)),                   # w2
                pl.BlockSpec((C, 1), lambda g: (0, 0)),                       # s2
                pl.BlockSpec((C, 1), lambda g: (0, 0)),                       # b2
            ],
            out_specs=pl.BlockSpec((images_per_step, C, HW), lambda g: (g, 0, 0)),
            scratch_shapes=[
                pltpu.VMEM((C, HW + 2 * pad), mxu_dtype),            # halo'd src
                pltpu.VMEM((9 * C, images_per_step * HW), mxu_dtype),  # im2col
            ],
        ),
        compiler_params=pltpu.CompilerParams(
            dimension_semantics=("parallel",),
            vmem_limit_bytes=vmem_limit,
        ),
    )(x_flat, w1m, s1, b1, w2m, s2, b2)

    # Free reshape back to NCHW (PyTorch output convention).
    return out_flat.reshape(N, C, H, W)


def residual_block_ref(x_nchw, w1, g1, be1, m1, v1, w2, g2, be2, m2, v2,
                       eps=1e-5):
    """Pure-JAX reference (NCHW, same math) for correctness checking."""
    def conv(x, w):
        return lax.conv_general_dilated(
            x, w, window_strides=(1, 1), padding=((1, 1), (1, 1)),
            dimension_numbers=("NCHW", "OIHW", "NCHW"))

    def bn(x, g, b, m, v):
        g = g[None, :, None, None]
        b = b[None, :, None, None]
        m = m[None, :, None, None]
        v = v[None, :, None, None]
        return (x - m) / jnp.sqrt(v + eps) * g + b

    out = jnp.maximum(bn(conv(x_nchw, w1), g1, be1, m1, v1), 0.0)
    out = bn(conv(out, w2), g2, be2, m2, v2)
    return jnp.maximum(out + x_nchw, 0.0)


if __name__ == "__main__":
    N, C, H, W = 2, 32, 16, 16  # in_channels == out_channels, stride=1

    key = jax.random.PRNGKey(0)
    keys = jax.random.split(key, 8)

    x = jax.random.normal(keys[0], (N, C, H, W), dtype=jnp.float32)

    # conv weights, OIHW (PyTorch layout), deterministic
    w1 = jax.random.normal(keys[1], (C, C, 3, 3), dtype=jnp.float32) * 0.05
    w2 = jax.random.normal(keys[2], (C, C, 3, 3), dtype=jnp.float32) * 0.05

    # BatchNorm params (inference form), deterministic & non-trivial
    g1 = 1.0 + 0.1 * jax.random.normal(keys[3], (C,), dtype=jnp.float32)
    be1 = 0.1 * jax.random.normal(keys[4], (C,), dtype=jnp.float32)
    m1 = 0.05 * jax.random.normal(keys[5], (C,), dtype=jnp.float32)
    v1 = 1.0 + 0.1 * jnp.abs(jax.random.normal(keys[6], (C,), dtype=jnp.float32))
    g2 = 1.0 - 0.05 * jnp.cos(jnp.arange(C, dtype=jnp.float32))
    be2 = 0.02 * jnp.sin(jnp.arange(C, dtype=jnp.float32))
    m2 = 0.03 * jnp.cos(jnp.arange(C, dtype=jnp.float32))
    v2 = 1.0 + 0.05 * jnp.abs(jax.random.normal(keys[7], (C,), dtype=jnp.float32))

    ref = jax.block_until_ready(
        residual_block_ref(x, w1, g1, be1, m1, v1, w2, g2, be2, m2, v2))

    # Exact-indexing cross-check (f32 MXU operands; numerics only, not perf).
    out_f32 = jax.block_until_ready(residual_block_pallas(
        x, w1, g1, be1, m1, v1, w2, g2, be2, m2, v2, mxu_dtype=jnp.float32))
    assert out_f32.shape == (N, C, H, W)
    assert jnp.allclose(out_f32, ref, atol=1e-3, rtol=1e-3), (
        float(jnp.max(jnp.abs(out_f32 - ref))))

    # Default fast path: bf16 MXU operands on ALL chips (v5e/v6e/v7x), with
    # f32 accumulation and f32 BN/residual/ReLU math.
    out_bf16 = jax.block_until_ready(residual_block_pallas(
        x, w1, g1, be1, m1, v1, w2, g2, be2, m2, v2))
    assert jnp.allclose(out_bf16, ref, atol=5e-2, rtol=5e-2), (
        float(jnp.max(jnp.abs(out_bf16 - ref))))

    print("KERNEL_OK")
</pallas_src>

<mosaic_0001>
module attributes {stable_mosaic.version = 11 : i64} {
  func.func @_resblock_kernel(%arg0: i32, %arg1: memref<2x32x256xf32, #tpu.memory_space<vmem>>, %arg2: memref<32x288xf32, #tpu.memory_space<vmem>>, %arg3: memref<32x1xf32, #tpu.memory_space<vmem>>, %arg4: memref<32x1xf32, #tpu.memory_space<vmem>>, %arg5: memref<32x288xf32, #tpu.memory_space<vmem>>, %arg6: memref<32x1xf32, #tpu.memory_space<vmem>>, %arg7: memref<32x1xf32, #tpu.memory_space<vmem>>, %arg8: memref<2x32x256xf32, #tpu.memory_space<vmem>>, %arg9: memref<32x512xf32, #tpu.memory_space<vmem>>, %arg10: memref<288x512xf32, #tpu.memory_space<vmem>>) attributes {dimension_semantics = [#tpu.dimension_semantics<parallel>], iteration_bounds = array<i64: 1>, scalar_prefetch = 0 : i64, scratch_operands = 2 : i64, tpu.core_type = #tpu.core_type<tc>, window_params = [{transform_indices = @transform_0, window_bounds = array<i64: 2, 32, 256>}, {pipeline_mode = #tpu.pipeline_mode<synchronous>, transform_indices = @transform_1, window_bounds = array<i64: 32, 288>}, {pipeline_mode = #tpu.pipeline_mode<synchronous>, transform_indices = @transform_2, window_bounds = array<i64: 32, 1>}, {pipeline_mode = #tpu.pipeline_mode<synchronous>, transform_indices = @transform_3, window_bounds = array<i64: 32, 1>}, {pipeline_mode = #tpu.pipeline_mode<synchronous>, transform_indices = @transform_4, window_bounds = array<i64: 32, 288>}, {pipeline_mode = #tpu.pipeline_mode<synchronous>, transform_indices = @transform_5, window_bounds = array<i64: 32, 1>}, {pipeline_mode = #tpu.pipeline_mode<synchronous>, transform_indices = @transform_6, window_bounds = array<i64: 32, 1>}, {transform_indices = @transform_7, window_bounds = array<i64: 2, 32, 256>}]} {
    %cst = arith.constant 0.000000e+00 : f32
    %0 = vector.broadcast %cst : f32 to vector<32x128xf32>
    %c0 = arith.constant 0 : index
    %c0_0 = arith.constant 0 : index
    %1 = vector.load %arg9[%c0, %c0_0] : memref<32x512xf32, #tpu.memory_space<vmem>>, vector<32x128xf32>
    tpu.vector_store %arg9[%c0, %c0_0], %0 {strides = array<i32>} : memref<32x512xf32, #tpu.memory_space<vmem>>, vector<32x128xf32>,
    %c0_1 = arith.constant 0 : index
    %c384 = arith.constant 384 : index
    %2 = vector.load %arg9[%c0_1, %c384] : memref<32x512xf32, #tpu.memory_space<vmem>>, vector<32x128xf32>
    tpu.vector_store %arg9[%c0_1, %c384], %0 {strides = array<i32>} : memref<32x512xf32, #tpu.memory_space<vmem>>, vector<32x128xf32>,
    %3 = tpu.iota {dimensions = array<i32: 1>} : vector<1x256xi32>
    %c16_i32 = arith.constant 16 : i32
    %c0_i32 = arith.constant 0 : i32
    %4 = arith.cmpi eq, %c16_i32, %c0_i32 : i32
    %c1_i32 = arith.constant 1 : i32
    %5 = arith.select %4, %c1_i32, %c16_i32 : i32
    %6 = vector.broadcast %5 : i32 to vector<1x256xi32>
    %7 = arith.remsi %3, %6 : vector<1x256xi32>
    %c0_i32_2 = arith.constant 0 : i32
    %8 = vector.broadcast %c0_i32_2 : i32 to vector<1x256xi32>
    %9 = arith.cmpi ne, %7, %8 : vector<1x256xi32>
    %c0_i32_3 = arith.constant 0 : i32
    %10 = vector.broadcast %c0_i32_3 : i32 to vector<1x256xi32>
    %11 = arith.cmpi slt, %7, %10 : vector<1x256xi32>
    %c0_i32_4 = arith.constant 0 : i32
    %12 = arith.cmpi slt, %5, %c0_i32_4 : i32
    %13 = vector.broadcast %12 : i1 to vector<1x256xi1>
    %14 = vector.broadcast %13 : vector<1x256xi1> to vector<1x256xi1>
    %15 = arith.xori %11, %14 : vector<1x256xi1>
    %16 = arith.andi %15, %9 : vector<1x256xi1>
    %17 = vector.broadcast %5 : i32 to vector<1x256xi32>
    %18 = arith.addi %7, %17 : vector<1x256xi32>
    %19 = arith.select %16, %18, %7 : vector<1x256xi1>, vector<1x256xi32>
    %c1_i32_5 = arith.constant 1 : i32
    %20 = vector.broadcast %c1_i32_5 : i32 to vector<1x256xi32>
    %21 = arith.cmpi sge, %19, %20 : vector<1x256xi32>
    %c14_i32 = arith.constant 14 : i32
    %22 = vector.broadcast %c14_i32 : i32 to vector<1x256xi32>
    %23 = arith.cmpi sle, %19, %22 : vector<1x256xi32>
    %c0_6 = arith.constant 0 : index
    %c0_7 = arith.constant 0 : index
    %c0_8 = arith.constant 0 : index
    %24 = vector.load %arg1[%c0_6, %c0_7, %c0_8] : memref<2x32x256xf32, #tpu.memory_space<vmem>>, vector<1x32x256xf32>
    %25 = vector.shape_cast %24 : vector<1x32x256xf32> to vector<32x256xf32>
    %c0_9 = arith.constant 0 : index
    %c128 = arith.constant 128 : index
    %26 = vector.load %arg9[%c0_9, %c128] : memref<32x512xf32, #tpu.memory_space<vmem>>, vector<32x256xf32>
    tpu.vector_store %arg9[%c0_9, %c128], %25 {strides = array<i32>} : memref<32x512xf32, #tpu.memory_space<vmem>>, vector<32x256xf32>,
    %c0_10 = arith.constant 0 : index
    %c111 = arith.constant 111 : index
    %27 = vector.load %arg9[%c0_10, %c111] : memref<32x512xf32, #tpu.memory_space<vmem>>, vector<32x256xf32>
    %cst_11 = arith.constant 0.000000e+00 : f32
    %28 = vector.shape_cast %21 : vector<1x256xi1> to vector<1x256xi1>
    %29 = vector.broadcast %28 : vector<1x256xi1> to vector<32x256xi1>
    %30 = vector.broadcast %cst_11 : f32 to vector<32x256xf32>
    %31 = arith.select %29, %27, %30 : vector<32x256xi1>, vector<32x256xf32>
    %c0_12 = arith.constant 0 : index
    %c0_13 = arith.constant 0 : index
    %32 = vector.load %arg10[%c0_12, %c0_13] : memref<288x512xf32, #tpu.memory_space<vmem>>, vector<32x256xf32>
    tpu.vector_store %arg10[%c0_12, %c0_13], %31 {strides = array<i32>} : memref<288x512xf32, #tpu.memory_space<vmem>>, vector<32x256xf32>,
    %c0_14 = arith.constant 0 : index
    %c112 = arith.constant 112 : index
    %33 = vector.load %arg9[%c0_14, %c112] : memref<32x512xf32, #tpu.memory_space<vmem>>, vector<32x256xf32>
    %c32 = arith.constant 32 : index
    %c0_15 = arith.constant 0 : index
    %34 = vector.load %arg10[%c32, %c0_15] : memref<288x512xf32, #tpu.memory_space<vmem>>, vector<32x256xf32>
    tpu.vector_store %arg10[%c32, %c0_15], %33 {strides = array<i32>} : memref<288x512xf32, #tpu.memory_space<vmem>>, vector<32x256xf32>,
    %c0_16 = arith.constant 0 : index
    %c113 = arith.constant 113 : index
    %35 = vector.load %arg9[%c0_16, %c113] : memref<32x512xf32, #tpu.memory_space<vmem>>, vector<32x256xf32>
    %cst_17 = arith.constant 0.000000e+00 : f32
    %36 = vector.shape_cast %23 : vector<1x256xi1> to vector<1x256xi1>
    %37 = vector.broadcast %36 : vector<1x256xi1> to vector<32x256xi1>
    %38 = vector.broadcast %cst_17 : f32 to vector<32x256xf32>
    %39 = arith.select %37, %35, %38 : vector<32x256xi1>, vector<32x256xf32>
    %c64 = arith.constant 64 : index
    %c0_18 = arith.constant 0 : index
    %40 = vector.load %arg10[%c64, %c0_18] : memref<288x512xf32, #tpu.memory_space<vmem>>, vector<32x256xf32>
    tpu.vector_store %arg10[%c64, %c0_18], %39 {strides = array<i32>} : memref<288x512xf32, #tpu.memory_space<vmem>>, vector<32x256xf32>,
    %c0_19 = arith.constant 0 : index
    %c127 = arith.constant 127 : index
    %41 = vector.load %arg9[%c0_19, %c127] : memref<32x512xf32, #tpu.memory_space<vmem>>, vector<32x256xf32>
    %cst_20 = arith.constant 0.000000e+00 : f32
    %42 = vector.shape_cast %21 : vector<1x256xi1> to vector<1x256xi1>
    %43 = vector.broadcast %42 : vector<1x256xi1> to vector<32x256xi1>
    %44 = vector.broadcast %cst_20 : f32 to vector<32x256xf32>
    %45 = arith.select %43, %41, %44 : vector<32x256xi1>, vector<32x256xf32>
    %c96 = arith.constant 96 : index
    %c0_21 = arith.constant 0 : index
    %46 = vector.load %arg10[%c96, %c0_21] : memref<288x512xf32, #tpu.memory_space<vmem>>, vector<32x256xf32>
    tpu.vector_store %arg10[%c96, %c0_21], %45 {strides = array<i32>} : memref<288x512xf32, #tpu.memory_space<vmem>>, vector<32x256xf32>,
    %c0_22 = arith.constant 0 : index
    %c128_23 = arith.constant 128 : index
    %47 = vector.load %arg9[%c0_22, %c128_23] : memref<32x512xf32, #tpu.memory_space<vmem>>, vector<32x256xf32>
    %c128_24 = arith.constant 128 : index
    %c0_25 = arith.constant 0 : index
    %48 = vector.load %arg10[%c128_24, %c0_25] : memref<288x512xf32, #tpu.memory_space<vmem>>, vector<32x256xf32>
    tpu.vector_store %arg10[%c128_24, %c0_25], %47 {strides = array<i32>} : memref<288x512xf32, #tpu.memory_space<vmem>>, vector<32x256xf32>,
    %c0_26 = arith.constant 0 : index
    %c129 = arith.constant 129 : index
    %49 = vector.load %arg9[%c0_26, %c129] : memref<32x512xf32, #tpu.memory_space<vmem>>, vector<32x256xf32>
    %cst_27 = arith.constant 0.000000e+00 : f32
    %50 = vector.shape_cast %23 : vector<1x256xi1> to vector<1x256xi1>
    %51 = vector.broadcast %50 : vector<1x256xi1> to vector<32x256xi1>
    %52 = vector.broadcast %cst_27 : f32 to vector<32x256xf32>
    %53 = arith.select %51, %49, %52 : vector<32x256xi1>, vector<32x256xf32>
    %c160 = arith.constant 160 : index
    %c0_28 = arith.constant 0 : index
    %54 = vector.load %arg10[%c160, %c0_28] : memref<288x512xf32, #tpu.memory_space<vmem>>, vector<32x256xf32>
    tpu.vector_store %arg10[%c160, %c0_28], %53 {strides = array<i32>} : memref<288x512xf32, #tpu.memory_space<vmem>>, vector<32x256xf32>,
    %c0_29 = arith.constant 0 : index
    %c143 = arith.constant 143 : index
    %55 = vector.load %arg9[%c0_29, %c143] : memref<32x512xf32, #tpu.memory_space<vmem>>, vector<32x256xf32>
    %cst_30 = arith.constant 0.000000e+00 : f32
    %56 = vector.shape_cast %21 : vector<1x256xi1> to vector<1x256xi1>
    %57 = vector.broadcast %56 : vector<1x256xi1> to vector<32x256xi1>
    %58 = vector.broadcast %cst_30 : f32 to vector<32x256xf32>
    %59 = arith.select %57, %55, %58 : vector<32x256xi1>, vector<32x256xf32>
    %c192 = arith.constant 192 : index
    %c0_31 = arith.constant 0 : index
    %60 = vector.load %arg10[%c192, %c0_31] : memref<288x512xf32, #tpu.memory_space<vmem>>, vector<32x256xf32>
    tpu.vector_store %arg10[%c192, %c0_31], %59 {strides = array<i32>} : memref<288x512xf32, #tpu.memory_space<vmem>>, vector<32x256xf32>,
    %c0_32 = arith.constant 0 : index
    %c144 = arith.constant 144 : index
    %61 = vector.load %arg9[%c0_32, %c144] : memref<32x512xf32, #tpu.memory_space<vmem>>, vector<32x256xf32>
    %c224 = arith.constant 224 : index
    %c0_33 = arith.constant 0 : index
    %62 = vector.load %arg10[%c224, %c0_33] : memref<288x512xf32, #tpu.memory_space<vmem>>, vector<32x256xf32>
    tpu.vector_store %arg10[%c224, %c0_33], %61 {strides = array<i32>} : memref<288x512xf32, #tpu.memory_space<vmem>>, vector<32x256xf32>,
    %c0_34 = arith.constant 0 : index
    %c145 = arith.constant 145 : index
    %63 = vector.load %arg9[%c0_34, %c145] : memref<32x512xf32, #tpu.memory_space<vmem>>, vector<32x256xf32>
    %cst_35 = arith.constant 0.000000e+00 : f32
    %64 = vector.shape_cast %23 : vector<1x256xi1> to vector<1x256xi1>
    %65 = vector.broadcast %64 : vector<1x256xi1> to vector<32x256xi1>
    %66 = vector.broadcast %cst_35 : f32 to vector<32x256xf32>
    %67 = arith.select %65, %63, %66 : vector<32x256xi1>, vector<32x256xf32>
    %c256 = arith.constant 256 : index
    %c0_36 = arith.constant 0 : index
    %68 = vector.load %arg10[%c256, %c0_36] : memref<288x512xf32, #tpu.memory_space<vmem>>, vector<32x256xf32>
    tpu.vector_store %arg10[%c256, %c0_36], %67 {strides = array<i32>} : memref<288x512xf32, #tpu.memory_space<vmem>>, vector<32x256xf32>,
    %c1 = arith.constant 1 : index
    %c0_37 = arith.constant 0 : index
    %c0_38 = arith.constant 0 : index
    %69 = vector.load %arg1[%c1, %c0_37, %c0_38] : memref<2x32x256xf32, #tpu.memory_space<vmem>>, vector<1x32x256xf32>
    %70 = vector.shape_cast %69 : vector<1x32x256xf32> to vector<32x256xf32>
    %c0_39 = arith.constant 0 : index
    %c128_40 = arith.constant 128 : index
    %71 = vector.load %arg9[%c0_39, %c128_40] : memref<32x512xf32, #tpu.memory_space<vmem>>, vector<32x256xf32>
    tpu.vector_store %arg9[%c0_39, %c128_40], %70 {strides = array<i32>} : memref<32x512xf32, #tpu.memory_space<vmem>>, vector<32x256xf32>,
    %c0_41 = arith.constant 0 : index
    %c111_42 = arith.constant 111 : index
    %72 = vector.load %arg9[%c0_41, %c111_42] : memref<32x512xf32, #tpu.memory_space<vmem>>, vector<32x256xf32>
    %cst_43 = arith.constant 0.000000e+00 : f32
    %73 = vector.shape_cast %21 : vector<1x256xi1> to vector<1x256xi1>
    %74 = vector.broadcast %73 : vector<1x256xi1> to vector<32x256xi1>
    %75 = vector.broadcast %cst_43 : f32 to vector<32x256xf32>
    %76 = arith.select %74, %72, %75 : vector<32x256xi1>, vector<32x256xf32>
    %c0_44 = arith.constant 0 : index
    %c256_45 = arith.constant 256 : index
    %77 = vector.load %arg10[%c0_44, %c256_45] : memref<288x512xf32, #tpu.memory_space<vmem>>, vector<32x256xf32>
    tpu.vector_store %arg10[%c0_44, %c256_45], %76 {strides = array<i32>} : memref<288x512xf32, #tpu.memory_space<vmem>>, vector<32x256xf32>,
    %c0_46 = arith.constant 0 : index
    %c112_47 = arith.constant 112 : index
    %78 = vector.load %arg9[%c0_46, %c112_47] : memref<32x512xf32, #tpu.memory_space<vmem>>, vector<32x256xf32>
    %c32_48 = arith.constant 32 : index
    %c256_49 = arith.constant 256 : index
    %79 = vector.load %arg10[%c32_48, %c256_49] : memref<288x512xf32, #tpu.memory_space<vmem>>, vector<32x256xf32>
    tpu.vector_store %arg10[%c32_48, %c256_49], %78 {strides = array<i32>} : memref<288x512xf32, #tpu.memory_space<vmem>>, vector<32x256xf32>,
    %c0_50 = arith.constant 0 : index
    %c113_51 = arith.constant 113 : index
    %80 = vector.load %arg9[%c0_50, %c113_51] : memref<32x512xf32, #tpu.memory_space<vmem>>, vector<32x256xf32>
    %cst_52 = arith.constant 0.000000e+00 : f32
    %81 = vector.shape_cast %23 : vector<1x256xi1> to vector<1x256xi1>
    %82 = vector.broadcast %81 : vector<1x256xi1> to vector<32x256xi1>
    %83 = vector.broadcast %cst_52 : f32 to vector<32x256xf32>
    %84 = arith.select %82, %80, %83 : vector<32x256xi1>, vector<32x256xf32>
    %c64_53 = arith.constant 64 : index
    %c256_54 = arith.constant 256 : index
    %85 = vector.load %arg10[%c64_53, %c256_54] : memref<288x512xf32, #tpu.memory_space<vmem>>, vector<32x256xf32>
    tpu.vector_store %arg10[%c64_53, %c256_54], %84 {strides = array<i32>} : memref<288x512xf32, #tpu.memory_space<vmem>>, vector<32x256xf32>,
    %c0_55 = arith.constant 0 : index
    %c127_56 = arith.constant 127 : index
    %86 = vector.load %arg9[%c0_55, %c127_56] : memref<32x512xf32, #tpu.memory_space<vmem>>, vector<32x256xf32>
    %cst_57 = arith.constant 0.000000e+00 : f32
    %87 = vector.shape_cast %21 : vector<1x256xi1> to vector<1x256xi1>
    %88 = vector.broadcast %87 : vector<1x256xi1> to vector<32x256xi1>
    %89 = vector.broadcast %cst_57 : f32 to vector<32x256xf32>
    %90 = arith.select %88, %86, %89 : vector<32x256xi1>, vector<32x256xf32>
    %c96_58 = arith.constant 96 : index
    %c256_59 = arith.constant 256 : index
    %91 = vector.load %arg10[%c96_58, %c256_59] : memref<288x512xf32, #tpu.memory_space<vmem>>, vector<32x256xf32>
    tpu.vector_store %arg10[%c96_58, %c256_59], %90 {strides = array<i32>} : memref<288x512xf32, #tpu.memory_space<vmem>>, vector<32x256xf32>,
    %c0_60 = arith.constant 0 : index
    %c128_61 = arith.constant 128 : index
    %92 = vector.load %arg9[%c0_60, %c128_61] : memref<32x512xf32, #tpu.memory_space<vmem>>, vector<32x256xf32>
    %c128_62 = arith.constant 128 : index
    %c256_63 = arith.constant 256 : index
    %93 = vector.load %arg10[%c128_62, %c256_63] : memref<288x512xf32, #tpu.memory_space<vmem>>, vector<32x256xf32>
    tpu.vector_store %arg10[%c128_62, %c256_63], %92 {strides = array<i32>} : memref<288x512xf32, #tpu.memory_space<vmem>>, vector<32x256xf32>,
    %c0_64 = arith.constant 0 : index
    %c129_65 = arith.constant 129 : index
    %94 = vector.load %arg9[%c0_64, %c129_65] : memref<32x512xf32, #tpu.memory_space<vmem>>, vector<32x256xf32>
    %cst_66 = arith.constant 0.000000e+00 : f32
    %95 = vector.shape_cast %23 : vector<1x256xi1> to vector<1x256xi1>
    %96 = vector.broadcast %95 : vector<1x256xi1> to vector<32x256xi1>
    %97 = vector.broadcast %cst_66 : f32 to vector<32x256xf32>
    %98 = arith.select %96, %94, %97 : vector<32x256xi1>, vector<32x256xf32>
    %c160_67 = arith.constant 160 : index
    %c256_68 = arith.constant 256 : index
    %99 = vector.load %arg10[%c160_67, %c256_68] : memref<288x512xf32, #tpu.memory_space<vmem>>, vector<32x256xf32>
    tpu.vector_store %arg10[%c160_67, %c256_68], %98 {strides = array<i32>} : memref<288x512xf32, #tpu.memory_space<vmem>>, vector<32x256xf32>,
    %c0_69 = arith.constant 0 : index
    %c143_70 = arith.constant 143 : index
    %100 = vector.load %arg9[%c0_69, %c143_70] : memref<32x512xf32, #tpu.memory_space<vmem>>, vector<32x256xf32>
    %cst_71 = arith.constant 0.000000e+00 : f32
    %101 = vector.shape_cast %21 : vector<1x256xi1> to vector<1x256xi1>
    %102 = vector.broadcast %101 : vector<1x256xi1> to vector<32x256xi1>
    %103 = vector.broadcast %cst_71 : f32 to vector<32x256xf32>
    %104 = arith.select %102, %100, %103 : vector<32x256xi1>, vector<32x256xf32>
    %c192_72 = arith.constant 192 : index
    %c256_73 = arith.constant 256 : index
    %105 = vector.load %arg10[%c192_72, %c256_73] : memref<288x512xf32, #tpu.memory_space<vmem>>, vector<32x256xf32>
    tpu.vector_store %arg10[%c192_72, %c256_73], %104 {strides = array<i32>} : memref<288x512xf32, #tpu.memory_space<vmem>>, vector<32x256xf32>,
    %c0_74 = arith.constant 0 : index
    %c144_75 = arith.constant 144 : index
    %106 = vector.load %arg9[%c0_74, %c144_75] : memref<32x512xf32, #tpu.memory_space<vmem>>, vector<32x256xf32>
    %c224_76 = arith.constant 224 : index
    %c256_77 = arith.constant 256 : index
    %107 = vector.load %arg10[%c224_76, %c256_77] : memref<288x512xf32, #tpu.memory_space<vmem>>, vector<32x256xf32>
    tpu.vector_store %arg10[%c224_76, %c256_77], %106 {strides = array<i32>} : memref<288x512xf32, #tpu.memory_space<vmem>>, vector<32x256xf32>,
    %c0_78 = arith.constant 0 : index
    %c145_79 = arith.constant 145 : index
    %108 = vector.load %arg9[%c0_78, %c145_79] : memref<32x512xf32, #tpu.memory_space<vmem>>, vector<32x256xf32>
    %cst_80 = arith.constant 0.000000e+00 : f32
    %109 = vector.shape_cast %23 : vector<1x256xi1> to vector<1x256xi1>
    %110 = vector.broadcast %109 : vector<1x256xi1> to vector<32x256xi1>
    %111 = vector.broadcast %cst_80 : f32 to vector<32x256xf32>
    %112 = arith.select %110, %108, %111 : vector<32x256xi1>, vector<32x256xf32>
    %c256_81 = arith.constant 256 : index
    %c256_82 = arith.constant 256 : index
    %113 = vector.load %arg10[%c256_81, %c256_82] : memref<288x512xf32, #tpu.memory_space<vmem>>, vector<32x256xf32>
    tpu.vector_store %arg10[%c256_81, %c256_82], %112 {strides = array<i32>} : memref<288x512xf32, #tpu.memory_space<vmem>>, vector<32x256xf32>,
    %c0_83 = arith.constant 0 : index
    %c0_84 = arith.constant 0 : index
    %114 = vector.load %arg2[%c0_83, %c0_84] : memref<32x288xf32, #tpu.memory_space<vmem>>, vector<32x288xf32>
    %c0_85 = arith.constant 0 : index
    %c0_86 = arith.constant 0 : index
    %115 = vector.load %arg10[%c0_85, %c0_86] : memref<288x512xf32, #tpu.memory_space<vmem>>, vector<288x512xf32>
    %cst_87 = arith.constant dense<0.000000e+00> : vector<32x512xf32>
    %116 = tpu.matmul %114, %115, %cst_87 {dimension_numbers = #tpu.dot_dimension_numbers<[1], [0], [0], [1], [0, 0, 1, 1], [], []>} : vector<32x288xf32>, vector<288x512xf32>, vector<32x512xf32> -> vector<32x512xf32>
    %c0_88 = arith.constant 0 : index
    %c0_89 = arith.constant 0 : index
    %117 = vector.load %arg3[%c0_88, %c0_89] : memref<32x1xf32, #tpu.memory_space<vmem>>, vector<32x1xf32>
    %118 = vector.broadcast %117 : vector<32x1xf32> to vector<32x512xf32>
    %119 = arith.mulf %116, %118 : vector<32x512xf32>
    %c0_90 = arith.constant 0 : index
    %c0_91 = arith.constant 0 : index
    %120 = vector.load %arg4[%c0_90, %c0_91] : memref<32x1xf32, #tpu.memory_space<vmem>>, vector<32x1xf32>
    %121 = vector.broadcast %120 : vector<32x1xf32> to vector<32x512xf32>
    %122 = arith.addf %119, %121 : vector<32x512xf32>
    %cst_92 = arith.constant 0.000000e+00 : f32
    %123 = vector.broadcast %cst_92 : f32 to vector<32x512xf32>
    %124 = arith.maximumf %122, %123 : vector<32x512xf32>
    %125 = vector.extract_strided_slice %124 {offsets = [0, 0], sizes = [32, 256], strides = [1, 1]} : vector<32x512xf32> to vector<32x256xf32>
    %c0_93 = arith.constant 0 : index
    %c128_94 = arith.constant 128 : index
    %126 = vector.load %arg9[%c0_93, %c128_94] : memref<32x512xf32, #tpu.memory_space<vmem>>, vector<32x256xf32>
    tpu.vector_store %arg9[%c0_93, %c128_94], %125 {strides = array<i32>} : memref<32x512xf32, #tpu.memory_space<vmem>>, vector<32x256xf32>,
    %c0_95 = arith.constant 0 : index
    %c111_96 = arith.constant 111 : index
    %127 = vector.load %arg9[%c0_95, %c111_96] : memref<32x512xf32, #tpu.memory_space<vmem>>, vector<32x256xf32>
    %cst_97 = arith.constant 0.000000e+00 : f32
    %128 = vector.shape_cast %21 : vector<1x256xi1> to vector<1x256xi1>
    %129 = vector.broadcast %128 : vector<1x256xi1> to vector<32x256xi1>
    %130 = vector.broadcast %cst_97 : f32 to vector<32x256xf32>
    %131 = arith.select %129, %127, %130 : vector<32x256xi1>, vector<32x256xf32>
    %c0_98 = arith.constant 0 : index
    %c0_99 = arith.constant 0 : index
    %132 = vector.load %arg10[%c0_98, %c0_99] : memref<288x512xf32, #tpu.memory_space<vmem>>, vector<32x256xf32>
    tpu.vector_store %arg10[%c0_98, %c0_99], %131 {strides = array<i32>} : memref<288x512xf32, #tpu.memory_space<vmem>>, vector<32x256xf32>,
    %c0_100 = arith.constant 0 : index
    %c112_101 = arith.constant 112 : index
    %133 = vector.load %arg9[%c0_100, %c112_101] : memref<32x512xf32, #tpu.memory_space<vmem>>, vector<32x256xf32>
    %c32_102 = arith.constant 32 : index
    %c0_103 = arith.constant 0 : index
    %134 = vector.load %arg10[%c32_102, %c0_103] : memref<288x512xf32, #tpu.memory_space<vmem>>, vector<32x256xf32>
    tpu.vector_store %arg10[%c32_102, %c0_103], %133 {strides = array<i32>} : memref<288x512xf32, #tpu.memory_space<vmem>>, vector<32x256xf32>,
    %c0_104 = arith.constant 0 : index
    %c113_105 = arith.constant 113 : index
    %135 = vector.load %arg9[%c0_104, %c113_105] : memref<32x512xf32, #tpu.memory_space<vmem>>, vector<32x256xf32>
    %cst_106 = arith.constant 0.000000e+00 : f32
    %136 = vector.shape_cast %23 : vector<1x256xi1> to vector<1x256xi1>
    %137 = vector.broadcast %136 : vector<1x256xi1> to vector<32x256xi1>
    %138 = vector.broadcast %cst_106 : f32 to vector<32x256xf32>
    %139 = arith.select %137, %135, %138 : vector<32x256xi1>, vector<32x256xf32>
    %c64_107 = arith.constant 64 : index
    %c0_108 = arith.constant 0 : index
    %140 = vector.load %arg10[%c64_107, %c0_108] : memref<288x512xf32, #tpu.memory_space<vmem>>, vector<32x256xf32>
    tpu.vector_store %arg10[%c64_107, %c0_108], %139 {strides = array<i32>} : memref<288x512xf32, #tpu.memory_space<vmem>>, vector<32x256xf32>,
    %c0_109 = arith.constant 0 : index
    %c127_110 = arith.constant 127 : index
    %141 = vector.load %arg9[%c0_109, %c127_110] : memref<32x512xf32, #tpu.memory_space<vmem>>, vector<32x256xf32>
    %cst_111 = arith.constant 0.000000e+00 : f32
    %142 = vector.shape_cast %21 : vector<1x256xi1> to vector<1x256xi1>
    %143 = vector.broadcast %142 : vector<1x256xi1> to vector<32x256xi1>
    %144 = vector.broadcast %cst_111 : f32 to vector<32x256xf32>
    %145 = arith.select %143, %141, %144 : vector<32x256xi1>, vector<32x256xf32>
    %c96_112 = arith.constant 96 : index
    %c0_113 = arith.constant 0 : index
    %146 = vector.load %arg10[%c96_112, %c0_113] : memref<288x512xf32, #tpu.memory_space<vmem>>, vector<32x256xf32>
    tpu.vector_store %arg10[%c96_112, %c0_113], %145 {strides = array<i32>} : memref<288x512xf32, #tpu.memory_space<vmem>>, vector<32x256xf32>,
    %c0_114 = arith.constant 0 : index
    %c128_115 = arith.constant 128 : index
    %147 = vector.load %arg9[%c0_114, %c128_115] : memref<32x512xf32, #tpu.memory_space<vmem>>, vector<32x256xf32>
    %c128_116 = arith.constant 128 : index
    %c0_117 = arith.constant 0 : index
    %148 = vector.load %arg10[%c128_116, %c0_117] : memref<288x512xf32, #tpu.memory_space<vmem>>, vector<32x256xf32>
    tpu.vector_store %arg10[%c128_116, %c0_117], %147 {strides = array<i32>} : memref<288x512xf32, #tpu.memory_space<vmem>>, vector<32x256xf32>,
    %c0_118 = arith.constant 0 : index
    %c129_119 = arith.constant 129 : index
    %149 = vector.load %arg9[%c0_118, %c129_119] : memref<32x512xf32, #tpu.memory_space<vmem>>, vector<32x256xf32>
    %cst_120 = arith.constant 0.000000e+00 : f32
    %150 = vector.shape_cast %23 : vector<1x256xi1> to vector<1x256xi1>
    %151 = vector.broadcast %150 : vector<1x256xi1> to vector<32x256xi1>
    %152 = vector.broadcast %cst_120 : f32 to vector<32x256xf32>
    %153 = arith.select %151, %149, %152 : vector<32x256xi1>, vector<32x256xf32>
    %c160_121 = arith.constant 160 : index
    %c0_122 = arith.constant 0 : index
    %154 = vector.load %arg10[%c160_121, %c0_122] : memref<288x512xf32, #tpu.memory_space<vmem>>, vector<32x256xf32>
    tpu.vector_store %arg10[%c160_121, %c0_122], %153 {strides = array<i32>} : memref<288x512xf32, #tpu.memory_space<vmem>>, vector<32x256xf32>,
    %c0_123 = arith.constant 0 : index
    %c143_124 = arith.constant 143 : index
    %155 = vector.load %arg9[%c0_123, %c143_124] : memref<32x512xf32, #tpu.memory_space<vmem>>, vector<32x256xf32>
    %cst_125 = arith.constant 0.000000e+00 : f32
    %156 = vector.shape_cast %21 : vector<1x256xi1> to vector<1x256xi1>
    %157 = vector.broadcast %156 : vector<1x256xi1> to vector<32x256xi1>
    %158 = vector.broadcast %cst_125 : f32 to vector<32x256xf32>
    %159 = arith.select %157, %155, %158 : vector<32x256xi1>, vector<32x256xf32>
    %c192_126 = arith.constant 192 : index
    %c0_127 = arith.constant 0 : index
    %160 = vector.load %arg10[%c192_126, %c0_127] : memref<288x512xf32, #tpu.memory_space<vmem>>, vector<32x256xf32>
    tpu.vector_store %arg10[%c192_126, %c0_127], %159 {strides = array<i32>} : memref<288x512xf32, #tpu.memory_space<vmem>>, vector<32x256xf32>,
    %c0_128 = arith.constant 0 : index
    %c144_129 = arith.constant 144 : index
    %161 = vector.load %arg9[%c0_128, %c144_129] : memref<32x512xf32, #tpu.memory_space<vmem>>, vector<32x256xf32>
    %c224_130 = arith.constant 224 : index
    %c0_131 = arith.constant 0 : index
    %162 = vector.load %arg10[%c224_130, %c0_131] : memref<288x512xf32, #tpu.memory_space<vmem>>, vector<32x256xf32>
    tpu.vector_store %arg10[%c224_130, %c0_131], %161 {strides = array<i32>} : memref<288x512xf32, #tpu.memory_space<vmem>>, vector<32x256xf32>,
    %c0_132 = arith.constant 0 : index
    %c145_133 = arith.constant 145 : index
    %163 = vector.load %arg9[%c0_132, %c145_133] : memref<32x512xf32, #tpu.memory_space<vmem>>, vector<32x256xf32>
    %cst_134 = arith.constant 0.000000e+00 : f32
    %164 = vector.shape_cast %23 : vector<1x256xi1> to vector<1x256xi1>
    %165 = vector.broadcast %164 : vector<1x256xi1> to vector<32x256xi1>
    %166 = vector.broadcast %cst_134 : f32 to vector<32x256xf32>
    %167 = arith.select %165, %163, %166 : vector<32x256xi1>, vector<32x256xf32>
    %c256_135 = arith.constant 256 : index
    %c0_136 = arith.constant 0 : index
    %168 = vector.load %arg10[%c256_135, %c0_136] : memref<288x512xf32, #tpu.memory_space<vmem>>, vector<32x256xf32>
    tpu.vector_store %arg10[%c256_135, %c0_136], %167 {strides = array<i32>} : memref<288x512xf32, #tpu.memory_space<vmem>>, vector<32x256xf32>,
    %169 = vector.extract_strided_slice %124 {offsets = [0, 256], sizes = [32, 256], strides = [1, 1]} : vector<32x512xf32> to vector<32x256xf32>
    %c0_137 = arith.constant 0 : index
    %c128_138 = arith.constant 128 : index
    %170 = vector.load %arg9[%c0_137, %c128_138] : memref<32x512xf32, #tpu.memory_space<vmem>>, vector<32x256xf32>
    tpu.vector_store %arg9[%c0_137, %c128_138], %169 {strides = array<i32>} : memref<32x512xf32, #tpu.memory_space<vmem>>, vector<32x256xf32>,
    %c0_139 = arith.constant 0 : index
    %c111_140 = arith.constant 111 : index
    %171 = vector.load %arg9[%c0_139, %c111_140] : memref<32x512xf32, #tpu.memory_space<vmem>>, vector<32x256xf32>
    %cst_141 = arith.constant 0.000000e+00 : f32
    %172 = vector.shape_cast %21 : vector<1x256xi1> to vector<1x256xi1>
    %173 = vector.broadcast %172 : vector<1x256xi1> to vector<32x256xi1>
    %174 = vector.broadcast %cst_141 : f32 to vector<32x256xf32>
    %175 = arith.select %173, %171, %174 : vector<32x256xi1>, vector<32x256xf32>
    %c0_142 = arith.constant 0 : index
    %c256_143 = arith.constant 256 : index
    %176 = vector.load %arg10[%c0_142, %c256_143] : memref<288x512xf32, #tpu.memory_space<vmem>>, vector<32x256xf32>
    tpu.vector_store %arg10[%c0_142, %c256_143], %175 {strides = array<i32>} : memref<288x512xf32, #tpu.memory_space<vmem>>, vector<32x256xf32>,
    %c0_144 = arith.constant 0 : index
    %c112_145 = arith.constant 112 : index
    %177 = vector.load %arg9[%c0_144, %c112_145] : memref<32x512xf32, #tpu.memory_space<vmem>>, vector<32x256xf32>
    %c32_146 = arith.constant 32 : index
    %c256_147 = arith.constant 256 : index
    %178 = vector.load %arg10[%c32_146, %c256_147] : memref<288x512xf32, #tpu.memory_space<vmem>>, vector<32x256xf32>
    tpu.vector_store %arg10[%c32_146, %c256_147], %177 {strides = array<i32>} : memref<288x512xf32, #tpu.memory_space<vmem>>, vector<32x256xf32>,
    %c0_148 = arith.constant 0 : index
    %c113_149 = arith.constant 113 : index
    %179 = vector.load %arg9[%c0_148, %c113_149] : memref<32x512xf32, #tpu.memory_space<vmem>>, vector<32x256xf32>
    %cst_150 = arith.constant 0.000000e+00 : f32
    %180 = vector.shape_cast %23 : vector<1x256xi1> to vector<1x256xi1>
    %181 = vector.broadcast %180 : vector<1x256xi1> to vector<32x256xi1>
    %182 = vector.broadcast %cst_150 : f32 to vector<32x256xf32>
    %183 = arith.select %181, %179, %182 : vector<32x256xi1>, vector<32x256xf32>
    %c64_151 = arith.constant 64 : index
    %c256_152 = arith.constant 256 : index
    %184 = vector.load %arg10[%c64_151, %c256_152] : memref<288x512xf32, #tpu.memory_space<vmem>>, vector<32x256xf32>
    tpu.vector_store %arg10[%c64_151, %c256_152], %183 {strides = array<i32>} : memref<288x512xf32, #tpu.memory_space<vmem>>, vector<32x256xf32>,
    %c0_153 = arith.constant 0 : index
    %c127_154 = arith.constant 127 : index
    %185 = vector.load %arg9[%c0_153, %c127_154] : memref<32x512xf32, #tpu.memory_space<vmem>>, vector<32x256xf32>
    %cst_155 = arith.constant 0.000000e+00 : f32
    %186 = vector.shape_cast %21 : vector<1x256xi1> to vector<1x256xi1>
    %187 = vector.broadcast %186 : vector<1x256xi1> to vector<32x256xi1>
    %188 = vector.broadcast %cst_155 : f32 to vector<32x256xf32>
    %189 = arith.select %187, %185, %188 : vector<32x256xi1>, vector<32x256xf32>
    %c96_156 = arith.constant 96 : index
    %c256_157 = arith.constant 256 : index
    %190 = vector.load %arg10[%c96_156, %c256_157] : memref<288x512xf32, #tpu.memory_space<vmem>>, vector<32x256xf32>
    tpu.vector_store %arg10[%c96_156, %c256_157], %189 {strides = array<i32>} : memref<288x512xf32, #tpu.memory_space<vmem>>, vector<32x256xf32>,
    %c0_158 = arith.constant 0 : index
    %c128_159 = arith.constant 128 : index
    %191 = vector.load %arg9[%c0_158, %c128_159] : memref<32x512xf32, #tpu.memory_space<vmem>>, vector<32x256xf32>
    %c128_160 = arith.constant 128 : index
    %c256_161 = arith.constant 256 : index
    %192 = vector.load %arg10[%c128_160, %c256_161] : memref<288x512xf32, #tpu.memory_space<vmem>>, vector<32x256xf32>
    tpu.vector_store %arg10[%c128_160, %c256_161], %191 {strides = array<i32>} : memref<288x512xf32, #tpu.memory_space<vmem>>, vector<32x256xf32>,
    %c0_162 = arith.constant 0 : index
    %c129_163 = arith.constant 129 : index
    %193 = vector.load %arg9[%c0_162, %c129_163] : memref<32x512xf32, #tpu.memory_space<vmem>>, vector<32x256xf32>
    %cst_164 = arith.constant 0.000000e+00 : f32
    %194 = vector.shape_cast %23 : vector<1x256xi1> to vector<1x256xi1>
    %195 = vector.broadcast %194 : vector<1x256xi1> to vector<32x256xi1>
    %196 = vector.broadcast %cst_164 : f32 to vector<32x256xf32>
    %197 = arith.select %195, %193, %196 : vector<32x256xi1>, vector<32x256xf32>
    %c160_165 = arith.constant 160 : index
    %c256_166 = arith.constant 256 : index
    %198 = vector.load %arg10[%c160_165, %c256_166] : memref<288x512xf32, #tpu.memory_space<vmem>>, vector<32x256xf32>
    tpu.vector_store %arg10[%c160_165, %c256_166], %197 {strides = array<i32>} : memref<288x512xf32, #tpu.memory_space<vmem>>, vector<32x256xf32>,
    %c0_167 = arith.constant 0 : index
    %c143_168 = arith.constant 143 : index
    %199 = vector.load %arg9[%c0_167, %c143_168] : memref<32x512xf32, #tpu.memory_space<vmem>>, vector<32x256xf32>
    %cst_169 = arith.constant 0.000000e+00 : f32
    %200 = vector.shape_cast %21 : vector<1x256xi1> to vector<1x256xi1>
    %201 = vector.broadcast %200 : vector<1x256xi1> to vector<32x256xi1>
    %202 = vector.broadcast %cst_169 : f32 to vector<32x256xf32>
    %203 = arith.select %201, %199, %202 : vector<32x256xi1>, vector<32x256xf32>
    %c192_170 = arith.constant 192 : index
    %c256_171 = arith.constant 256 : index
    %204 = vector.load %arg10[%c192_170, %c256_171] : memref<288x512xf32, #tpu.memory_space<vmem>>, vector<32x256xf32>
    tpu.vector_store %arg10[%c192_170, %c256_171], %203 {strides = array<i32>} : memref<288x512xf32, #tpu.memory_space<vmem>>, vector<32x256xf32>,
    %c0_172 = arith.constant 0 : index
    %c144_173 = arith.constant 144 : index
    %205 = vector.load %arg9[%c0_172, %c144_173] : memref<32x512xf32, #tpu.memory_space<vmem>>, vector<32x256xf32>
    %c224_174 = arith.constant 224 : index
    %c256_175 = arith.constant 256 : index
    %206 = vector.load %arg10[%c224_174, %c256_175] : memref<288x512xf32, #tpu.memory_space<vmem>>, vector<32x256xf32>
    tpu.vector_store %arg10[%c224_174, %c256_175], %205 {strides = array<i32>} : memref<288x512xf32, #tpu.memory_space<vmem>>, vector<32x256xf32>,
    %c0_176 = arith.constant 0 : index
    %c145_177 = arith.constant 145 : index
    %207 = vector.load %arg9[%c0_176, %c145_177] : memref<32x512xf32, #tpu.memory_space<vmem>>, vector<32x256xf32>
    %cst_178 = arith.constant 0.000000e+00 : f32
    %208 = vector.shape_cast %23 : vector<1x256xi1> to vector<1x256xi1>
    %209 = vector.broadcast %208 : vector<1x256xi1> to vector<32x256xi1>
    %210 = vector.broadcast %cst_178 : f32 to vector<32x256xf32>
    %211 = arith.select %209, %207, %210 : vector<32x256xi1>, vector<32x256xf32>
    %c256_179 = arith.constant 256 : index
    %c256_180 = arith.constant 256 : index
    %212 = vector.load %arg10[%c256_179, %c256_180] : memref<288x512xf32, #tpu.memory_space<vmem>>, vector<32x256xf32>
    tpu.vector_store %arg10[%c256_179, %c256_180], %211 {strides = array<i32>} : memref<288x512xf32, #tpu.memory_space<vmem>>, vector<32x256xf32>,
    %c0_181 = arith.constant 0 : index
    %c0_182 = arith.constant 0 : index
    %213 = vector.load %arg5[%c0_181, %c0_182] : memref<32x288xf32, #tpu.memory_space<vmem>>, vector<32x288xf32>
    %c0_183 = arith.constant 0 : index
    %c0_184 = arith.constant 0 : index
    %214 = vector.load %arg10[%c0_183, %c0_184] : memref<288x512xf32, #tpu.memory_space<vmem>>, vector<288x512xf32>
    %cst_185 = arith.constant dense<0.000000e+00> : vector<32x512xf32>
    %215 = tpu.matmul %213, %214, %cst_185 {dimension_numbers = #tpu.dot_dimension_numbers<[1], [0], [0], [1], [0, 0, 1, 1], [], []>} : vector<32x288xf32>, vector<288x512xf32>, vector<32x512xf32> -> vector<32x512xf32>
    %c0_186 = arith.constant 0 : index
    %c0_187 = arith.constant 0 : index
    %c0_188 = arith.constant 0 : index
    %216 = vector.load %arg1[%c0_186, %c0_187, %c0_188] : memref<2x32x256xf32, #tpu.memory_space<vmem>>, vector<1x32x256xf32>
    %217 = vector.shape_cast %216 : vector<1x32x256xf32> to vector<32x256xf32>
    %218 = vector.extract_strided_slice %215 {offsets = [0, 0], sizes = [32, 256], strides = [1, 1]} : vector<32x512xf32> to vector<32x256xf32>
    %c0_189 = arith.constant 0 : index
    %c0_190 = arith.constant 0 : index
    %219 = vector.load %arg6[%c0_189, %c0_190] : memref<32x1xf32, #tpu.memory_space<vmem>>, vector<32x1xf32>
    %220 = vector.broadcast %219 : vector<32x1xf32> to vector<32x256xf32>
    %221 = arith.mulf %218, %220 : vector<32x256xf32>
    %c0_191 = arith.constant 0 : index
    %c0_192 = arith.constant 0 : index
    %222 = vector.load %arg7[%c0_191, %c0_192] : memref<32x1xf32, #tpu.memory_space<vmem>>, vector<32x1xf32>
    %223 = vector.broadcast %222 : vector<32x1xf32> to vector<32x256xf32>
    %224 = arith.addf %221, %223 : vector<32x256xf32>
    %225 = arith.addf %224, %217 : vector<32x256xf32>
    %cst_193 = arith.constant 0.000000e+00 : f32
    %226 = vector.broadcast %cst_193 : f32 to vector<32x256xf32>
    %227 = arith.maximumf %225, %226 : vector<32x256xf32>
    %c0_194 = arith.constant 0 : index
    %c0_195 = arith.constant 0 : index
    %c0_196 = arith.constant 0 : index
    %228 = vector.load %arg8[%c0_194, %c0_195, %c0_196] : memref<2x32x256xf32, #tpu.memory_space<vmem>>, vector<1x32x256xf32>
    %229 = vector.shape_cast %228 : vector<1x32x256xf32> to vector<32x256xf32>
    %230 = vector.shape_cast %227 : vector<32x256xf32> to vector<1x32x256xf32>
    tpu.vector_store %arg8[%c0_194, %c0_195, %c0_196], %230 {strides = array<i32>} : memref<2x32x256xf32, #tpu.memory_space<vmem>>, vector<1x32x256xf32>,
    %c1_197 = arith.constant 1 : index
    %c0_198 = arith.constant 0 : index
    %c0_199 = arith.constant 0 : index
    %231 = vector.load %arg1[%c1_197, %c0_198, %c0_199] : memref<2x32x256xf32, #tpu.memory_space<vmem>>, vector<1x32x256xf32>
    %232 = vector.shape_cast %231 : vector<1x32x256xf32> to vector<32x256xf32>
    %233 = vector.extract_strided_slice %215 {offsets = [0, 256], sizes = [32, 256], strides = [1, 1]} : vector<32x512xf32> to vector<32x256xf32>
    %c0_200 = arith.constant 0 : index
    %c0_201 = arith.constant 0 : index
    %234 = vector.load %arg6[%c0_200, %c0_201] : memref<32x1xf32, #tpu.memory_space<vmem>>, vector<32x1xf32>
    %235 = vector.broadcast %234 : vector<32x1xf32> to vector<32x256xf32>
    %236 = arith.mulf %233, %235 : vector<32x256xf32>
    %c0_202 = arith.constant 0 : index
    %c0_203 = arith.constant 0 : index
    %237 = vector.load %arg7[%c0_202, %c0_203] : memref<32x1xf32, #tpu.memory_space<vmem>>, vector<32x1xf32>
    %238 = vector.broadcast %237 : vector<32x1xf32> to vector<32x256xf32>
    %239 = arith.addf %236, %238 : vector<32x256xf32>
    %240 = arith.addf %239, %232 : vector<32x256xf32>
    %cst_204 = arith.constant 0.000000e+00 : f32
    %241 = vector.broadcast %cst_204 : f32 to vector<32x256xf32>
    %242 = arith.maximumf %240, %241 : vector<32x256xf32>
    %c1_205 = arith.constant 1 : index
    %c0_206 = arith.constant 0 : index
    %c0_207 = arith.constant 0 : index
    %243 = vector.load %arg8[%c1_205, %c0_206, %c0_207] : memref<2x32x256xf32, #tpu.memory_space<vmem>>, vector<1x32x256xf32>
    %244 = vector.shape_cast %243 : vector<1x32x256xf32> to vector<32x256xf32>
    %245 = vector.shape_cast %242 : vector<32x256xf32> to vector<1x32x256xf32>
    tpu.vector_store %arg8[%c1_205, %c0_206, %c0_207], %245 {strides = array<i32>} : memref<2x32x256xf32, #tpu.memory_space<vmem>>, vector<1x32x256xf32>,
    return
  }
  func.func @transform_0(%arg0: i32) -> (i32, i32, i32) {
    %c0_i32 = arith.constant 0 : i32
    %c0_i32_0 = arith.constant 0 : i32
    %c0_i32_1 = arith.constant 0 : i32
    return %arg0, %c0_i32, %c0_i32_0 : i32, i32, i32
  }
  func.func @transform_1(%arg0: i32) -> (i32, i32) {
    %c0_i32 = arith.constant 0 : i32
    %c0_i32_0 = arith.constant 0 : i32
    %c0_i32_1 = arith.constant 0 : i32
    return %c0_i32, %c0_i32_0 : i32, i32
  }
  func.func @transform_2(%arg0: i32) -> (i32, i32) {
    %c0_i32 = arith.constant 0 : i32
    %c0_i32_0 = arith.constant 0 : i32
    %c0_i32_1 = arith.constant 0 : i32
    return %c0_i32, %c0_i32_0 : i32, i32
  }
  func.func @transform_3(%arg0: i32) -> (i32, i32) {
    %c0_i32 = arith.constant 0 : i32
    %c0_i32_0 = arith.constant 0 : i32
    %c0_i32_1 = arith.constant 0 : i32
    return %c0_i32, %c0_i32_0 : i32, i32
  }
  func.func @transform_4(%arg0: i32) -> (i32, i32) {
    %c0_i32 = arith.constant 0 : i32
    %c0_i32_0 = arith.constant 0 : i32
    %c0_i32_1 = arith.constant 0 : i32
    return %c0_i32, %c0_i32_0 : i32, i32
  }
  func.func @transform_5(%arg0: i32) -> (i32, i32) {
    %c0_i32 = arith.constant 0 : i32
    %c0_i32_0 = arith.constant 0 : i32
    %c0_i32_1 = arith.constant 0 : i32
    return %c0_i32, %c0_i32_0 : i32, i32
  }
  func.func @transform_6(%arg0: i32) -> (i32, i32) {
    %c0_i32 = arith.constant 0 : i32
    %c0_i32_0 = arith.constant 0 : i32
    %c0_i32_1 = arith.constant 0 : i32
    return %c0_i32, %c0_i32_0 : i32, i32
  }
  func.func @transform_7(%arg0: i32) -> (i32, i32, i32) {
    %c0_i32 = arith.constant 0 : i32
    %c0_i32_0 = arith.constant 0 : i32
    %c0_i32_1 = arith.constant 0 : i32
    return %arg0, %c0_i32, %c0_i32_0 : i32, i32, i32
  }
}

</mosaic_0001>

<bundles_post_ra>
// kernel: tpu_custom_call.1
= control target key start
LH: loop header
LB: loop body
LE: loop exit
PB: predicated region body
PF: predicated region fallthrough
CT: control target
= control target key end

     0   :  { %12 = vsyncpa [#allocation5], 0  ;;  %s7565_s0 = inlined_call_operand.hbm [shape: f32[2,32,256], index: 0, kind: input, shape index: {}]   ;;  %s7566_s1 = inlined_call_operand.hbm [shape: f32[32,288], index: 1, kind: input, shape index: {}]   ;;  %s7567_s2 = inlined_call_operand.vmem [shape: f32[32,1], index: 2, kind: input, shape index: {}]   ;;  %s7568_s3 = inlined_call_operand.vmem [shape: f32[32,1], index: 3, kind: input, shape index: {}]   ;;  %s7569_s4 = inlined_call_operand.hbm [shape: f32[32,288], index: 4, kind: input, shape index: {}]   ;;  %s7570_s5 = inlined_call_operand.vmem [shape: f32[32,1], index: 5, kind: input, shape index: {}]   ;;  %s7571_s6 = inlined_call_operand.vmem [shape: f32[32,1], index: 6, kind: input, shape index: {}]   ;;  %s7572_s7 = inlined_call_operand.hbm [shape: f32[2,32,256], index: 7, kind: output, shape index: {}]  }
   0x1   :  { %13 = vsyncpa [#allocation8], 0  ;;  %s32_s26 = sshll.u32 %s7566_s1, 4  ;;  %s33_s26 = int_to_ptr.hbm [resolvable:$true] %s32_s26 }
   0x2   :  { %14 = vsyncpa [#allocation6], 0  ;;  %s4915_s27 = smov [#allocation7]   ;;  %s19_s8 = sshll.u32 %s7565_s0, 4  ;;  %s20_s8 = int_to_ptr.hbm [resolvable:$true] %s19_s8 }
   0x3   :  { %s34_s28 = sshll.u32 %s4915_s27, 4  ;;  %s4916_s9 = smov 384   ;;  %s35_s28 = int_to_ptr.vmem [resolvable:$true] %s34_s28 }
   0x4   :  { %s4917_s10 = smov 24   ;;  %s4918_s11 = smov [#allocation4]  }
   0x5   :  { %40 = dma.hbm_to_vmem [thread:$0]  %s33_s26, 1536, %s35_s28, [#allocation8], %s4916_s9, %s4916_s9, %s4917_s10  }
   0x6   :  { %s21_s12 = sshll.u32 %s4918_s11, 4  ;;  %s4919_s13 = smov 256   ;;  %s22_s12 = int_to_ptr.vmem [resolvable:$true] %s21_s12 }
   0x7   :  { %s4920_s14 = smov 16   ;;  %s49_s16 = sshll.u32 %s7569_s4, 4  ;;  %s50_s16 = int_to_ptr.hbm [resolvable:$true] %s49_s16 }
   0x8   :  { %27 = dma.hbm_to_vmem [thread:$0]  %s20_s8, 2048, %s22_s12, [#allocation5], %s4919_s13, %s4919_s13, %s4920_s14  }
   0x9   :  { %s4921_s17 = smov [#allocation9]  }
   0xa   :  { %s51_s0 = sshll.u32 %s4921_s17, 4  ;;  %s52_s0 = int_to_ptr.vmem [resolvable:$true] %s51_s0 }
   0xb   :  { %57 = dma.hbm_to_vmem [thread:$0]  %s50_s16, 1536, %s52_s0, [#allocation8], %s4916_s9, %s4916_s9, %s4917_s10  }
   0xc   :  { %4909 = dma.done.wait [#allocation5], 2048  }
   0xd   :  { %4910 = vsyncadd [#allocation5], 4294965248 }
   0xe   :  { %4911 = dma.done.wait [#allocation8], 3072  }
   0xf   :  { %4912 = vsyncadd [#allocation8], 4294964224  ;;  %v7573_v0 = vmov 0.0   ;;  %s4923_s18 = smov 17   ;;  %v4988_v1 = vld [vmem:[#allocation4 + $0x8] sm:$0xff]  ;;  %v4992_v2 = vld [vmem:[#allocation4] sm:$0xff]  ;;  %v82_v54 = vlaneseq }
  0x10   :  { %4322 = vrot.lane.b32.xlu0 %v7573_v0, %s4923_s18  ;;  %4327 = vrot.lane.b32.xlu2 %v7573_v0, %s4923_s18  ;;  %v4994_v3 = vld [vmem:[#allocation4 + $0x18] sm:$0xff]  ;;  %v5000_v4 = vld [vmem:[#allocation4 + $0x10] sm:$0xff]  ;;  %v5004_v5 = vld [vmem:[#allocation4 + $0x20] sm:$0xff]  ;;  %v4336_v8 = vpack.i.bf16 0.0, %v4988_v1  ;;  %v4331_v10 = vpack.i.bf16 %v4992_v2, %v7573_v0  ;;  %s4924_s4 = smov 15   ;;  %s4925_s19 = smov 1   ;;  %v4401_v29 = vpack.i.bf16 %v4988_v1, %v4992_v2 }
  0x11   :  { %161 = vrot.lane.b32.xlu1 %v4988_v1, %s4923_s18  ;;  %v5006_v6 = vld [vmem:[#allocation4 + $0x30] sm:$0xff]  ;;  %v5012_v7 = vld [vmem:[#allocation4 + $0x28] sm:$0xff]  ;;  %v5017_v9 = vld [vmem:[#allocation4 + $0x38] sm:$0xff]  ;;  %v4341_v11 = vpack.i.bf16 %v4994_v3, %v5000_v4  ;;  %v4346_v13 = vpack.i.bf16 %v5004_v5, %v7573_v0  ;;  %s4926_s20 = smov 127   ;;  %s4927_s21 = smov 113   ;;  %v4406_v33 = vpack.i.bf16 %v5000_v4, %v7573_v0  ;;  %v4411_v36 = vpack.i.bf16 0.0, %v4994_v3 }
  0x12   :  { %v4351_v12 = vpack.i.bf16 0.0, %v5012_v7  ;;  %v4356_v14 = vpack.i.bf16 %v5017_v9, %v5006_v6  ;;  %s4928_s22 = smov 112   ;;  %v4416_v34 = vpack.i.bf16 %v5012_v7, %v5004_v5  ;;  %v4421_v39 = vpack.i.bf16 %v5006_v6, %v7573_v0  ;;  %s4929_s23 = smov 111   ;;  %v5210_v53 = vld [vmem:[#allocation4 + $0x48] sm:$0xff]  ;;  %v5216_v57 = vld [vmem:[#allocation4 + $0x40] sm:$0xff]  ;;  %v5222_v60 = vld [vmem:[#allocation4 + $0x50] sm:$0xff] }
  0x13   :  { %v4426_v41 = vpack.i.bf16 0.0, %v5017_v9  ;;  %v83_v59 = vand.u32 127, %v82_v54  ;;  %vm420_vm2 = vcmask 7168   ;;  %vm339_vm4 = vcmask 121856   ;;  %s4066_s9 = sshll.u32 %s7572_s7, 4  ;;  %s4067_s9 = int_to_ptr.hbm [resolvable:$true] %s4066_s9 }
  0x14   :  { %vm262_vm6 = vcmask 130048   ;;  %vm181_vm7 = vcmask 138240   ;;  %vm679_vm8 = vcmask 916480   ;;  %vm598_vm9 = vcmask 924672  }
  0x15   :  { %v84_v61 = vadd.s32 128, %v83_v59  ;;  %vm517_vm10 = vcmask 1039360   ;;  %vm752_vm11 = vcmask 908288   ;;  %vm1598_vm12 = vcmask 261120  }
  0x18   :  { %159 = vrot.lane.b32.xlu0 %v4992_v2, %s4923_s18  ;;  %167 = vrot.lane.b32.xlu2 %v4994_v3, %s4923_s18 }
  0x19   :  { %165 = vrot.lane.b32.xlu1 %v5000_v4, %s4923_s18 }
  0x20   :  { %171 = vrot.lane.b32.xlu0 %v5004_v5, %s4923_s18  ;;  %177 = vrot.lane.b32.xlu2 %v5006_v6, %s4923_s18 }
  0x21   :  { %173 = vrot.lane.b32.xlu1 %v5012_v7, %s4923_s18 }
  0x28   :  { %179 = vrot.lane.b32.xlu0 %v5017_v9, %s4923_s18  ;;  %4337 = vrot.lane.b32.xlu2 %v4336_v8, %s4920_s14 }
  0x29   :  { %4332 = vrot.lane.b32.xlu1 %v4331_v10, %s4920_s14  ;;  %v89_v10 = vand.u32 15, %v83_v59 }
  0x2b   :  { %vm5238_vm0 = vcmp.ge.s32.totalorder %v89_v10, 1  ;;  %vm5286_vm3 = vcmp.le.s32.totalorder %v89_v10, 14 }
  0x30   :  { %4342 = vrot.lane.b32.xlu0 %v4341_v11, %s4920_s14  ;;  %4352 = vrot.lane.b32.xlu2 %v4351_v12, %s4920_s14  ;;  %v96_v11 = vand.u32 15, %v84_v61  ;;  %v5234_v12 = vld [vmem:[#allocation4 + $0x60] sm:$0xff] }
  0x31   :  { %4347 = vrot.lane.b32.xlu1 %v4346_v13, %s4920_s14  ;;  %v5236_v13 = vld [vmem:[#allocation4 + $0x70] sm:$0xff] }
  0x32   :  { %vm5242_vm1 = vcmp.ge.s32.totalorder %v96_v11, 1  ;;  %vm5295_vm5 = vcmp.le.s32.totalorder %v96_v11, 14 }
  0x38   :  { %4357 = vrot.lane.b32.xlu0 %v4356_v14, %s4920_s14  ;;  %317 = vrot.lane.b32.xlu2 %v4992_v2, %s4924_s4 }
  0x39   :  { %4362 = vrot.lane.b32.xlu1 %v7573_v0, %s4924_s4 }
  0x40   :  { %319 = vrot.lane.b32.xlu0 %v4988_v1, %s4924_s4  ;;  %325 = vrot.lane.b32.xlu2 %v4994_v3, %s4924_s4 }
  0x41   :  { %323 = vrot.lane.b32.xlu1 %v5000_v4, %s4924_s4 }
  0x48   :  { %4367 = vrot.lane.b32.xlu0 %v7573_v0, %s4924_s4  ;;  %331 = vrot.lane.b32.xlu2 %v5012_v7, %s4924_s4 }
  0x49   :  { %329 = vrot.lane.b32.xlu1 %v5004_v5, %s4924_s4 }
  0x50   :  { %335 = vrot.lane.b32.xlu0 %v5006_v6, %s4924_s4  ;;  %4372 = vrot.lane.b32.xlu2 %v7573_v0, %s4925_s19 }
  0x51   :  { %337 = vrot.lane.b32.xlu1 %v5017_v9, %s4924_s4 }
  0x58   :  { %398 = vrot.lane.b32.xlu0 %v4992_v2, %s4925_s19  ;;  %404 = vrot.lane.b32.xlu2 %v5000_v4, %s4925_s19 }
  0x59   :  { %400 = vrot.lane.b32.xlu1 %v4988_v1, %s4925_s19 }
  0x60   :  { %406 = vrot.lane.b32.xlu0 %v4994_v3, %s4925_s19  ;;  %410 = vrot.lane.b32.xlu2 %v5004_v5, %s4925_s19 }
  0x61   :  { %4377 = vrot.lane.b32.xlu1 %v7573_v0, %s4925_s19 }
  0x68   :  { %412 = vrot.lane.b32.xlu0 %v5012_v7, %s4925_s19  ;;  %418 = vrot.lane.b32.xlu2 %v5017_v9, %s4925_s19 }
  0x69   :  { %416 = vrot.lane.b32.xlu1 %v5006_v6, %s4925_s19 }
  0x6a   :  { %v5074_v15 = vpop.permute.xlu2 %4327 }
  0x70   :  { %493 = vrot.lane.b32.xlu0 %v4992_v2, %s4926_s20  ;;  %4382 = vrot.lane.b32.xlu2 %v7573_v0, %s4926_s20 }
  0x71   :  { %495 = vrot.lane.b32.xlu1 %v4988_v1, %s4926_s20 }
  0x72   :  { %v5082_v16 = vpop.permute.xlu2 %167 }
  0x78   :  { %499 = vrot.lane.b32.xlu0 %v5000_v4, %s4926_s20  ;;  %505 = vrot.lane.b32.xlu2 %v5004_v5, %s4926_s20 }
  0x79   :  { %501 = vrot.lane.b32.xlu1 %v4994_v3, %s4926_s20 }
  0x7a   :  { %v5090_v17 = vpop.permute.xlu2 %177 }
  0x80   :  { %507 = vrot.lane.b32.xlu0 %v5012_v7, %s4926_s20  ;;  %511 = vrot.lane.b32.xlu2 %v5006_v6, %s4926_s20 }
  0x81   :  { %4387 = vrot.lane.b32.xlu1 %v7573_v0, %s4926_s20 }
  0x82   :  { %v5098_v18 = vpop.permute.xlu0 %4322  ;;  %v5100_v19 = vpop.permute.xlu2 %4337 }
  0x83   :  { %v5104_v20 = vpop.permute.xlu1 %161 }
  0x88   :  { %513 = vrot.lane.b32.xlu0 %v5017_v9, %s4926_s20  ;;  %576 = vrot.lane.b32.xlu2 %v4988_v1, %s4927_s21 }
  0x89   :  { %574 = vrot.lane.b32.xlu1 %v4992_v2, %s4927_s21 }
  0x8a   :  { %v5110_v21 = vpop.permute.xlu0 %159  ;;  %v5112_v22 = vpop.permute.xlu2 %4352 }
  0x8b   :  { %v5116_v23 = vpop.permute.xlu1 %165 }
  0x90   :  { %4392 = vrot.lane.b32.xlu0 %v7573_v0, %s4927_s21  ;;  %582 = vrot.lane.b32.xlu2 %v4994_v3, %s4927_s21 }
  0x91   :  { %580 = vrot.lane.b32.xlu1 %v5000_v4, %s4927_s21 }
  0x92   :  { %v5122_v24 = vpop.permute.xlu0 %171  ;;  %v5124_v25 = vpop.permute.xlu2 %317 }
  0x93   :  { %v5128_v26 = vpop.permute.xlu1 %173 }
  0x98   :  { %586 = vrot.lane.b32.xlu0 %v5004_v5, %s4927_s21  ;;  %4397 = vrot.lane.b32.xlu2 %v7573_v0, %s4927_s21 }
  0x99   :  { %588 = vrot.lane.b32.xlu1 %v5012_v7, %s4927_s21 }
  0x9a   :  { %v5134_v27 = vpop.permute.xlu0 %179  ;;  %v5136_v28 = vpop.permute.xlu2 %325 }
  0x9b   :  { %v5142_v30 = vpop.permute.xlu1 %4332 }
  0xa0   :  { %592 = vrot.lane.b32.xlu0 %v5006_v6, %s4927_s21  ;;  %4402 = vrot.lane.b32.xlu2 %v4401_v29, %s4928_s22 }
  0xa1   :  { %594 = vrot.lane.b32.xlu1 %v5017_v9, %s4927_s21 }
  0xa2   :  { %v5147_v31 = vpop.permute.xlu0 %4342  ;;  %v5149_v32 = vpop.permute.xlu2 %331 }
  0xa3   :  { %v5157_v35 = vpop.permute.xlu1 %4347 }
  0xa8   :  { %4407 = vrot.lane.b32.xlu0 %v4406_v33, %s4928_s22  ;;  %4417 = vrot.lane.b32.xlu2 %v4416_v34, %s4928_s22 }
  0xa9   :  { %4412 = vrot.lane.b32.xlu1 %v4411_v36, %s4928_s22 }
  0xaa   :  { %v5162_v37 = vpop.permute.xlu0 %4357  ;;  %v5164_v38 = vpop.permute.xlu2 %4372 }
  0xab   :  { %v5169_v40 = vpop.permute.xlu1 %4362 }
  0xac   :  { %v4365_v11 = vunpack.i.h.bf16 %v5169_v40 }
  0xb0   :  { %4422 = vrot.lane.b32.xlu0 %v4421_v39, %s4928_s22  ;;  %728 = vrot.lane.b32.xlu2 %v4992_v2, %s4929_s23  ;;  %v4375_v39 = vunpack.i.h.bf16 %v5164_v38 }
  0xb1   :  { %4427 = vrot.lane.b32.xlu1 %v4426_v41, %s4928_s22 }
  0xb2   :  { %v5175_v42 = vpop.permute.xlu0 %319  ;;  %v5177_v43 = vpop.permute.xlu2 %404 }
  0xb3   :  { %v5180_v44 = vpop.permute.xlu1 %323 }
  0xb8   :  { %730 = vrot.lane.b32.xlu0 %v4988_v1, %s4929_s23  ;;  %734 = vrot.lane.b32.xlu2 %v5000_v4, %s4929_s23  ;;  %v5228_v1 = vld [vmem:[#allocation4 + $0x58] sm:$0xff] }
  0xb9   :  { %4432 = vrot.lane.b32.xlu1 %v7573_v0, %s4929_s23 }
  0xba   :  { %v5186_v45 = vpop.permute.xlu0 %4367  ;;  %v411_v46 = vpop.permute.xlu2 %410 }
  0xbb   :  { %v5190_v47 = vpop.permute.xlu1 %329 }
  0xc0   :  { %736 = vrot.lane.b32.xlu0 %v4994_v3, %s4929_s23  ;;  %742 = vrot.lane.b32.xlu2 %v5012_v7, %s4929_s23 }
  0xc1   :  { %740 = vrot.lane.b32.xlu1 %v5004_v5, %s4929_s23 }
  0xc2   :  { %v5196_v48 = vpop.permute.xlu0 %335  ;;  %v419_v49 = vpop.permute.xlu2 %418 }
  0xc3   :  { %v5200_v50 = vpop.permute.xlu1 %337 }
  0xc8   :  { %4437 = vrot.lane.b32.xlu0 %v7573_v0, %s4929_s23  ;;  %748 = vrot.lane.b32.xlu2 %v5017_v9, %s4929_s23 }
  0xc9   :  { %746 = vrot.lane.b32.xlu1 %v5006_v6, %s4929_s23 }
  0xca   :  { %v399_v51 = vpop.permute.xlu0 %398  ;;  %v5206_v52 = vpop.permute.xlu2 %4382 }
  0xcb   :  { %v401_v55 = vpop.permute.xlu1 %400 }
  0xd0   :  { %4442 = vrot.lane.b32.xlu0 %v7573_v0, %s4923_s18  ;;  %830 = vrot.lane.b32.xlu2 %v5210_v53, %s4923_s18 }
  0xd1   :  { %828 = vrot.lane.b32.xlu1 %v5216_v57, %s4923_s18 }
  0xd2   :  { %v407_v56 = vpop.permute.xlu0 %406  ;;  %v5218_v58 = vpop.permute.xlu2 %505 }
  0xd3   :  { %v4378_v62 = vpop.permute.xlu1 %4377 }
  0xd4   :  { %v4380_v14 = vunpack.i.h.bf16 %v4378_v62  ;;  %v4379_v29 = vunpack.i.l.bf16 %v4378_v62 }
  0xd6   :  { %v425_v61 = vsel %vm420_vm2, %v4379_v29, %v411_v46  ;;  %v4456_v29 = vpack.i.bf16 0.0, %v5210_v53 }
  0xd8   :  { %834 = vrot.lane.b32.xlu0 %v5222_v60, %s4923_s18  ;;  %4447 = vrot.lane.b32.xlu2 %v7573_v0, %s4923_s18  ;;  %v5261_v0 = vld [vmem:[#allocation4 + $0x68] sm:$0xff] }
  0xd9   :  { %836 = vrot.lane.b32.xlu1 %v5228_v1, %s4923_s18 }
  0xda   :  { %v413_v63 = vpop.permute.xlu0 %412  ;;  %v5230_v8 = vpop.permute.xlu2 %511 }
  0xdb   :  { %v417_v36 = vpop.permute.xlu1 %416  ;;  %v426_v62 = vsel %vm420_vm2, %v411_v46, %v413_v63  ;;  %v424_v46 = vsel %vm420_vm2, %v5177_v43, %v407_v56  ;;  %v5279_v63 = vld [vmem:[#allocation4 + $0x78] sm:$0xff] }
  0xdc   :  { %v427_v41 = vsel %vm420_vm2, %v4380_v14, %v417_v36  ;;  %v428_v54 = vsel %vm420_vm2, %v417_v36, %v419_v49  ;;  %v4374_v49 = vunpack.i.l.bf16 %v5164_v38  ;;  %v4370_v36 = vunpack.i.h.bf16 %v5186_v45 }
  0xdd   :  { %4112 = vmatpush.msk.msra.mxu0 %vm5238_vm0, %v427_v41  ;;  %4136 = vmatpush.msk.msra.mxu3 %vm5242_vm1, %v428_v54  ;;  %v423_v41 = vsel %vm420_vm2, %v4375_v39, %v5177_v43  ;;  %v4369_v38 = vunpack.i.l.bf16 %v5186_v45  ;;  %v422_v43 = vsel %vm420_vm2, %v399_v51, %v401_v55  ;;  %v7618_v55 = vmov 0.0  }
  0xde   :  { %v421_v39 = vsel %vm420_vm2, %v4374_v49, %v399_v51  ;;  %v346_v45 = vsel %vm339_vm4, %v4370_v36, %v5196_v48  ;;  %v347_v51 = vsel %vm339_vm4, %v5196_v48, %v5200_v50  ;;  %v4451_v10 = vpack.i.bf16 %v5216_v57, %v7618_v55 }
  0xdf   :  { %4113 = vmatpush.msk.msra.mxu0 %vm5238_vm0, %v425_v61  ;;  %4137 = vmatpush.msk.msra.mxu3 %vm5242_vm1, %v426_v62  ;;  %v4364_v62 = vunpack.i.l.bf16 %v5169_v40  ;;  %v344_v36 = vsel %vm339_vm4, %v4369_v38, %v5190_v47  ;;  %v345_v48 = vsel %vm339_vm4, %v5190_v47, %v5149_v32  ;;  %v4359_v50 = vunpack.i.l.bf16 %v5162_v37 }
  0xe0   :  { %840 = vrot.lane.b32.xlu0 %v5234_v12, %s4923_s18  ;;  %846 = vrot.lane.b32.xlu2 %v5236_v13, %s4923_s18  ;;  %v342_v40 = vsel %vm339_vm4, %v4365_v11, %v5180_v44  ;;  %v343_v32 = vsel %vm339_vm4, %v5180_v44, %v5136_v28  ;;  %v4471_v47 = vpack.i.bf16 0.0, %v5261_v0  ;;  %v4355_v38 = vunpack.i.h.bf16 %v5112_v22 }
  0xe1   :  { %842 = vrot.lane.b32.xlu1 %v5261_v0, %s4923_s18  ;;  %4114 = vmatpush.msk.msra.mxu0 %vm5238_vm0, %v423_v41  ;;  %v341_v28 = vsel %vm339_vm4, %v5124_v25, %v5175_v42  ;;  %v4344_v44 = vunpack.i.l.bf16 %v5147_v31  ;;  %v4340_v42 = vunpack.i.h.bf16 %v5100_v19 }
  0xe2   :  { %v5257_v59 = vpop.permute.xlu0 %493  ;;  %v5263_v14 = vpop.permute.xlu2 %576  ;;  %4138 = vmatpush.msk.msra.mxu3 %vm5242_vm1, %v424_v46  ;;  %v4461_v46 = vpack.i.bf16 %v5228_v1, %v5222_v60 }
  0xe3   :  { %v5290_v61 = vpop.permute.xlu1 %495  ;;  %4115 = vmatpush.msk.msra.mxu0 %vm5238_vm0, %v421_v39  ;;  %v4350_v39 = vunpack.i.h.bf16 %v5157_v35 }
  0xe4   :  { %4139 = vmatpush.msk.msra.mxu3 %vm5242_vm1, %v422_v43  ;;  %v4349_v43 = vunpack.i.l.bf16 %v5157_v35  ;;  %v269_v35 = vsel %vm262_vm6, %v4355_v38, %v4359_v50 }
  0xe5   :  { %4116 = vmatpush.msk.msra.mxu0 %vm5286_vm3, %v346_v45 }
  0xe6   :  { %4140 = vmatpush.msk.msra.mxu3 %vm5295_vm5, %v347_v51  ;;  %v4354_v51 = vunpack.i.l.bf16 %v5112_v22  ;;  %v267_v22 = vsel %vm262_vm6, %v4349_v43, %v4350_v39  ;;  %v4329_v43 = vunpack.i.l.bf16 %v5074_v15 }
  0xe7   :  { %4117 = vmatpush.msk.msra.mxu0 %vm5286_vm3, %v344_v36  ;;  %v4334_v36 = vunpack.i.l.bf16 %v5142_v30 }
  0xe8   :  { %848 = vrot.lane.b32.xlu0 %v5279_v63, %s4923_s18  ;;  %4457 = vrot.lane.b32.xlu2 %v4456_v29, %s4920_s14  ;;  %v4360_v29 = vunpack.i.h.bf16 %v5162_v37  ;;  %v340_v37 = vsel %vm339_vm4, %v4364_v62, %v5124_v25  ;;  %v4466_v25 = vpack.i.bf16 %v5234_v12, %v7618_v55  ;;  %v4335_v62 = vunpack.i.h.bf16 %v5142_v30 }
  0xe9   :  { %4141 = vmatpush.msk.msra.mxu3 %vm5295_vm5, %v345_v48  ;;  %4452 = vrot.lane.b32.xlu1 %v4451_v10, %s4920_s14  ;;  %v4345_v10 = vunpack.i.h.bf16 %v5147_v31  ;;  %v4339_v30 = vunpack.i.l.bf16 %v5100_v19 }
  0xea   :  { %v5317_v49 = vpop.permute.xlu0 %499  ;;  %v5321_v41 = vpop.permute.xlu2 %582  ;;  %4118 = vmatpush.msk.msra.mxu0 %vm5286_vm3, %v342_v40  ;;  %v270_v11 = vsel %vm262_vm6, %v4359_v50, %v4360_v29  ;;  %v268_v50 = vsel %vm262_vm6, %v4350_v39, %v4354_v51  ;;  %v4330_v40 = vunpack.i.h.bf16 %v5074_v15  ;;  %v4476_v29 = vpack.i.bf16 %v5279_v63, %v5236_v13 }
  0xeb   :  { %4142 = vmatpush.msk.msra.mxu3 %vm5295_vm5, %v343_v32  ;;  %v5350_v45 = vpop.permute.xlu1 %501  ;;  %v266_v32 = vsel %vm262_vm6, %v4344_v44, %v4345_v10  ;;  %v264_v39 = vsel %vm262_vm6, %v4335_v62, %v4339_v30  ;;  %v4324_v15 = vunpack.i.l.bf16 %v5098_v18  ;;  %v183_v10 = vsel %vm181_vm7, %v5110_v21, %v5104_v20 }
  0xec   :  { %4119 = vmatpush.msk.msra.mxu0 %vm5286_vm3, %v340_v37  ;;  %v188_v19 = vsel %vm181_vm7, %v4330_v40, %v5090_v17  ;;  %v189_v37 = vsel %vm181_vm7, %v5090_v17, %v5134_v27  ;;  %v187_v17 = vsel %vm181_vm7, %v5122_v24, %v5128_v26  ;;  %v185_v27 = vsel %vm181_vm7, %v5116_v23, %v5082_v16 }
  0xed   :  { %4143 = vmatpush.msk.msra.mxu3 %vm5295_vm5, %v341_v28  ;;  %v4325_v28 = vunpack.i.h.bf16 %v5098_v18 }
  0xee   :  { %1619 = vmatpush.msra.mxu0 %v269_v35  ;;  %v186_v35 = vsel %vm181_vm7, %v4329_v43, %v5122_v24  ;;  %v182_v24 = vsel %vm181_vm7, %v4324_v15, %v5110_v21 }
  0xef   :  { %1706 = vmatpush.msra.mxu3 %v270_v11  ;;  %v184_v18 = vsel %vm181_vm7, %v4325_v28, %v5116_v23 }
  0xf0   :  { %4462 = vrot.lane.b32.xlu0 %v4461_v46, %s4920_s14  ;;  %4472 = vrot.lane.b32.xlu2 %v4471_v47, %s4920_s14  ;;  %v265_v46 = vsel %vm262_vm6, %v4340_v42, %v4344_v44  ;;  %v263_v47 = vsel %vm262_vm6, %v4334_v36, %v4335_v62 }
  0xf1   :  { %1620 = vmatpush.msra.mxu0 %v267_v22  ;;  %1707 = vmatpush.msra.mxu3 %v268_v50 }
  0xf2   :  { %v5371_v48 = vpop.permute.xlu0 %507  ;;  %v5374_v31 = vpop.permute.xlu2 %4397  ;;  %4467 = vrot.lane.b32.xlu1 %v4466_v25, %s4920_s14 }
  0xf3   :  { %1621 = vmatpush.msra.mxu0 %v265_v46  ;;  %1708 = vmatpush.msra.mxu3 %v266_v32  ;;  %v5385_v38 = vpop.permute.xlu1 %4387 }
  0xf5   :  { %1622 = vmatpush.msra.mxu0 %v263_v47  ;;  %1709 = vmatpush.msra.mxu3 %v264_v39 }
  0xf7   :  { %4120 = vmatpush.msk.msra.mxu0 %vm5238_vm0, %v188_v19  ;;  %4144 = vmatpush.msk.msra.mxu3 %vm5242_vm1, %v189_v37 }
  0xf8   :  { %4477 = vrot.lane.b32.xlu0 %v4476_v29, %s4920_s14  ;;  %980 = vrot.lane.b32.xlu2 %v5216_v57, %s4924_s4 }
  0xf9   :  { %4121 = vmatpush.msk.msra.mxu0 %vm5238_vm0, %v186_v35  ;;  %4145 = vmatpush.msk.msra.mxu3 %vm5242_vm1, %v187_v17 }
  0xfa   :  { %v5403_v44 = vpop.permute.xlu0 %513  ;;  %v5407_v51 = vpop.permute.xlu2 %4402  ;;  %4482 = vrot.lane.b32.xlu1 %v7618_v55, %s4924_s4 }
  0xfb   :  { %4122 = vmatpush.msk.msra.mxu0 %vm5238_vm0, %v184_v18  ;;  %4146 = vmatpush.msk.msra.mxu3 %vm5242_vm1, %v185_v27  ;;  %v5429_v26 = vpop.permute.xlu1 %574  ;;  %v7575_v17 = vunpack.i.h.bf16 %v5407_v51  ;;  %v4404_v18 = vunpack.i.l.bf16 %v5407_v51 }
  0xfd   :  { %4123 = vmatpush.msk.msra.mxu0 %vm5238_vm0, %v182_v24  ;;  %4147 = vmatpush.msk.msra.mxu3 %vm5242_vm1, %v183_v10 }
 0x100   :  { %982 = vrot.lane.b32.xlu0 %v5210_v53, %s4924_s4  ;;  %988 = vrot.lane.b32.xlu2 %v5228_v1, %s4924_s4 }
 0x102   :  { %v5442_v16 = vpop.permute.xlu0 %4392  ;;  %v5444_v23 = vpop.permute.xlu2 %4417  ;;  %986 = vrot.lane.b32.xlu1 %v5222_v60, %s4924_s4 }
 0x103   :  { %v581_v11 = vpop.permute.xlu1 %580  ;;  %v4420_v47 = vunpack.i.h.bf16 %v5444_v23  ;;  %v4419_v39 = vunpack.i.l.bf16 %v5444_v23  ;;  %v5668_v23 = vld [vmem:[#allocation7 + $0x28] sm:$0xff] }
 0x105   :  { %v684_v27 = vsel %vm679_vm8, %v4419_v39, %v4420_v47 }
 0x108   :  { %4487 = vrot.lane.b32.xlu0 %v7618_v55, %s4924_s4  ;;  %994 = vrot.lane.b32.xlu2 %v5261_v0, %s4924_s4 }
 0x10a   :  { %v587_v20 = vpop.permute.xlu0 %586  ;;  %v5452_v21 = vpop.permute.xlu2 %728  ;;  %992 = vrot.lane.b32.xlu1 %v5234_v12, %s4924_s4 }
 0x10b   :  { %v5456_v25 = vpop.permute.xlu1 %588 }
 0x110   :  { %998 = vrot.lane.b32.xlu0 %v5236_v13, %s4924_s4  ;;  %4492 = vrot.lane.b32.xlu2 %v7618_v55, %s4925_s19 }
 0x112   :  { %v593_v42 = vpop.permute.xlu0 %592  ;;  %v5462_v62 = vpop.permute.xlu2 %734  ;;  %1000 = vrot.lane.b32.xlu1 %v5279_v63, %s4924_s4 }
 0x113   :  { %v5466_v36 = vpop.permute.xlu1 %594 }
 0x118   :  { %1060 = vrot.lane.b32.xlu0 %v5216_v57, %s4925_s19  ;;  %1066 = vrot.lane.b32.xlu2 %v5222_v60, %s4925_s19 }
 0x11a   :  { %v5472_v22 = vpop.permute.xlu0 %4407  ;;  %v5474_v50 = vpop.permute.xlu2 %742  ;;  %1062 = vrot.lane.b32.xlu1 %v5210_v53, %s4925_s19 }
 0x11b   :  { %v5478_v40 = vpop.permute.xlu1 %4412  ;;  %v4410_v19 = vunpack.i.h.bf16 %v5472_v22 }
 0x11c   :  { %v7576_v37 = vunpack.i.l.bf16 %v5478_v40 }
 0x11e   :  { %v682_v24 = vsel %vm679_vm8, %v4410_v19, %v7576_v37  ;;  %v605_v19 = vsel %vm598_vm9, %v593_v42, %v5466_v36  ;;  %v601_v42 = vsel %vm598_vm9, %v581_v11, %v5321_v41 }
 0x120   :  { %1068 = vrot.lane.b32.xlu0 %v5228_v1, %s4925_s19  ;;  %1072 = vrot.lane.b32.xlu2 %v5234_v12, %s4925_s19 }
 0x122   :  { %v5484_v46 = vpop.permute.xlu0 %4422  ;;  %v5486_v29 = vpop.permute.xlu2 %748  ;;  %4497 = vrot.lane.b32.xlu1 %v7618_v55, %s4925_s19 }
 0x123   :  { %v4425_v30 = vunpack.i.h.bf16 %v5484_v46  ;;  %v5491_v32 = vpop.permute.xlu1 %4427 }
 0x124   :  { %v4429_v43 = vunpack.i.l.bf16 %v5491_v32 }
 0x126   :  { %v686_v15 = vsel %vm679_vm8, %v4425_v30, %v4429_v43  ;;  %v680_v30 = vsel %vm679_vm8, %v4404_v18, %v7575_v17  ;;  %v603_v18 = vsel %vm598_vm9, %v587_v20, %v5456_v25  ;;  %v599_v20 = vsel %vm598_vm9, %v5429_v26, %v5263_v14 }
 0x127   :  { %1640 = vmatpush.msra.mxu1 %v686_v15  ;;  %v5524_v15 = vld [vmem:[#allocation7] sm:$0xff] }
 0x128   :  { %1074 = vrot.lane.b32.xlu0 %v5261_v0, %s4925_s19  ;;  %1080 = vrot.lane.b32.xlu2 %v5279_v63, %s4925_s19 }
 0x129   :  { %1641 = vmatpush.msra.mxu1 %v684_v27  ;;  %1627 = vmatmul.f32.vlgmr.msra.gmra.mxu0 %v5524_v15 }
 0x12a   :  { %v5502_v28 = vpop.permute.xlu0 %730  ;;  %v5507_v35 = vpop.permute.xlu2 %830  ;;  %1078 = vrot.lane.b32.xlu1 %v5236_v13, %s4925_s19  ;;  %1714 = vmatmul.f32.vlgmr.msra.gmra.mxu3 %v5524_v15 }
 0x12b   :  { %v4433_v10 = vpop.permute.xlu1 %4432  ;;  %1642 = vmatpush.msra.mxu1 %v682_v24 }
 0x12c   :  { %v4435_v17 = vunpack.i.h.bf16 %v4433_v10 }
 0x12d   :  { %1643 = vmatpush.msra.mxu1 %v680_v30  ;;  %v5551_v30 = vld [vmem:[#allocation7 + $0x18] sm:$0xff] }
 0x12f   :  { %4124 = vmatpush.msk.msra.mxu1 %vm5238_vm0, %v605_v19  ;;  %v524_v19 = vsel %vm517_vm10, %v5230_v8, %v5403_v44 }
 0x130   :  { %1154 = vrot.lane.b32.xlu0 %v5216_v57, %s4926_s20  ;;  %4502 = vrot.lane.b32.xlu2 %v7618_v55, %s4926_s20 }
 0x131   :  { %4125 = vmatpush.msk.msra.mxu1 %vm5238_vm0, %v603_v18  ;;  %1630 = vmatmul.f32.gmra.mxu0 %v5551_v30 }
 0x132   :  { %v737_v39 = vpop.permute.xlu0 %736  ;;  %v5530_v27 = vpop.permute.xlu2 %4447  ;;  %1156 = vrot.lane.b32.xlu1 %v5210_v53, %s4926_s20  ;;  %1717 = vmatmul.f32.gmra.mxu3 %v5551_v30 }
 0x133   :  { %v741_v24 = vpop.permute.xlu1 %740  ;;  %4126 = vmatpush.msk.msra.mxu1 %vm5238_vm0, %v601_v42 }
 0x135   :  { %4127 = vmatpush.msk.msra.mxu1 %vm5238_vm0, %v599_v20  ;;  %v522_v20 = vsel %vm517_vm10, %v5218_v58, %v5371_v48 }
 0x137   :  { %4128 = vmatpush.msk.msra.mxu1 %vm5286_vm3, %v524_v19  ;;  %v4434_v19 = vunpack.i.l.bf16 %v4433_v10  ;;  %v756_v10 = vsel %vm752_vm11, %v737_v39, %v4435_v17  ;;  %v5613_v17 = vld [vmem:[#allocation7 + $0x30] sm:$0xff] }
 0x138   :  { %1160 = vrot.lane.b32.xlu0 %v5222_v60, %s4926_s20  ;;  %1166 = vrot.lane.b32.xlu2 %v5234_v12, %s4926_s20 }
 0x139   :  { %4129 = vmatpush.msk.msra.mxu1 %vm5286_vm3, %v522_v20  ;;  %v4430_v20 = vunpack.i.h.bf16 %v5491_v32  ;;  %1633 = vmatmul.f32.gmra.mxu0 %v5613_v17 }
 0x13a   :  { %v4438_v11 = vpop.permute.xlu0 %4437  ;;  %v5560_v18 = vpop.permute.xlu2 %846  ;;  %1162 = vrot.lane.b32.xlu1 %v5228_v1, %s4926_s20  ;;  %1720 = vmatmul.f32.gmra.mxu3 %v5613_v17 }
 0x13b   :  { %v4440_v26 = vunpack.i.h.bf16 %v4438_v11  ;;  %v4439_v42 = vunpack.i.l.bf16 %v4438_v11  ;;  %v520_v11 = vsel %vm517_vm10, %v5317_v49, %v5350_v45  ;;  %v747_v58 = vpop.permute.xlu1 %746 }
 0x13c   :  { %4130 = vmatpush.msk.msra.mxu1 %vm5286_vm3, %v520_v11  ;;  %v759_v49 = vsel %vm752_vm11, %v747_v58, %v5486_v29  ;;  %v4399_v58 = vunpack.i.l.bf16 %v5374_v31 }
 0x13d   :  { %v760_v8 = vsel %vm752_vm11, %v5486_v29, %v4440_v26  ;;  %v758_v37 = vsel %vm752_vm11, %v5474_v50, %v4439_v42  ;;  %v518_v26 = vsel %vm517_vm10, %v5257_v59, %v5290_v61  ;;  %4132 = vmatpush.msk.msra.mxu2 %vm5286_vm3, %v759_v49  ;;  %v754_v59 = vsel %vm752_vm11, %v5502_v28, %v4434_v19  ;;  %v5687_v49 = vld [vmem:[#allocation7 + $0x20] sm:$0xff] }
 0x13e   :  { %4156 = vmatpush.msk.msrb.mxu0 %vm5295_vm5, %v760_v8  ;;  %4131 = vmatpush.msk.msra.mxu1 %vm5286_vm3, %v518_v26  ;;  %v753_v8 = vsel %vm752_vm11, %v5452_v21, %v5502_v28  ;;  %v687_v21 = vsel %vm679_vm8, %v4429_v43, %v4430_v20  ;;  %v5659_v43 = vld [vmem:[#allocation7 + $0x48] sm:$0xff]  ;;  %v4395_v26 = vunpack.i.h.bf16 %v5442_v16 }
 0x140   :  { %1168 = vrot.lane.b32.xlu0 %v5261_v0, %s4926_s20  ;;  %4157 = vmatpush.msk.msrb.mxu0 %vm5295_vm5, %v758_v37  ;;  %v757_v37 = vsel %vm752_vm11, %v741_v24, %v5474_v50  ;;  %v755_v50 = vsel %vm752_vm11, %v5462_v62, %v737_v39  ;;  %v5625_v24 = vld [vmem:[#allocation7 + $0x10] sm:$0xff]  ;;  %v4415_v39 = vunpack.i.h.bf16 %v5478_v40  ;;  %v602_v20 = vsel %vm598_vm9, %v5321_v41, %v4395_v26 }
 0x141   :  { %1172 = vrot.lane.b32.xlu2 %v5236_v13, %s4926_s20  ;;  %4133 = vmatpush.msk.msra.mxu2 %vm5286_vm3, %v757_v37  ;;  %v4541_v26 = vpack.i.bf16 %v5236_v13, %v7618_v55 }
 0x142   :  { %v5598_v42 = vpop.permute.xlu0 %4442  ;;  %4158 = vmatpush.msk.msrb.mxu0 %vm5295_vm5, %v756_v10  ;;  %v5610_v29 = vpop.permute.xlu2 %4457  ;;  %1652 = vmatpush.msra.mxu1 %v5006_v6  ;;  %v4424_v6 = vunpack.i.l.bf16 %v5484_v46  ;;  %v4409_v46 = vunpack.i.l.bf16 %v5472_v22  ;;  %v4394_v10 = vunpack.i.l.bf16 %v5442_v16  ;;  %v5708_v16 = vld [vmem:[#allocation7 + $0x40] sm:$0xff] }
 0x143   :  { %4507 = vrot.lane.b32.xlu1 %v7618_v55, %s4926_s20  ;;  %4134 = vmatpush.msk.msra.mxu2 %vm5286_vm3, %v755_v50  ;;  %v5633_v62 = vpop.permute.xlu1 %828 }
 0x144   :  { %4159 = vmatpush.msk.msrb.mxu0 %vm5295_vm5, %v754_v59  ;;  %1653 = vmatpush.msra.mxu1 %v5004_v5  ;;  %v5646_v5 = vld [vmem:[#allocation7 + $0x8] sm:$0xff]  ;;  %v685_v11 = vsel %vm679_vm8, %v4420_v47, %v4424_v6  ;;  %v4400_v47 = vunpack.i.h.bf16 %v5374_v31  ;;  %v604_v31 = vsel %vm598_vm9, %v5456_v25, %v4399_v58  ;;  %v4389_v25 = vunpack.i.l.bf16 %v5385_v38 }
 0x145   :  { %4135 = vmatpush.msk.msra.mxu2 %vm5286_vm3, %v753_v8  ;;  %1723 = vmatmul.f32.gmra.mxu3 %v5659_v43  ;;  %v600_v50 = vsel %vm598_vm9, %v5263_v14, %v4394_v10  ;;  %v5727_v14 = vld [vmem:[#allocation7 + $0x38] sm:$0xff]  ;;  %v4385_v6 = vunpack.i.h.bf16 %v5206_v52 }
 0x146   :  { %4080 = vmatmul.msk.f32.vlgmr.msra.gmra.mxu2 %vm1598_vm12, %v5625_v24  ;;  %1654 = vmatpush.msra.mxu1 %v5000_v4  ;;  %v7619_v4 = vunpack.i.l.bf16 %v5478_v40 }
 0x147   :  { %1727 = vmatpush.msrb.mxu2 %v687_v21  ;;  %1636 = vmatmul.f32.gmra.mxu0 %v5659_v43 }
 0x148   :  { %1174 = vrot.lane.b32.xlu0 %v5279_v63, %s4926_s20  ;;  %1655 = vmatpush.msra.mxu1 %v4992_v2  ;;  %v683_v22 = vsel %vm679_vm8, %v7619_v4, %v4415_v39  ;;  %v7620_v2 = vunpack.i.h.bf16 %v5407_v51  ;;  %v606_v51 = vsel %vm598_vm9, %v5466_v36, %v4400_v47  ;;  %v4390_v36 = vunpack.i.h.bf16 %v5385_v38 }
 0x149   :  { %1236 = vrot.lane.b32.xlu2 %v5210_v53, %s4927_s21  ;;  %1728 = vmatpush.msrb.mxu2 %v685_v11  ;;  %v523_v39 = vsel %vm517_vm10, %v5371_v48, %v4389_v25  ;;  %v5748_v48 = vld [vmem:[#allocation7 + $0x58] sm:$0xff]  ;;  %v4521_v4 = vpack.i.bf16 %v5210_v53, %v5216_v57  ;;  %v4526_v47 = vpack.i.bf16 %v5222_v60, %v7618_v55 }
 0x14a   :  { %v5649_v28 = vpop.permute.xlu0 %834  ;;  %v5656_v32 = vpop.permute.xlu2 %4472  ;;  %1656 = vmatmul.f32.vlgmr.msra.gmra.mxu1 %v5646_v5  ;;  %v681_v19 = vsel %vm679_vm8, %v7620_v2, %v4409_v46  ;;  %v525_v38 = vsel %vm517_vm10, %v5403_v44, %v4390_v36  ;;  %v4384_v44 = vunpack.i.l.bf16 %v5206_v52  ;;  %v521_v46 = vsel %vm517_vm10, %v5350_v45, %v4385_v6 }
 0x14b   :  { %1729 = vmatpush.msrb.mxu2 %v683_v22  ;;  %1234 = vrot.lane.b32.xlu1 %v5216_v57, %s4927_s21  ;;  %v5675_v40 = vpop.permute.xlu1 %836 }
 0x14c   :  { %v519_v11 = vsel %vm517_vm10, %v5290_v61, %v4384_v44  ;;  %v5765_v61 = vld [vmem:[#allocation7 + $0x50] sm:$0xff] }
 0x14d   :  { %1730 = vmatpush.msrb.mxu2 %v681_v19  ;;  %7621 = vst [vmem:[#allocation14_spill] sm:$0xff] %v5765_v61  ;;  %v4531_v19 = vpack.i.bf16 0.0, %v5228_v1 }
 0x14e   :  { %4081 = vmatmul.msk.f32.gmra.mxu2 %vm1598_vm12, %v5668_v23 }
 0x14f   :  { %4148 = vmatpush.msk.msrb.mxu2 %vm5242_vm1, %v606_v51  ;;  %4084 = vmatmul.msk.f32.vlgmr.msrb.gmra.mxu0 %vm1598_vm12, %v5625_v24  ;;  %v4930_v51 = vmov 0  }
 0x150   :  { %4512 = vrot.lane.b32.xlu0 %v7618_v55, %s4927_s21  ;;  %4563 = vset.pattern.permute.xlu2 %v4930_v51 }
 0x151   :  { %1242 = vrot.lane.b32.xlu2 %v5228_v1, %s4927_s21  ;;  %4149 = vmatpush.msk.msrb.mxu2 %vm5242_vm1, %v604_v31  ;;  %v4546_v31 = vpack.i.bf16 0.0, %v5279_v63 }
 0x152   :  { %v5690_v37 = vpop.permute.xlu0 %840  ;;  %v5698_v59 = vpop.permute.xlu2 %980  ;;  %1659 = vmatmul.f32.gmra.mxu1 %v5687_v49  ;;  %4561 = vset.pattern.permute.xlu0 %v4930_v51 }
 0x153   :  { %4150 = vmatpush.msk.msrb.mxu2 %vm5242_vm1, %v602_v20  ;;  %1240 = vrot.lane.b32.xlu1 %v5222_v60, %s4927_s21  ;;  %v5717_v41 = vpop.permute.xlu1 %842 }
 0x154   :  { %4562 = vset.pattern.permute.xlu1 %v4930_v51 }
 0x155   :  { %4151 = vmatpush.msk.msrb.mxu2 %vm5242_vm1, %v600_v50 }
 0x156   :  { %4082 = vmatmul.msk.f32.gmra.mxu2 %vm1598_vm12, %v5708_v16 }
 0x157   :  { %4152 = vmatpush.msk.msrb.mxu2 %vm5295_vm5, %v525_v38  ;;  %4085 = vmatmul.msk.f32.gmra.mxu0 %vm1598_vm12, %v5668_v23 }
 0x158   :  { %1246 = vrot.lane.b32.xlu0 %v5234_v12, %s4927_s21 }
 0x159   :  { %4517 = vrot.lane.b32.xlu2 %v7618_v55, %s4927_s21  ;;  %4153 = vmatpush.msk.msrb.mxu2 %vm5295_vm5, %v523_v39 }
 0x15a   :  { %v5730_v8 = vpop.permute.xlu0 %848  ;;  %v5738_v21 = vpop.permute.xlu2 %988  ;;  %1662 = vmatmul.f32.gmra.mxu1 %v5727_v14 }
 0x15b   :  { %4154 = vmatpush.msk.msrb.mxu2 %vm5295_vm5, %v521_v46  ;;  %1248 = vrot.lane.b32.xlu1 %v5261_v0, %s4927_s21  ;;  %v5758_v52 = vpop.permute.xlu1 %4452 }
 0x15d   :  { %4155 = vmatpush.msk.msrb.mxu2 %vm5295_vm5, %v519_v11 }
 0x15e   :  { %4083 = vmatmul.msk.f32.gmra.mxu2 %vm1598_vm12, %v5748_v48 }
 0x15f   :  { %1739 = vmatpush.msrb.mxu2 %v5017_v9  ;;  %v4536_v9 = vpack.i.bf16 %v5261_v0, %v5234_v12  ;;  %4086 = vmatmul.msk.f32.gmra.mxu0 %vm1598_vm12, %v5708_v16 }
 0x160   :  { %1252 = vrot.lane.b32.xlu0 %v5236_v13, %s4927_s21 }
 0x161   :  { %4522 = vrot.lane.b32.xlu2 %v4521_v4, %s4928_s22  ;;  %1740 = vmatpush.msrb.mxu2 %v5012_v7  ;;  %v4804_v7 = vld [vmem:[#allocation4 + $0x8] sm:$0xff] }
 0x162   :  { %v5767_v45 = vpop.permute.xlu0 %4462  ;;  %v5771_v22 = vpop.permute.xlu2 %994  ;;  %1665 = vmatmul.f32.gmra.mxu1 %v5765_v61 }
 0x163   :  { %1254 = vrot.lane.b32.xlu1 %v5279_v63, %s4927_s21  ;;  %1741 = vmatpush.msrb.mxu2 %v4994_v3 }
 0x164   :  { %v5783_v2 = vpop.permute.xlu1 %4467 }
 0x165   :  { %1742 = vmatpush.msrb.mxu2 %v4804_v7  ;;  %v1962_v7 = vld [vmem:[%s7567_s2 + $0x18] sm:$0xff] }
 0x166   :  { %1743 = vmatmul.f32.vlgmr.msrb.gmra.mxu2 %v5646_v5 }
 0x167   :  { %4087 = vmatmul.msk.f32.gmra.mxu0 %vm1598_vm12, %v5748_v48 }
 0x168   :  { %4527 = vrot.lane.b32.xlu0 %v4526_v47, %s4928_s22  ;;  %v1999_v47 = vld [vmem:[%s7568_s3] sm:$0xff] }
 0x169   :  { %4537 = vrot.lane.b32.xlu2 %v4536_v9, %s4928_s22 }
 0x16a   :  { %v5788_v58 = vpop.permute.xlu0 %4477  ;;  %v5791_v3 = vpop.permute.xlu2 %4492 }
 0x16b   :  { %4532 = vrot.lane.b32.xlu1 %v4531_v19, %s4928_s22 }
 0x16c   :  { %v5798_v10 = vpop.permute.xlu1 %4482 }
 0x16e   :  { %1746 = vmatmul.f32.gmra.mxu2 %v5687_v49 }
 0x170   :  { %4542 = vrot.lane.b32.xlu0 %v4541_v26, %s4928_s22 }
 0x171   :  { %1386 = vrot.lane.b32.xlu2 %v5216_v57, %s4929_s23 }
 0x172   :  { %v5803_v36 = vpop.permute.xlu0 %982  ;;  %v1067_v20 = vpop.permute.xlu2 %1066 }
 0x173   :  { %4547 = vrot.lane.b32.xlu1 %v4546_v31, %s4928_s22 }
 0x174   :  { %v5808_v25 = vpop.permute.xlu1 %986 }
 0x176   :  { %1749 = vmatmul.f32.gmra.mxu2 %v5727_v14 }
 0x178   :  { %1388 = vrot.lane.b32.xlu0 %v5210_v53, %s4929_s23 }
 0x179   :  { %1392 = vrot.lane.b32.xlu2 %v5222_v60, %s4929_s23 }
 0x17a   :  { %v5813_v50 = vpop.permute.xlu0 %4487  ;;  %v1073_v38 = vpop.permute.xlu2 %1072 }
 0x17b   :  { %4552 = vrot.lane.b32.xlu1 %v7618_v55, %s4929_s23 }
 0x17c   :  { %v5819_v57 = vpop.permute.xlu1 %992 }
 0x17e   :  { %1752 = vmatmul.f32.gmra.mxu2 %v5765_v61  ;;  %v2001_v61 = vld [vmem:[%s7568_s3 + $0x10] sm:$0xff] }
 0x180   :  { %1394 = vrot.lane.b32.xlu0 %v5228_v1, %s4929_s23 }
 0x181   :  { %1400 = vrot.lane.b32.xlu2 %v5261_v0, %s4929_s23  ;;  %v1959_v0 = vld [vmem:[%s7567_s2] sm:$0xff] }
 0x182   :  { %v999_v6 = vpop.permute.xlu0 %998  ;;  %v1081_v53 = vpop.permute.xlu2 %1080 }
 0x183   :  { %1398 = vrot.lane.b32.xlu1 %v5234_v12, %s4929_s23  ;;  %v1961_v12 = vld [vmem:[%s7567_s2 + $0x10] sm:$0xff] }
 0x184   :  { %v1001_v60 = vpop.permute.xlu1 %1000 }
 0x188   :  { %4557 = vrot.lane.b32.xlu0 %v7618_v55, %s4929_s23 }
 0x189   :  { %1406 = vrot.lane.b32.xlu2 %v5279_v63, %s4929_s23  ;;  %v1960_v63 = vld [vmem:[%s7567_s2 + $0x8] sm:$0xff] }
 0x18a   :  { %v1061_v39 = vpop.permute.xlu0 %1060  ;;  %v5832_v44 = vpop.permute.xlu2 %4502 }
 0x18b   :  { %1404 = vrot.lane.b32.xlu1 %v5236_v13, %s4929_s23  ;;  %v2000_v13 = vld [vmem:[%s7568_s3 + $0x8] sm:$0xff] }
 0x18c   :  { %v1063_v1 = vpop.permute.xlu1 %1062 }
 0x190   :  { %1965 = vperm.xlu0 %4561, %v1959_v0   ;;  %v2002_v0 = vld [vmem:[%s7568_s3 + $0x18] sm:$0xff] }
 0x191   :  { %1975 = vperm.xlu2 %4563, %v1961_v12   ;;  %v4495_v12 = vunpack.i.h.bf16 %v5791_v3 }
 0x192   :  { %v1069_v46 = vpop.permute.xlu0 %1068  ;;  %v5845_v11 = vpop.permute.xlu2 %1166 }
 0x193   :  { %1970 = vperm.xlu1 %4562, %v1960_v63  }
 0x194   :  { %v4498_v4 = vpop.permute.xlu1 %4497 }
 0x195   :  { %v4500_v26 = vunpack.i.h.bf16 %v4498_v4  ;;  %v4499_v51 = vunpack.i.l.bf16 %v4498_v4 }
 0x198   :  { %2010 = vperm.xlu0 %4561, %v2000_v13  }
 0x199   :  { %2005 = vperm.xlu2 %4563, %v1999_v47  }
 0x19a   :  { %v1075_v9 = vpop.permute.xlu0 %1074 }
 0x19b   :  { %v5856_v19 = vpop.permute.xlu2 %1172  ;;  %1980 = vperm.xlu1 %4562, %v1962_v7   ;;  %v1087_v47 = vsel %vm420_vm2, %v1073_v38, %v1075_v9  ;;  %v1086_v7 = vsel %vm420_vm2, %v4499_v51, %v1073_v38  ;;  %v1084_v9 = vsel %vm420_vm2, %v4495_v12, %v1067_v20  ;;  %v1085_v38 = vsel %vm420_vm2, %v1067_v20, %v1069_v46 }
 0x19c   :  { %v1079_v31 = vpop.permute.xlu1 %1078  ;;  %v4489_v51 = vunpack.i.l.bf16 %v5813_v50  ;;  %v1009_v20 = vsel %vm339_vm4, %v999_v6, %v1001_v60  ;;  %v4484_v46 = vunpack.i.l.bf16 %v5798_v10  ;;  %v4479_v60 = vunpack.i.l.bf16 %v5788_v58 }
 0x19d   :  { %v1089_v63 = vsel %vm420_vm2, %v1079_v31, %v1081_v53  ;;  %v1088_v13 = vsel %vm420_vm2, %v4500_v26, %v1079_v31  ;;  %v4494_v53 = vunpack.i.l.bf16 %v5791_v3  ;;  %v4490_v26 = vunpack.i.h.bf16 %v5813_v50 }
 0x19e   :  { %4160 = vmatpush.msk.msrb.mxu1 %vm5238_vm0, %v1088_v13  ;;  %4184 = vmatpush.msk.msra.mxu0 %vm5242_vm1, %v1089_v63  ;;  %v1083_v3 = vsel %vm420_vm2, %v1061_v39, %v1063_v1  ;;  %v4485_v50 = vunpack.i.h.bf16 %v5798_v10  ;;  %v1006_v1 = vsel %vm339_vm4, %v4489_v51, %v5819_v57  ;;  %v4480_v13 = vunpack.i.h.bf16 %v5788_v58 }
 0x19f   :  { %v1003_v58 = vsel %vm339_vm4, %v5698_v59, %v5803_v36  ;;  %v4455_v36 = vunpack.i.h.bf16 %v5758_v52  ;;  %v4454_v51 = vunpack.i.l.bf16 %v5758_v52 }
 0x1a0   :  { %4161 = vmatpush.msk.msrb.mxu1 %vm5238_vm0, %v1086_v7  ;;  %4185 = vmatpush.msk.msra.mxu0 %vm5242_vm1, %v1087_v47  ;;  %v1004_v10 = vsel %vm339_vm4, %v4485_v50, %v5808_v25  ;;  %v1005_v47 = vsel %vm339_vm4, %v5808_v25, %v5738_v21  ;;  %v4469_v7 = vunpack.i.l.bf16 %v5783_v2  ;;  %v4464_v21 = vunpack.i.l.bf16 %v5767_v45 }
 0x1a1   :  { %2020 = vperm.xlu2 %4563, %v2002_v0   ;;  %v1082_v0 = vsel %vm420_vm2, %v4494_v53, %v1061_v39  ;;  %v1002_v53 = vsel %vm339_vm4, %v4484_v46, %v5698_v59  ;;  %v4474_v25 = vunpack.i.l.bf16 %v5656_v32  ;;  %v4460_v59 = vunpack.i.h.bf16 %v5610_v29  ;;  %4565 = vrot.lane.b32.xlu0 %v7618_v55, %s4923_s18 }
 0x1a2   :  { %v5869_v4 = vpop.permute.xlu0 %1154  ;;  %4162 = vmatpush.msk.msrb.mxu1 %vm5238_vm0, %v1084_v9  ;;  %4186 = vmatpush.msk.msra.mxu0 %vm5242_vm1, %v1085_v38  ;;  %v4465_v9 = vunpack.i.h.bf16 %v5767_v45  ;;  %v937_v38 = vsel %vm262_vm6, %v4479_v60, %v4480_v13  ;;  %v4459_v50 = vunpack.i.l.bf16 %v5610_v29  ;;  %v930_v46 = vsel %vm262_vm6, %v4454_v51, %v4455_v36 }
 0x1a3   :  { %v5882_v31 = vpop.permute.xlu2 %1236  ;;  %2015 = vperm.xlu1 %4562, %v2001_v61   ;;  %v1008_v61 = vsel %vm339_vm4, %v4490_v26, %v999_v6  ;;  %v1007_v6 = vsel %vm339_vm4, %v5819_v57, %v5771_v22  ;;  %v4475_v22 = vunpack.i.h.bf16 %v5656_v32  ;;  %v4470_v57 = vunpack.i.h.bf16 %v5783_v2 }
 0x1a4   :  { %v5892_v63 = vpop.permute.xlu1 %1156  ;;  %4163 = vmatpush.msk.msrb.mxu1 %vm5238_vm0, %v1082_v0  ;;  %4187 = vmatpush.msk.msra.mxu0 %vm5242_vm1, %v1083_v3  ;;  %v4450_v32 = vunpack.i.h.bf16 %v5530_v27  ;;  %v932_v45 = vsel %vm262_vm6, %v4460_v59, %v4464_v21  ;;  %v933_v52 = vsel %vm262_vm6, %v4464_v21, %v4465_v9  ;;  %v857_v29 = vsel %vm181_vm7, %v5560_v18, %v5730_v8 }
 0x1a5   :  { %v936_v2 = vsel %vm262_vm6, %v4475_v22, %v4479_v60  ;;  %v934_v3 = vsel %vm262_vm6, %v4469_v7, %v4470_v57  ;;  %v4449_v60 = vunpack.i.l.bf16 %v5530_v27 }
 0x1a6   :  { %4164 = vmatpush.msk.msrb.mxu1 %vm5286_vm3, %v1008_v61  ;;  %4188 = vmatpush.msk.msra.mxu0 %vm5295_vm5, %v1009_v20  ;;  %v935_v61 = vsel %vm262_vm6, %v4470_v57, %v4474_v25  ;;  %v856_v13 = vsel %vm181_vm7, %v4450_v32, %v5560_v18  ;;  %v855_v57 = vsel %vm181_vm7, %v5690_v37, %v5717_v41 }
 0x1a7   :  { %v854_v27 = vsel %vm181_vm7, %v4449_v60, %v5690_v37 }
 0x1a8   :  { %4165 = vmatpush.msk.msrb.mxu1 %vm5286_vm3, %v1006_v1  ;;  %4189 = vmatpush.msk.msra.mxu0 %vm5295_vm5, %v1007_v6  ;;  %v931_v6 = vsel %vm262_vm6, %v4455_v36, %v4459_v50 }
 0x1aa   :  { %v5906_v39 = vpop.permute.xlu0 %1160  ;;  %4166 = vmatpush.msk.msrb.mxu1 %vm5286_vm3, %v1004_v10  ;;  %4190 = vmatpush.msk.msra.mxu0 %vm5295_vm5, %v1005_v47  ;;  %v4445_v10 = vunpack.i.h.bf16 %v5598_v42  ;;  %v4444_v47 = vunpack.i.l.bf16 %v5598_v42  ;;  %v853_v42 = vsel %vm181_vm7, %v5649_v28, %v5675_v40 }
 0x1ab   :  { %v5920_v12 = vpop.permute.xlu2 %1242 }
 0x1ac   :  { %v5938_v26 = vpop.permute.xlu1 %1162  ;;  %4167 = vmatpush.msk.msrb.mxu1 %vm5286_vm3, %v1002_v53  ;;  %4191 = vmatpush.msk.msra.mxu0 %vm5295_vm5, %v1003_v58  ;;  %v852_v18 = vsel %vm181_vm7, %v4445_v10, %v5649_v28  ;;  %v850_v41 = vsel %vm181_vm7, %v4444_v47, %v5633_v62  ;;  %v851_v28 = vsel %vm181_vm7, %v5633_v62, %v5507_v35  ;;  %v6023_v35 = vpop.f32.mrf.mxu0 }
 0x1ae   :  { %1793 = vmatpush.msrb.mxu1 %v936_v2  ;;  %1880 = vmatpush.msra.mxu0 %v937_v38 }
 0x1b0   :  { %1794 = vmatpush.msrb.mxu1 %v934_v3  ;;  %1881 = vmatpush.msra.mxu0 %v935_v61 }
 0x1b2   :  { %v5952_v0 = vpop.permute.xlu0 %1168  ;;  %1795 = vmatpush.msrb.mxu1 %v932_v45  ;;  %1882 = vmatpush.msra.mxu0 %v933_v52 }
 0x1b3   :  { %v5958_v20 = vpop.permute.xlu2 %4517 }
 0x1b4   :  { %1796 = vmatpush.msrb.mxu1 %v930_v46  ;;  %1883 = vmatpush.msra.mxu0 %v931_v6 }
 0x1b5   :  { %v5963_v1 = vpop.permute.xlu1 %4507 }
 0x1b6   :  { %4168 = vmatpush.msk.msrb.mxu1 %vm5238_vm0, %v856_v13  ;;  %4192 = vmatpush.msk.msra.mxu0 %vm5242_vm1, %v857_v29 }
 0x1b8   :  { %4169 = vmatpush.msk.msrb.mxu1 %vm5238_vm0, %v854_v27  ;;  %4193 = vmatpush.msk.msra.mxu0 %vm5242_vm1, %v855_v57 }
 0x1ba   :  { %v5978_v22 = vpop.permute.xlu0 %1174  ;;  %4170 = vmatpush.msk.msrb.mxu1 %vm5238_vm0, %v852_v18  ;;  %4194 = vmatpush.msk.msra.mxu0 %vm5242_vm1, %v853_v42 }
 0x1bb   :  { %v5998_v37 = vpop.permute.xlu2 %4522 }
 0x1bc   :  { %4171 = vmatpush.msk.msrb.mxu1 %vm5238_vm0, %v850_v41  ;;  %4195 = vmatpush.msk.msra.mxu0 %vm5242_vm1, %v851_v28  ;;  %v4525_v42 = vunpack.i.h.bf16 %v5998_v37  ;;  %v4524_v41 = vunpack.i.l.bf16 %v5998_v37 }
 0x1bd   :  { %v6002_v8 = vpop.permute.xlu1 %1234  ;;  %1801 = vmatmul.f32.vlgmr.msrb.gmra.mxu1 %v5524_v15  ;;  %1888 = vmatmul.f32.vlgmr.msra.gmra.mxu0 %v5524_v15 }
 0x1c2   :  { %v6013_v40 = vpop.permute.xlu0 %4512 }
 0x1c3   :  { %v4538_v53 = vpop.permute.xlu2 %4537 }
 0x1c4   :  { %v4540_v45 = vunpack.i.h.bf16 %v4538_v53  ;;  %v4539_v52 = vunpack.i.l.bf16 %v4538_v53 }
 0x1c5   :  { %v6015_v7 = vpop.permute.xlu1 %1240  ;;  %1804 = vmatmul.f32.gmra.mxu1 %v5551_v30  ;;  %1891 = vmatmul.f32.gmra.mxu0 %v5551_v30  ;;  %v6034_v30 = vpop.f32.mrf.mxu0 }
 0x1c6   :  { %v1342_v53 = vsel %vm679_vm8, %v4539_v52, %v4540_v45  ;;  %v1715_v52 = vpop.f32.mrf.mxu3 }
 0x1c7   :  { %v6045_v46 = vpop.f32.mrf.mxu1 }
 0x1c9   :  { %v6021_v21 = vpop.f32.mrf.mxu2 }
 0x1ca   :  { %v6019_v58 = vpop.permute.xlu0 %1246 }
 0x1cb   :  { %v6029_v15 = vpop.permute.xlu2 %1386 }
 0x1cd   :  { %v6025_v62 = vpop.permute.xlu1 %1248  ;;  %1807 = vmatmul.f32.gmra.mxu1 %v5613_v17  ;;  %1894 = vmatmul.f32.gmra.mxu0 %v5613_v17  ;;  %v6041_v17 = vpop.f32.mrf.mxu0 }
 0x1d1   :  { %v6031_v25 = vpop.f32.mrf.mxu2 }
 0x1d2   :  { %v1253_v2 = vpop.permute.xlu0 %1252 }
 0x1d3   :  { %v6037_v59 = vpop.permute.xlu2 %1392 }
 0x1d5   :  { %v1255_v9 = vpop.permute.xlu1 %1254  ;;  %1810 = vmatmul.f32.gmra.mxu1 %v5659_v43  ;;  %1897 = vmatmul.f32.gmra.mxu0 %v5659_v43 }
 0x1d9   :  { %v6039_v36 = vpop.f32.mrf.mxu2 }
 0x1da   :  { %v4528_v38 = vpop.permute.xlu0 %4527 }
 0x1db   :  { %v6043_v61 = vpop.permute.xlu2 %1400  ;;  %v4530_v10 = vunpack.i.h.bf16 %v4528_v38  ;;  %v4529_v28 = vunpack.i.l.bf16 %v4528_v38  ;;  %v1338_v38 = vsel %vm679_vm8, %v4524_v41, %v4525_v42 }
 0x1dd   :  { %v4533_v51 = vpop.permute.xlu1 %4532 }
 0x1de   :  { %v4535_v29 = vunpack.i.h.bf16 %v4533_v51  ;;  %v4534_v47 = vunpack.i.l.bf16 %v4533_v51 }
 0x1e0   :  { %v1340_v51 = vsel %vm679_vm8, %v4530_v10, %v4534_v47  ;;  %v4515_v10 = vunpack.i.h.bf16 %v6013_v40 }
 0x1e1   :  { %v6049_v13 = vpop.f32.mrf.mxu2 }
 0x1e2   :  { %v4543_v3 = vpop.permute.xlu0 %4542 }
 0x1e3   :  { %v4545_v32 = vunpack.i.h.bf16 %v4543_v3  ;;  %v4544_v6 = vunpack.i.l.bf16 %v4543_v3  ;;  %v6066_v37 = vpop.permute.xlu2 %1406 }
 0x1e5   :  { %v4548_v50 = vpop.permute.xlu1 %4547  ;;  %v1343_v3 = vsel %vm679_vm8, %v4540_v45, %v4544_v6  ;;  %v1339_v45 = vsel %vm679_vm8, %v4525_v42, %v4529_v28  ;;  %v4519_v6 = vunpack.i.l.bf16 %v5958_v20  ;;  %v4514_v42 = vunpack.i.l.bf16 %v6013_v40 }
 0x1e6   :  { %v4550_v60 = vunpack.i.h.bf16 %v4548_v50  ;;  %v4549_v43 = vunpack.i.l.bf16 %v4548_v50  ;;  %v6059_v50 = vpop.f32.mrf.mxu0  ;;  %v1261_v40 = vsel %vm598_vm9, %v5920_v12, %v4515_v10  ;;  %v4504_v10 = vunpack.i.l.bf16 %v5832_v44 }
 0x1e7   :  { %v1263_v41 = vsel %vm598_vm9, %v6025_v62, %v4519_v6  ;;  %v1180_v6 = vsel %vm517_vm10, %v5906_v39, %v5938_v26  ;;  %v1178_v39 = vsel %vm517_vm10, %v5869_v4, %v5892_v63 }
 0x1e8   :  { %v1344_v57 = vsel %vm679_vm8, %v4545_v32, %v4549_v43  ;;  %v1345_v18 = vsel %vm679_vm8, %v4549_v43, %v4550_v60  ;;  %v1341_v32 = vsel %vm679_vm8, %v4534_v47, %v4535_v29  ;;  %v4520_v43 = vunpack.i.h.bf16 %v5958_v20  ;;  %v1660_v29 = vpop.f32.mrf.mxu1 }
 0x1e9   :  { %1814 = vmatpush.msrb.mxu3 %v1344_v57  ;;  %1901 = vmatpush.msra.mxu1 %v1345_v18  ;;  %v1264_v57 = vsel %vm598_vm9, %v1253_v2, %v1255_v9  ;;  %v1262_v20 = vsel %vm598_vm9, %v6019_v58, %v6025_v62  ;;  %v4510_v2 = vunpack.i.h.bf16 %v5963_v1  ;;  %v4509_v62 = vunpack.i.l.bf16 %v5963_v1 }
 0x1ea   :  { %v6051_v27 = vpop.permute.xlu0 %1388  ;;  %v1265_v18 = vsel %vm598_vm9, %v1255_v9, %v4520_v43  ;;  %v1260_v9 = vsel %vm598_vm9, %v6015_v7, %v5920_v12  ;;  %v1259_v7 = vsel %vm598_vm9, %v5882_v31, %v4514_v42  ;;  %v1184_v1 = vsel %vm517_vm10, %v5856_v19, %v5978_v22 }
 0x1eb   :  { %1815 = vmatpush.msrb.mxu3 %v1342_v53  ;;  %1902 = vmatpush.msra.mxu1 %v1343_v3  ;;  %v1744_v53 = vpop.f32.mrf.mxu2  ;;  %v1258_v3 = vsel %vm598_vm9, %v6002_v8, %v5882_v31  ;;  %v6110_v12 = vpop.permute.xlu2 %1975  ;;  %v1185_v8 = vsel %vm517_vm10, %v5978_v22, %v4510_v2  ;;  %v4505_v31 = vunpack.i.h.bf16 %v5832_v44  ;;  %v1183_v19 = vsel %vm517_vm10, %v5952_v0, %v4509_v62 }
 0x1ec   :  { %v1658_v22 = vadd.f32 %v6045_v46, %v6023_v35  ;;  %v1179_v44 = vsel %vm517_vm10, %v5892_v63, %v4504_v10 }
 0x1ed   :  { %v6063_v60 = vpop.permute.xlu1 %4552  ;;  %1816 = vmatpush.msrb.mxu3 %v1340_v51  ;;  %1903 = vmatpush.msra.mxu1 %v1341_v32  ;;  %v1745_v32 = vadd.f32 %v1744_v53, %v1715_v52  ;;  %v1661_v53 = vadd.f32 %v1660_v29, %v6034_v30  ;;  %v4806_v29 = vld [vmem:[#allocation4 + $0x78] sm:$0xff] }
 0x1ee   :  { %v1773_v28 = vpop.f32.mrf.mxu0 }
 0x1ef   :  { %1817 = vmatpush.msrb.mxu3 %v1338_v38  ;;  %1904 = vmatpush.msra.mxu1 %v1339_v45  ;;  %v1718_v38 = vpop.f32.mrf.mxu3  ;;  %v1182_v45 = vsel %vm517_vm10, %v5845_v11, %v5952_v0  ;;  %v1181_v11 = vsel %vm517_vm10, %v5938_v26, %v4505_v31  ;;  %v1774_v0 = vadd.f32 %v1773_v28, %v1745_v32  ;;  %v4807_v28 = vld [vmem:[#allocation4 + $0x60] sm:$0xff] }
 0x1f0   :  { %v6124_v43 = vpop.f32.mrf.mxu1  ;;  %v1687_v26 = vadd.f32 %v6021_v21, %v1658_v22  ;;  %v4810_v22 = vld [vmem:[#allocation4 + $0x58] sm:$0xff] }
 0x1f1   :  { %4172 = vmatpush.msk.msrb.mxu3 %vm5238_vm0, %v1264_v57  ;;  %4196 = vmatpush.msk.msra.mxu1 %vm5242_vm1, %v1265_v18 }
 0x1f2   :  { %v6072_v47 = vpop.permute.xlu0 %1394 }
 0x1f3   :  { %4173 = vmatpush.msk.msrb.mxu3 %vm5238_vm0, %v1262_v20  ;;  %4197 = vmatpush.msk.msra.mxu1 %vm5242_vm1, %v1263_v41  ;;  %v1747_v52 = vpop.f32.mrf.mxu2  ;;  %v4805_v41 = vld [vmem:[#allocation4 + $0x70] sm:$0xff]  ;;  %v6170_v2 = vpop.permute.xlu2 %2005  ;;  %v1412_v30 = vsel %vm752_vm11, %v6037_v59, %v6072_v47  ;;  %v1410_v59 = vsel %vm752_vm11, %v6029_v15, %v6051_v27 }
 0x1f4   :  { %v1748_v35 = vadd.f32 %v1747_v52, %v1718_v38  ;;  %v4811_v52 = vld [vmem:[#allocation4 + $0x40] sm:$0xff] }
 0x1f5   :  { %v1399_v58 = vpop.permute.xlu1 %1398  ;;  %4174 = vmatpush.msk.msrb.mxu3 %vm5238_vm0, %v1260_v9  ;;  %4198 = vmatpush.msk.msra.mxu1 %vm5242_vm1, %v1261_v40 }
 0x1f6   :  { %v1776_v18 = vpop.f32.mrf.mxu0  ;;  %v1414_v42 = vsel %vm752_vm11, %v1399_v58, %v6043_v61  ;;  %v1690_v58 = vadd.f32 %v6031_v25, %v1661_v53 }
 0x1f7   :  { %4175 = vmatpush.msk.msrb.mxu3 %vm5238_vm0, %v1258_v3  ;;  %4199 = vmatpush.msk.msra.mxu1 %vm5242_vm1, %v1259_v7  ;;  %v1777_v63 = vadd.f32 %v1776_v18, %v1748_v35  ;;  %v1721_v7 = vpop.f32.mrf.mxu3 }
 0x1f8   :  { %v1666_v62 = vpop.f32.mrf.mxu1 }
 0x1f9   :  { %4176 = vmatpush.msk.msrb.mxu3 %vm5286_vm3, %v1184_v1  ;;  %4200 = vmatpush.msk.msra.mxu1 %vm5295_vm5, %v1185_v8  ;;  %v4808_v1 = vld [vmem:[#allocation4 + $0x68] sm:$0xff] }
 0x1fa   :  { %v6112_v51 = vpop.permute.xlu0 %4557 }
 0x1fb   :  { %4177 = vmatpush.msk.msrb.mxu3 %vm5286_vm3, %v1182_v45  ;;  %4201 = vmatpush.msk.msra.mxu1 %vm5295_vm5, %v1183_v19  ;;  %v4560_v3 = vunpack.i.h.bf16 %v6112_v51  ;;  %v1750_v8 = vpop.f32.mrf.mxu2  ;;  %v4809_v45 = vld [vmem:[#allocation4 + $0x50] sm:$0xff]  ;;  %v4559_v25 = vunpack.i.l.bf16 %v6112_v51 }
 0x1fd   :  { %v1405_v57 = vpop.permute.xlu1 %1404  ;;  %4178 = vmatpush.msk.msrb.mxu3 %vm5286_vm3, %v1180_v6  ;;  %4202 = vmatpush.msk.msra.mxu1 %vm5295_vm5, %v1181_v11  ;;  %v4555_v6 = vunpack.i.h.bf16 %v6063_v60  ;;  %v1667_v11 = vadd.f32 %v1666_v62, %v6059_v50  ;;  %v1417_v10 = vsel %vm752_vm11, %v6066_v37, %v4560_v3  ;;  %v4554_v50 = vunpack.i.l.bf16 %v6063_v60 }
 0x1fe   :  { %v1416_v46 = vsel %vm752_vm11, %v1405_v57, %v6066_v37  ;;  %v1664_v37 = vadd.f32 %v6124_v43, %v6041_v17 }
 0x1ff   :  { %4179 = vmatpush.msk.msrb.mxu3 %vm5286_vm3, %v1178_v39  ;;  %4180 = vmatpush.msk.msra.mxu2 %vm5286_vm3, %v1416_v46  ;;  %v4812_v46 = vld [vmem:[#allocation4 + $0x48] sm:$0xff]  ;;  %v1415_v39 = vsel %vm752_vm11, %v6043_v61, %v4559_v25  ;;  %v1696_v18 = vadd.f32 %v6049_v13, %v1667_v11  ;;  %v1724_v53 = vpop.f32.mrf.mxu3  ;;  %v1413_v60 = vsel %vm752_vm11, %v6072_v47, %v4555_v6 }
 0x200   :  { %4203 = vmatpush.msk.msra.mxu1 %vm5295_vm5, %v1179_v44  ;;  %v1751_v44 = vadd.f32 %v1750_v8, %v1721_v7  ;;  %v1411_v13 = vsel %vm752_vm11, %v6051_v27, %v4554_v50  ;;  %v1693_v47 = vadd.f32 %v6039_v36, %v1664_v37 }
 0x201   :  { %1826 = vmatpush.msrb.mxu3 %v4805_v41  ;;  %4181 = vmatpush.msk.msra.mxu2 %vm5286_vm3, %v1414_v42 }
 0x202   :  { %v6164_v4 = vpop.permute.xlu0 %1965  ;;  %1913 = vmatpush.msra.mxu1 %v4806_v29 }
 0x203   :  { %v1983_v21 = vmul.f32 %v6164_v4, %v1687_v26  ;;  %v1984_v20 = vmul.f32 %v6164_v4, %v1774_v0  ;;  %1827 = vmatpush.msrb.mxu3 %v4807_v28  ;;  %4182 = vmatpush.msk.msra.mxu2 %vm5286_vm3, %v1412_v30  ;;  %v1779_v0 = vpop.f32.mrf.mxu0  ;;  %v1753_v61 = vpop.f32.mrf.mxu2 }
 0x204   :  { %1914 = vmatpush.msra.mxu1 %v4808_v1  ;;  %v1780_v43 = vadd.f32 %v1779_v0, %v1751_v44  ;;  %v7630_v1 = vld [vmem:[#allocation14_spill] sm:$0xff] }
 0x205   :  { %v2023_v9 = vadd.f32 %v6170_v2, %v1983_v21  ;;  %v2024_v40 = vadd.f32 %v6170_v2, %v1984_v20  ;;  %v6188_v38 = vpop.permute.xlu1 %1970  ;;  %1828 = vmatpush.msrb.mxu3 %v4809_v45  ;;  %4183 = vmatpush.msk.msra.mxu2 %vm5286_vm3, %v1410_v59  ;;  %v1754_v21 = vadd.f32 %v1753_v61, %v1724_v53  ;;  %v6246_v20 = vpop.permute.xlu2 %2020 }
 0x206   :  { %v1987_v19 = vmul.f32 %v6188_v38, %v1690_v58  ;;  %v1988_v15 = vmul.f32 %v6188_v38, %v1777_v63  ;;  %4088 = vmatmul.msk.f32.vlgmr.msra.gmra.mxu2 %vm1598_vm12, %v5625_v24  ;;  %1915 = vmatpush.msra.mxu1 %v4810_v22  ;;  %v1991_v63 = vmul.f32 %v6110_v12, %v1693_v47 }
 0x207   :  { %v6184_v32 = vmax.f32 %v2023_v9, 0.0  ;;  %v6186_v31 = vmax.f32 %v2024_v40, 0.0  ;;  %1829 = vmatpush.msrb.mxu3 %v4811_v52  ;;  %v1992_v30 = vmul.f32 %v6110_v12, %v1780_v43 }
 0x208   :  { %1830 = vmatmul.f32.vlgmr.msrb.gmra.mxu3 %v5646_v5  ;;  %1916 = vmatpush.msra.mxu1 %v4812_v46 }
 0x209   :  { %7622 = vst [vmem:[#allocation15_spill] sm:$0xff] %v6184_v32  ;;  %2089 = vrot.lane.b32.xlu1 %v6184_v32, %s4923_s18  ;;  %2091 = vrot.lane.b32.xlu2 %v6186_v31, %s4923_s18  ;;  %v4579_v7 = vpack.i.bf16 0.0, %v6186_v31  ;;  %v4574_v8 = vpack.i.bf16 %v6184_v32, %v7618_v55  ;;  %v4644_v53 = vpack.i.bf16 %v6186_v31, %v6184_v32 }
 0x20a   :  { %7623 = vst [vmem:[#allocation16_spill] sm:$0xff] %v6186_v31  ;;  %v6203_v51 = vpop.permute.xlu0 %2010  ;;  %4204 = vmatpush.msk.msra.mxu3 %vm5295_vm5, %v1417_v10  ;;  %1917 = vmatmul.f32.vlgmr.msra.gmra.mxu1 %v5646_v5 }
 0x20b   :  { %v2027_v57 = vadd.f32 %v6203_v51, %v1987_v19  ;;  %v2028_v35 = vadd.f32 %v6203_v51, %v1988_v15  ;;  %v1782_v27 = vpop.f32.mrf.mxu0 }
 0x20c   :  { %4205 = vmatpush.msk.msra.mxu3 %vm5295_vm5, %v1415_v39  ;;  %v1783_v29 = vadd.f32 %v1782_v27, %v1754_v21 }
 0x20d   :  { %v6218_v26 = vmax.f32 %v2027_v57, 0.0  ;;  %v6225_v42 = vmax.f32 %v2028_v35, 0.0  ;;  %v6229_v5 = vpop.permute.xlu1 %1980 }
 0x20e   :  { %4206 = vmatpush.msk.msra.mxu3 %vm5295_vm5, %v1413_v60  ;;  %v1995_v17 = vmul.f32 %v6229_v5, %v1696_v18  ;;  %4089 = vmatmul.msk.f32.gmra.mxu2 %vm1598_vm12, %v5668_v23  ;;  %v1996_v58 = vmul.f32 %v6229_v5, %v1783_v29 }
 0x20f   :  { %7624 = vst [vmem:[#allocation17_spill] sm:$0xff] %v6218_v26  ;;  %2095 = vrot.lane.b32.xlu0 %v6218_v26, %s4923_s18  ;;  %v4584_v45 = vpack.i.bf16 %v6225_v42, %v6218_v26 }
 0x210   :  { %7625 = vst [vmem:[#allocation18_spill] sm:$0xff] %v6225_v42  ;;  %4207 = vmatpush.msk.msra.mxu3 %vm5295_vm5, %v1411_v13  ;;  %v2035_v41 = vadd.f32 %v6246_v20, %v1995_v17  ;;  %v2036_v3 = vadd.f32 %v6246_v20, %v1996_v58 }
 0x211   :  { %2097 = vrot.lane.b32.xlu1 %v6225_v42, %s4923_s18  ;;  %4570 = vrot.lane.b32.xlu2 %v7618_v55, %s4923_s18 }
 0x212   :  { %1833 = vmatmul.f32.gmra.mxu3 %v5687_v49  ;;  %1920 = vmatmul.f32.gmra.mxu1 %v5687_v49  ;;  %v6254_v9 = vmax.f32 %v2035_v41, 0.0  ;;  %v6277_v59 = vmax.f32 %v2036_v3, 0.0 }
 0x214   :  { %7626 = vst [vmem:[#allocation19_spill] sm:$0xff] %v6254_v9  ;;  %v4599_v19 = vpack.i.bf16 %v6277_v59, %v6254_v9  ;;  %v4669_v3 = vpack.i.bf16 0.0, %v6277_v59 }
 0x215   :  { %v6252_v36 = vpop.permute.xlu1 %2015  ;;  %7629 = vst [vmem:[#allocation22_spill] sm:$0xff] %v6277_v59 }
 0x216   :  { %v2031_v40 = vadd.f32 %v6252_v36, %v1991_v63  ;;  %v2032_v28 = vadd.f32 %v6252_v36, %v1992_v30  ;;  %4090 = vmatmul.msk.f32.gmra.mxu2 %vm1598_vm12, %v5708_v16  ;;  %v4654_v63 = vpack.i.bf16 0.0, %v6225_v42  ;;  %v4649_v30 = vpack.i.bf16 %v6218_v26, %v7618_v55 }
 0x218   :  { %v6261_v62 = vmax.f32 %v2031_v40, 0.0  ;;  %v6263_v49 = vmax.f32 %v2032_v28, 0.0 }
 0x219   :  { %2107 = vrot.lane.b32.xlu2 %v6254_v9, %s4923_s18 }
 0x21a   :  { %7627 = vst [vmem:[#allocation20_spill] sm:$0xff] %v6261_v62  ;;  %1836 = vmatmul.f32.gmra.mxu3 %v5727_v14  ;;  %2101 = vrot.lane.b32.xlu0 %v6261_v62, %s4923_s18  ;;  %v4589_v25 = vpack.i.bf16 %v6261_v62, %v7618_v55  ;;  %v4659_v21 = vpack.i.bf16 %v6263_v49, %v6261_v62 }
 0x21b   :  { %7628 = vst [vmem:[#allocation21_spill] sm:$0xff] %v6263_v49  ;;  %2103 = vrot.lane.b32.xlu1 %v6263_v49, %s4923_s18  ;;  %1923 = vmatmul.f32.gmra.mxu1 %v5727_v14  ;;  %v4594_v14 = vpack.i.bf16 0.0, %v6263_v49 }
 0x21e   :  { %4091 = vmatmul.msk.f32.gmra.mxu2 %vm1598_vm12, %v5748_v48 }
 0x221   :  { %4580 = vrot.lane.b32.xlu2 %v4579_v7, %s4920_s14  ;;  %v4664_v7 = vpack.i.bf16 %v6254_v9, %v7618_v55 }
 0x222   :  { %1839 = vmatmul.f32.gmra.mxu3 %v7630_v1  ;;  %2109 = vrot.lane.b32.xlu0 %v6277_v59, %s4923_s18 }
 0x223   :  { %4575 = vrot.lane.b32.xlu1 %v4574_v8, %s4920_s14  ;;  %1926 = vmatmul.f32.gmra.mxu1 %v7630_v1 }
 0x229   :  { %4595 = vrot.lane.b32.xlu2 %v4594_v14, %s4920_s14 }
 0x22a   :  { %4092 = vmatmul.msk.f32.vlgmr.msra.gmra.mxu3 %vm1598_vm12, %v5625_v24  ;;  %4585 = vrot.lane.b32.xlu0 %v4584_v45, %s4920_s14 }
 0x22b   :  { %4590 = vrot.lane.b32.xlu1 %v4589_v25, %s4920_s14 }
 0x231   :  { %2241 = vrot.lane.b32.xlu2 %v6184_v32, %s4924_s4 }
 0x232   :  { %4093 = vmatmul.msk.f32.gmra.mxu3 %vm1598_vm12, %v5668_v23  ;;  %4600 = vrot.lane.b32.xlu0 %v4599_v19, %s4920_s14 }
 0x233   :  { %4605 = vrot.lane.b32.xlu1 %v7618_v55, %s4924_s4 }
 0x239   :  { %2249 = vrot.lane.b32.xlu2 %v6225_v42, %s4924_s4 }
 0x23a   :  { %4094 = vmatmul.msk.f32.gmra.mxu3 %vm1598_vm12, %v5708_v16  ;;  %2243 = vrot.lane.b32.xlu0 %v6186_v31, %s4924_s4  ;;  %v1802_v10 = vpop.f32.mrf.mxu1  ;;  %v1889_v19 = vpop.f32.mrf.mxu0 }
 0x23b   :  { %2247 = vrot.lane.b32.xlu1 %v6218_v26, %s4924_s4 }
 0x241   :  { %2255 = vrot.lane.b32.xlu2 %v6263_v49, %s4924_s4 }
 0x242   :  { %4095 = vmatmul.msk.f32.gmra.mxu3 %vm1598_vm12, %v5748_v48  ;;  %4610 = vrot.lane.b32.xlu0 %v7618_v55, %s4924_s4  ;;  %v6366_v48 = vpop.permute.xlu0 %4565  ;;  %v6402_v50 = vpop.f32.mrf.mxu1 }
 0x243   :  { %2253 = vrot.lane.b32.xlu1 %v6261_v62, %s4924_s4 }
 0x249   :  { %4615 = vrot.lane.b32.xlu2 %v7618_v55, %s4925_s19 }
 0x24a   :  { %2259 = vrot.lane.b32.xlu0 %v6254_v9, %s4924_s4  ;;  %v6423_v61 = vpop.f32.mrf.mxu1 }
 0x24b   :  { %2261 = vrot.lane.b32.xlu1 %v6277_v59, %s4924_s4 }
 0x251   :  { %2327 = vrot.lane.b32.xlu2 %v6218_v26, %s4925_s19 }
 0x252   :  { %2321 = vrot.lane.b32.xlu0 %v6184_v32, %s4925_s19  ;;  %v1811_v58 = vpop.f32.mrf.mxu1 }
 0x253   :  { %2323 = vrot.lane.b32.xlu1 %v6186_v31, %s4925_s19 }
 0x259   :  { %2333 = vrot.lane.b32.xlu2 %v6261_v62, %s4925_s19 }
 0x25a   :  { %2329 = vrot.lane.b32.xlu0 %v6225_v42, %s4925_s19 }
 0x25b   :  { %4620 = vrot.lane.b32.xlu1 %v7618_v55, %s4925_s19 }
 0x261   :  { %2341 = vrot.lane.b32.xlu2 %v6277_v59, %s4925_s19 }
 0x262   :  { %2335 = vrot.lane.b32.xlu0 %v6263_v49, %s4925_s19 }
 0x263   :  { %v6342_v24 = vpop.permute.xlu2 %2091  ;;  %2339 = vrot.lane.b32.xlu1 %v6254_v9, %s4925_s19 }
 0x264   :  { %7631 = vst [vmem:[#allocation14_spill] sm:$0xff] %v6342_v24 }
 0x269   :  { %4625 = vrot.lane.b32.xlu2 %v7618_v55, %s4926_s20 }
 0x26a   :  { %2415 = vrot.lane.b32.xlu0 %v6184_v32, %s4926_s20 }
 0x26b   :  { %v6350_v23 = vpop.permute.xlu2 %4570  ;;  %2417 = vrot.lane.b32.xlu1 %v6186_v31, %s4926_s20 }
 0x271   :  { %2427 = vrot.lane.b32.xlu2 %v6261_v62, %s4926_s20 }
 0x272   :  { %2421 = vrot.lane.b32.xlu0 %v6218_v26, %s4926_s20 }
 0x273   :  { %v6358_v16 = vpop.permute.xlu2 %2107  ;;  %2423 = vrot.lane.b32.xlu1 %v6225_v42, %s4926_s20 }
 0x279   :  { %2433 = vrot.lane.b32.xlu2 %v6254_v9, %s4926_s20 }
 0x27a   :  { %2429 = vrot.lane.b32.xlu0 %v6263_v49, %s4926_s20 }
 0x27b   :  { %v6368_v15 = vpop.permute.xlu1 %2089  ;;  %v6370_v22 = vpop.permute.xlu2 %4580  ;;  %4630 = vrot.lane.b32.xlu1 %v7618_v55, %s4926_s20 }
 0x27c   :  { %7632 = vst [vmem:[#allocation23_spill] sm:$0xff] %v6368_v15 }
 0x281   :  { %2497 = vrot.lane.b32.xlu2 %v6186_v31, %s4927_s21  ;;  %v6384_v6 = vpop.permute.xlu0 %2095 }
 0x282   :  { %2435 = vrot.lane.b32.xlu0 %v6277_v59, %s4926_s20  ;;  %7633 = vst [vmem:[#allocation24_spill] sm:$0xff] %v6384_v6 }
 0x283   :  { %v6378_v52 = vpop.permute.xlu2 %4595  ;;  %2495 = vrot.lane.b32.xlu1 %v6184_v32, %s4927_s21  ;;  %v6386_v11 = vpop.permute.xlu1 %2097 }
 0x284   :  { %7634 = vst [vmem:[#allocation25_spill] sm:$0xff] %v6386_v11  ;;  %v4597_v47 = vunpack.i.l.bf16 %v6378_v52 }
 0x289   :  { %2503 = vrot.lane.b32.xlu2 %v6225_v42, %s4927_s21  ;;  %v1860_v1 = vpop.f32.mrf.mxu2 }
 0x28a   :  { %4635 = vrot.lane.b32.xlu0 %v7618_v55, %s4927_s21 }
 0x28b   :  { %v6390_v0 = vpop.permute.xlu2 %2241  ;;  %2501 = vrot.lane.b32.xlu1 %v6218_v26, %s4927_s21  ;;  %v1831_v57 = vpop.f32.mrf.mxu3 }
 0x28c   :  { %v6396_v35 = vpop.permute.xlu0 %2101 }
 0x28d   :  { %v6398_v46 = vpop.permute.xlu1 %2103 }
 0x291   :  { %4640 = vrot.lane.b32.xlu2 %v7618_v55, %s4927_s21 }
 0x292   :  { %2507 = vrot.lane.b32.xlu0 %v6261_v62, %s4927_s21 }
 0x293   :  { %v6404_v39 = vpop.permute.xlu2 %2249  ;;  %2509 = vrot.lane.b32.xlu1 %v6263_v49, %s4927_s21 }
 0x294   :  { %v6410_v37 = vpop.permute.xlu0 %2109 }
 0x295   :  { %v6412_v18 = vpop.permute.xlu1 %4575  ;;  %v1834_v44 = vpop.f32.mrf.mxu3 }
 0x299   :  { %4645 = vrot.lane.b32.xlu2 %v4644_v53, %s4928_s22  ;;  %v1918_v53 = vpop.f32.mrf.mxu1 }
 0x29a   :  { %2513 = vrot.lane.b32.xlu0 %v6254_v9, %s4927_s21 }
 0x29b   :  { %v6417_v60 = vpop.permute.xlu2 %2255  ;;  %2515 = vrot.lane.b32.xlu1 %v6277_v59, %s4927_s21 }
 0x29c   :  { %v6425_v17 = vpop.permute.xlu0 %4585 }
 0x29d   :  { %v6427_v13 = vpop.permute.xlu1 %4590  ;;  %v6433_v27 = vpop.f32.mrf.mxu3 }
 0x29e   :  { %v7579_v43 = vunpack.i.h.bf16 %v6427_v13 }
 0x2a0   :  { %v6438_v41 = vsel %vm262_vm6, %v7579_v43, %v4597_v47  ;;  %v1832_v43 = vadd.f32 %v1831_v57, %v1802_v10 }
 0x2a1   :  { %4660 = vrot.lane.b32.xlu2 %v4659_v21, %s4928_s22  ;;  %v1863_v21 = vpop.f32.mrf.mxu2 }
 0x2a2   :  { %4650 = vrot.lane.b32.xlu0 %v4649_v30, %s4928_s22 }
 0x2a3   :  { %v6444_v29 = vpop.permute.xlu2 %4615  ;;  %4655 = vrot.lane.b32.xlu1 %v4654_v63, %s4928_s22 }
 0x2a4   :  { %v6450_v28 = vpop.permute.xlu0 %4600 }
 0x2a5   :  { %v6448_v40 = vpop.permute.xlu1 %4605  ;;  %v1840_v8 = vpop.f32.mrf.mxu3 }
 0x2a9   :  { %2647 = vrot.lane.b32.xlu2 %v6184_v32, %s4929_s23  ;;  %v1892_v32 = vpop.f32.mrf.mxu0  ;;  %v1866_v10 = vpop.f32.mrf.mxu2 }
 0x2aa   :  { %4665 = vrot.lane.b32.xlu0 %v4664_v7, %s4928_s22  ;;  %v1919_v7 = vadd.f32 %v1918_v53, %v1889_v19  ;;  %v1835_v53 = vadd.f32 %v1834_v44, %v6402_v50 }
 0x2ab   :  { %v6457_v14 = vpop.permute.xlu2 %2327  ;;  %4670 = vrot.lane.b32.xlu1 %v4669_v3, %s4928_s22 }
 0x2ac   :  { %v6463_v25 = vpop.permute.xlu0 %2243 }
 0x2ad   :  { %v6461_v45 = vpop.permute.xlu1 %2247  ;;  %v1947_v63 = vpop.f32.mrf.mxu3 }
 0x2ae   :  { %v1948_v24 = vadd.f32 %v1947_v63, %v1919_v7 }
 0x2b0   :  { %v1986_v19 = vmul.f32 %v6164_v4, %v1948_v24 }
 0x2b1   :  { %2653 = vrot.lane.b32.xlu2 %v6218_v26, %s4929_s23  ;;  %v1921_v26 = vpop.f32.mrf.mxu1  ;;  %v1895_v24 = vpop.f32.mrf.mxu0 }
 0x2b2   :  { %2649 = vrot.lane.b32.xlu0 %v6186_v31, %s4929_s23  ;;  %v1861_v31 = vadd.f32 %v1860_v1, %v1832_v43  ;;  %v1922_v7 = vadd.f32 %v1921_v26, %v1892_v32  ;;  %v1864_v43 = vadd.f32 %v1863_v21, %v1835_v53  ;;  %v1841_v26 = vadd.f32 %v1840_v8, %v1811_v58 }
 0x2b3   :  { %v6467_v47 = vpop.permute.xlu2 %2333  ;;  %4675 = vrot.lane.b32.xlu1 %v7618_v55, %s4929_s23  ;;  %v1838_v21 = vadd.f32 %v6433_v27, %v6423_v61 }
 0x2b4   :  { %v6475_v3 = vpop.permute.xlu0 %4610  ;;  %v1985_v63 = vmul.f32 %v6164_v4, %v1861_v31 }
 0x2b5   :  { %v6473_v30 = vpop.permute.xlu1 %2253  ;;  %v1950_v57 = vpop.f32.mrf.mxu3  ;;  %v1867_v58 = vadd.f32 %v1866_v10, %v1838_v21 }
 0x2b6   :  { %v2025_v50 = vadd.f32 %v6170_v2, %v1985_v63  ;;  %v1951_v4 = vadd.f32 %v1950_v57, %v1922_v7 }
 0x2b8   :  { %v1990_v53 = vmul.f32 %v6188_v38, %v1951_v4 }
 0x2b9   :  { %2661 = vrot.lane.b32.xlu2 %v6263_v49, %s4929_s23  ;;  %v2026_v49 = vadd.f32 %v6170_v2, %v1986_v19  ;;  %v1924_v1 = vpop.f32.mrf.mxu1  ;;  %v1989_v19 = vmul.f32 %v6188_v38, %v1864_v43  ;;  %v1898_v7 = vpop.f32.mrf.mxu0 }
 0x2ba   :  { %2655 = vrot.lane.b32.xlu0 %v6225_v42, %s4929_s23  ;;  %v1925_v2 = vadd.f32 %v1924_v1, %v1895_v24  ;;  %v2030_v61 = vadd.f32 %v6203_v51, %v1990_v53  ;;  %v1993_v1 = vmul.f32 %v6110_v12, %v1867_v58 }
 0x2bb   :  { %v6479_v15 = vpop.permute.xlu2 %2341  ;;  %2659 = vrot.lane.b32.xlu1 %v6261_v62, %s4929_s23  ;;  %v6506_v44 = vmax.f32 %v2026_v49, 0.0  ;;  %v1869_v62 = vpop.f32.mrf.mxu2  ;;  %v2029_v49 = vadd.f32 %v6203_v51, %v1989_v19 }
 0x2bc   :  { %v6487_v11 = vpop.permute.xlu0 %2259  ;;  %v1870_v57 = vadd.f32 %v1869_v62, %v1841_v26  ;;  %v2033_v53 = vadd.f32 %v6252_v36, %v1993_v1 }
 0x2bd   :  { %v6485_v6 = vpop.permute.xlu1 %2261  ;;  %7635 = vst [vmem:[#allocation26_spill] sm:$0xff] %v6506_v44  ;;  %v6525_v24 = vmax.f32 %v2029_v49, 0.0 }
 0x2be   :  { %v1997_v62 = vmul.f32 %v6229_v5, %v1870_v57 }
 0x2c1   :  { %2667 = vrot.lane.b32.xlu2 %v6277_v59, %s4929_s23  ;;  %v1953_v59 = vpop.f32.mrf.mxu3  ;;  %v1927_v43 = vpop.f32.mrf.mxu1 }
 0x2c2   :  { %4680 = vrot.lane.b32.xlu0 %v7618_v55, %s4929_s23  ;;  %v1954_v27 = vadd.f32 %v1953_v59, %v1925_v2  ;;  %v1928_v26 = vadd.f32 %v1927_v43, %v1898_v7  ;;  %v2037_v59 = vadd.f32 %v6246_v20, %v1997_v62 }
 0x2c3   :  { %v6495_v42 = vpop.permute.xlu2 %4625  ;;  %2665 = vrot.lane.b32.xlu1 %v6254_v9, %s4929_s23  ;;  %v6509_v9 = vmax.f32 %v2025_v50, 0.0  ;;  %v6528_v50 = vmax.f32 %v2030_v61, 0.0 }
 0x2c4   :  { %v6504_v31 = vpop.permute.xlu0 %2321  ;;  %v1994_v4 = vmul.f32 %v6110_v12, %v1954_v27  ;;  %v4618_v27 = vunpack.i.h.bf16 %v6444_v29  ;;  %v6546_v7 = vmax.f32 %v2037_v59, 0.0  ;;  %v4627_v1 = vunpack.i.l.bf16 %v6495_v42 }
 0x2c5   :  { %v6502_v32 = vpop.permute.xlu1 %2323  ;;  %7636 = vst [vmem:[#allocation27_spill] sm:$0xff] %v6528_v50 }
 0x2c6   :  { %v2034_v12 = vadd.f32 %v6252_v36, %v1994_v4  ;;  %v4617_v4 = vunpack.i.l.bf16 %v6444_v29  ;;  %v4612_v29 = vunpack.i.l.bf16 %v6475_v3  ;;  %v2344_v59 = vsel %vm420_vm2, %v6504_v31, %v6502_v32 }
 0x2c7   :  { %v4699_v32 = vpack.i.bf16 0.0, %v6506_v44 }
 0x2c8   :  { %v6556_v43 = vmax.f32 %v2034_v12, 0.0 }
 0x2c9   :  { %2739 = vrot.lane.b32.xlu2 %v6506_v44, %s4923_s18  ;;  %v1956_v51 = vpop.f32.mrf.mxu3 }
 0x2ca   :  { %4685 = vrot.lane.b32.xlu0 %v7618_v55, %s4923_s18  ;;  %v1957_v2 = vadd.f32 %v1956_v51, %v1928_v26  ;;  %7637 = vst [vmem:[#allocation28_spill] sm:$0xff] %v6556_v43  ;;  %v2345_v26 = vsel %vm420_vm2, %v4618_v27, %v6457_v14  ;;  %v4613_v51 = vunpack.i.h.bf16 %v6475_v3  ;;  %v2270_v3 = vsel %vm339_vm4, %v6487_v11, %v6485_v6 }
 0x2cb   :  { %v6516_v63 = vpop.permute.xlu2 %2427  ;;  %2737 = vrot.lane.b32.xlu1 %v6509_v9, %s4923_s18 }
 0x2cc   :  { %v2330_v8 = vpop.permute.xlu0 %2329  ;;  %v1998_v62 = vmul.f32 %v6229_v5, %v1957_v2  ;;  %v4694_v2 = vpack.i.bf16 %v6509_v9, %v7618_v55 }
 0x2cd   :  { %v4621_v38 = vpop.permute.xlu1 %4620  ;;  %v2346_v5 = vsel %vm420_vm2, %v6457_v14, %v2330_v8  ;;  %v2343_v8 = vsel %vm420_vm2, %v4617_v4, %v6504_v31  ;;  %v4608_v31 = vunpack.i.h.bf16 %v6448_v40 }
 0x2ce   :  { %v4623_v19 = vunpack.i.h.bf16 %v4621_v38  ;;  %v4622_v21 = vunpack.i.l.bf16 %v4621_v38  ;;  %v6554_v38 = vmax.f32 %v2033_v53, 0.0  ;;  %v2038_v14 = vadd.f32 %v6246_v20, %v1998_v62 }
 0x2cf   :  { %v2269_v20 = vsel %vm339_vm4, %v4613_v51, %v6487_v11  ;;  %v2267_v11 = vsel %vm339_vm4, %v4612_v29, %v6473_v30  ;;  %v4578_v51 = vunpack.i.h.bf16 %v6412_v18  ;;  %v4577_v29 = vunpack.i.l.bf16 %v6412_v18 }
 0x2d0   :  { %v2347_v36 = vsel %vm420_vm2, %v4622_v21, %v6467_v47  ;;  %v6618_v6 = vmax.f32 %v2038_v14, 0.0  ;;  %v7639_v14 = vunpack.i.h.bf16 %v6427_v13  ;;  %v4582_v18 = vunpack.i.l.bf16 %v6370_v22 }
 0x2d1   :  { %4690 = vrot.lane.b32.xlu2 %v7618_v55, %s4923_s18 }
 0x2d2   :  { %2743 = vrot.lane.b32.xlu0 %v6525_v24, %s4923_s18  ;;  %7638 = vst [vmem:[#allocation29_spill] sm:$0xff] %v6618_v6 }
 0x2d3   :  { %v6534_v10 = vpop.permute.xlu2 %2433  ;;  %2745 = vrot.lane.b32.xlu1 %v6528_v50, %s4923_s18 }
 0x2d4   :  { %v2336_v49 = vpop.permute.xlu0 %2335 }
 0x2d5   :  { %v2340_v57 = vpop.permute.xlu1 %2339 }
 0x2d6   :  { %v2349_v58 = vsel %vm420_vm2, %v4623_v19, %v2340_v57  ;;  %v2350_v61 = vsel %vm420_vm2, %v2340_v57, %v6479_v15  ;;  %v2348_v15 = vsel %vm420_vm2, %v6467_v47, %v2336_v49  ;;  %v4607_v57 = vunpack.i.l.bf16 %v6448_v40 }
 0x2d7   :  { %4208 = vmatpush.msk.msrb.mxu2 %vm5238_vm0, %v2349_v58  ;;  %4232 = vmatpush.msk.msrb.mxu3 %vm5242_vm1, %v2350_v61  ;;  %v2268_v49 = vsel %vm339_vm4, %v6473_v30, %v6417_v60  ;;  %v4603_v58 = vunpack.i.h.bf16 %v6450_v28  ;;  %v4602_v40 = vunpack.i.l.bf16 %v6450_v28  ;;  %v2265_v60 = vsel %vm339_vm4, %v4608_v31, %v6461_v45 }
 0x2d8   :  { %v2266_v61 = vsel %vm339_vm4, %v6461_v45, %v6404_v39  ;;  %v4628_v30 = vunpack.i.h.bf16 %v6495_v42  ;;  %v4598_v28 = vunpack.i.h.bf16 %v6378_v52  ;;  %v2264_v39 = vsel %vm339_vm4, %v6390_v0, %v6463_v25 }
 0x2d9   :  { %2755 = vrot.lane.b32.xlu2 %v6546_v7, %s4923_s18  ;;  %4209 = vmatpush.msk.msrb.mxu2 %vm5238_vm0, %v2347_v36  ;;  %v4592_v36 = vunpack.i.l.bf16 %v6427_v13  ;;  %v4588_v42 = vunpack.i.h.bf16 %v6425_v17  ;;  %v4587_v52 = vunpack.i.l.bf16 %v6425_v17  ;;  %v4568_v31 = vunpack.i.h.bf16 %v6366_v48 }
 0x2da   :  { %4233 = vmatpush.msk.msrb.mxu3 %vm5242_vm1, %v2348_v15  ;;  %2749 = vrot.lane.b32.xlu0 %v6554_v38, %s4923_s18  ;;  %v2263_v15 = vsel %vm339_vm4, %v4607_v57, %v6390_v0  ;;  %v2197_v25 = vsel %vm262_vm6, %v4598_v28, %v4602_v40  ;;  %v2198_v0 = vsel %vm262_vm6, %v4602_v40, %v4603_v58 }
 0x2db   :  { %v6573_v47 = vpop.permute.xlu2 %2497  ;;  %2751 = vrot.lane.b32.xlu1 %v6556_v43, %s4923_s18  ;;  %4210 = vmatpush.msk.msrb.mxu2 %vm5238_vm0, %v2345_v26  ;;  %v4714_v26 = vpack.i.bf16 0.0, %v6556_v43  ;;  %v2195_v17 = vsel %vm262_vm6, %v4592_v36, %v7639_v14  ;;  %v7642_v36 = vld [vmem:[#allocation23_spill] sm:$0xff]  ;;  %v4744_v14 = vpack.i.bf16 %v6556_v43, %v6554_v38 }
 0x2dc   :  { %4234 = vmatpush.msk.msrb.mxu3 %vm5242_vm1, %v2346_v5  ;;  %v2416_v21 = vpop.permute.xlu0 %2415  ;;  %v4583_v5 = vunpack.i.h.bf16 %v6370_v22  ;;  %v2192_v22 = vsel %vm262_vm6, %v4578_v51, %v4582_v18  ;;  %v6793_v18 = vld [vmem:[#allocation9] sm:$0xff] }
 0x2dd   :  { %v2418_v19 = vpop.permute.xlu1 %2417  ;;  %4211 = vmatpush.msk.msrb.mxu2 %vm5238_vm0, %v2343_v8  ;;  %v4709_v8 = vpack.i.bf16 %v6554_v38, %v7618_v55 }
 0x2de   :  { %v6592_v53 = vsel %vm517_vm10, %v2418_v19, %v4627_v1  ;;  %v6595_v12 = vsel %vm517_vm10, %v2416_v21, %v2418_v19  ;;  %4235 = vmatpush.msk.msrb.mxu3 %vm5242_vm1, %v2344_v59  ;;  %v6677_v59 = vpack.i.bf16 %v6528_v50, %v6525_v24  ;;  %v4573_v19 = vunpack.i.h.bf16 %v6350_v23 }
 0x2df   :  { %4212 = vmatpush.msk.msrb.mxu2 %vm5286_vm3, %v2269_v20  ;;  %v2193_v13 = vsel %vm262_vm6, %v4583_v5, %v4587_v52  ;;  %v2194_v20 = vsel %vm262_vm6, %v4587_v52, %v4588_v42 }
 0x2e0   :  { %4236 = vmatpush.msk.msrb.mxu3 %vm5295_vm5, %v2270_v3  ;;  %v2117_v58 = vsel %vm181_vm7, %v4573_v19, %v6358_v16 }
 0x2e1   :  { %4700 = vrot.lane.b32.xlu2 %v4699_v32, %s4920_s14  ;;  %4213 = vmatpush.msk.msrb.mxu2 %vm5286_vm3, %v2267_v11  ;;  %v2191_v32 = vsel %vm262_vm6, %v4577_v29, %v4578_v51  ;;  %v2118_v11 = vsel %vm181_vm7, %v6358_v16, %v6410_v37  ;;  %v4719_v37 = vpack.i.bf16 %v6618_v6, %v6546_v7 }
 0x2e2   :  { %4237 = vmatpush.msk.msrb.mxu3 %vm5295_vm5, %v2268_v49  ;;  %2757 = vrot.lane.b32.xlu0 %v6618_v6, %s4923_s18  ;;  %v4572_v49 = vunpack.i.l.bf16 %v6350_v23  ;;  %v2116_v23 = vsel %vm181_vm7, %v6396_v35, %v6398_v46 }
 0x2e3   :  { %v6634_v27 = vpop.permute.xlu2 %2503  ;;  %4695 = vrot.lane.b32.xlu1 %v4694_v2, %s4920_s14  ;;  %4214 = vmatpush.msk.msrb.mxu2 %vm5286_vm3, %v2265_v60  ;;  %v7641_v60 = vld [vmem:[#allocation24_spill] sm:$0xff] }
 0x2e4   :  { %4238 = vmatpush.msk.msrb.mxu3 %vm5295_vm5, %v2266_v61  ;;  %v2422_v62 = vpop.permute.xlu0 %2421  ;;  %v2115_v16 = vsel %vm181_vm7, %v4572_v49, %v6396_v35  ;;  %v2113_v35 = vsel %vm181_vm7, %v4568_v31, %v7641_v60 }
 0x2e5   :  { %v2424_v45 = vpop.permute.xlu1 %2423  ;;  %4215 = vmatpush.msk.msrb.mxu2 %vm5286_vm3, %v2263_v15 }
 0x2e6   :  { %v6653_v1 = vsel %vm517_vm10, %v2424_v45, %v4628_v30  ;;  %v6656_v4 = vsel %vm517_vm10, %v2422_v62, %v2424_v45  ;;  %4239 = vmatpush.msk.msrb.mxu3 %vm5295_vm5, %v2264_v39  ;;  %v7643_v45 = vld [vmem:[#allocation14_spill] sm:$0xff] }
 0x2e7   :  { %3527 = vmatpush.msrb.mxu2 %v2197_v25  ;;  %v2112_v62 = vsel %vm181_vm7, %v7642_v36, %v7643_v45 }
 0x2e8   :  { %3614 = vmatpush.msrb.mxu3 %v2198_v0 }
 0x2e9   :  { %4715 = vrot.lane.b32.xlu2 %v4714_v26, %s4920_s14  ;;  %3528 = vmatpush.msrb.mxu2 %v2195_v17 }
 0x2ea   :  { %3615 = vmatpush.msrb.mxu3 %v6438_v41  ;;  %4705 = vrot.lane.b32.xlu0 %v6677_v59, %s4920_s14 }
 0x2eb   :  { %v6682_v21 = vpop.permute.xlu2 %4640  ;;  %4710 = vrot.lane.b32.xlu1 %v4709_v8, %s4920_s14  ;;  %3529 = vmatpush.msrb.mxu2 %v2193_v13 }
 0x2ec   :  { %3616 = vmatpush.msrb.mxu3 %v2194_v20  ;;  %v2430_v41 = vpop.permute.xlu0 %2429 }
 0x2ed   :  { %v6689_v3 = vpop.permute.xlu1 %4630  ;;  %v6697_v57 = vsel %vm517_vm10, %v6516_v63, %v2430_v41  ;;  %3530 = vmatpush.msrb.mxu2 %v2191_v32  ;;  %v4567_v63 = vunpack.i.l.bf16 %v6366_v48  ;;  %v7640_v48 = vld [vmem:[#allocation25_spill] sm:$0xff] }
 0x2ee   :  { %v4632_v2 = vunpack.i.l.bf16 %v6689_v3  ;;  %3617 = vmatpush.msrb.mxu3 %v2192_v22  ;;  %v2114_v61 = vsel %vm181_vm7, %v7641_v60, %v7640_v48  ;;  %v6809_v48 = vld [vmem:[#allocation9 + $0x18] sm:$0xff] }
 0x2ef   :  { %4216 = vmatpush.msk.msrb.mxu2 %vm5238_vm0, %v2117_v58  ;;  %v2111_v39 = vsel %vm181_vm7, %v4567_v63, %v7642_v36 }
 0x2f0   :  { %v6706_v40 = vsel %vm517_vm10, %v2430_v41, %v4632_v2  ;;  %4240 = vmatpush.msk.msrb.mxu3 %vm5242_vm1, %v2118_v11 }
 0x2f1   :  { %2889 = vrot.lane.b32.xlu2 %v6509_v9, %s4924_s4  ;;  %4217 = vmatpush.msk.msrb.mxu2 %vm5238_vm0, %v2115_v16 }
 0x2f2   :  { %4241 = vmatpush.msk.msrb.mxu3 %vm5242_vm1, %v2116_v23  ;;  %4720 = vrot.lane.b32.xlu0 %v4719_v37, %s4920_s14 }
 0x2f3   :  { %v6729_v46 = vpop.permute.xlu2 %4645  ;;  %4725 = vrot.lane.b32.xlu1 %v7618_v55, %s4924_s4  ;;  %4218 = vmatpush.msk.msrb.mxu2 %vm5238_vm0, %v2113_v35 }
 0x2f4   :  { %4242 = vmatpush.msk.msrb.mxu3 %vm5242_vm1, %v2114_v61  ;;  %v6742_v28 = vpop.permute.xlu0 %2435  ;;  %v4648_v60 = vunpack.i.h.bf16 %v6729_v46  ;;  %v4647_v61 = vunpack.i.l.bf16 %v6729_v46 }
 0x2f5   :  { %v6740_v30 = vpop.permute.xlu1 %2495  ;;  %4219 = vmatpush.msk.msrb.mxu2 %vm5238_vm0, %v2111_v39 }
 0x2f6   :  { %4243 = vmatpush.msk.msrb.mxu3 %vm5242_vm1, %v2112_v62  ;;  %3535 = vmatmul.f32.vlgmr.msrb.gmra.mxu2 %v6793_v18 }
 0x2f7   :  { %3622 = vmatmul.f32.vlgmr.msrb.gmra.mxu3 %v6793_v18 }
 0x2f9   :  { %2897 = vrot.lane.b32.xlu2 %v6528_v50, %s4924_s4 }
 0x2fa   :  { %2891 = vrot.lane.b32.xlu0 %v6506_v44, %s4924_s4 }
 0x2fb   :  { %v4661_v15 = vpop.permute.xlu2 %4660  ;;  %2895 = vrot.lane.b32.xlu1 %v6525_v24, %s4924_s4 }
 0x2fc   :  { %v6761_v52 = vpop.permute.xlu0 %4635  ;;  %v4663_v2 = vunpack.i.h.bf16 %v4661_v15  ;;  %v4662_v49 = vunpack.i.l.bf16 %v4661_v15 }
 0x2fd   :  { %v6759_v42 = vpop.permute.xlu1 %2501 }
 0x2fe   :  { %v2603_v39 = vsel %vm679_vm8, %v4662_v49, %v4663_v2  ;;  %3538 = vmatmul.f32.gmra.mxu2 %v6809_v48 }
 0x2ff   :  { %3625 = vmatmul.f32.gmra.mxu3 %v6809_v48 }
 0x301   :  { %2903 = vrot.lane.b32.xlu2 %v6556_v43, %s4924_s4 }
 0x302   :  { %4730 = vrot.lane.b32.xlu0 %v7618_v55, %s4924_s4 }
 0x303   :  { %v6765_v25 = vpop.permute.xlu2 %2647  ;;  %2901 = vrot.lane.b32.xlu1 %v6554_v38, %s4924_s4 }
 0x304   :  { %v6773_v26 = vpop.permute.xlu0 %2507 }
 0x305   :  { %v6771_v0 = vpop.permute.xlu1 %2509 }
 0x309   :  { %4735 = vrot.lane.b32.xlu2 %v7618_v55, %s4925_s19 }
 0x30a   :  { %2907 = vrot.lane.b32.xlu0 %v6546_v7, %s4924_s4 }
 0x30b   :  { %v6777_v5 = vpop.permute.xlu2 %2653  ;;  %2909 = vrot.lane.b32.xlu1 %v6618_v6, %s4924_s4 }
 0x30c   :  { %v2514_v29 = vpop.permute.xlu0 %2513 }
 0x30d   :  { %v2516_v51 = vpop.permute.xlu1 %2515 }
 0x311   :  { %4745 = vrot.lane.b32.xlu2 %v4744_v14, %s4928_s22 }
 0x312   :  { %2969 = vrot.lane.b32.xlu0 %v6509_v9, %s4925_s19 }
 0x313   :  { %v6786_v17 = vpop.permute.xlu2 %2661  ;;  %4740 = vrot.lane.b32.xlu1 %v4719_v37, %s4928_s22 }
 0x314   :  { %v4651_v19 = vpop.permute.xlu0 %4650 }
 0x315   :  { %v4656_v8 = vpop.permute.xlu1 %4655  ;;  %v4653_v37 = vunpack.i.h.bf16 %v4651_v19  ;;  %v4652_v35 = vunpack.i.l.bf16 %v4651_v19  ;;  %v4642_v19 = vunpack.i.l.bf16 %v6682_v21 }
 0x316   :  { %v4658_v23 = vunpack.i.h.bf16 %v4656_v8  ;;  %v4657_v16 = vunpack.i.l.bf16 %v4656_v8  ;;  %v4643_v8 = vunpack.i.h.bf16 %v6682_v21  ;;  %v6841_v21 = vld [vmem:[#allocation9 + $0x30] sm:$0xff] }
 0x317   :  { %v2524_v49 = vsel %vm598_vm9, %v6771_v0, %v4642_v19  ;;  %3541 = vmatmul.f32.gmra.mxu2 %v6841_v21  ;;  %3628 = vmatmul.f32.gmra.mxu3 %v6841_v21  ;;  %v6964_v19 = vld [vmem:[#allocation9 + $0x8] sm:$0xff] }
 0x318   :  { %v2601_v46 = vsel %vm679_vm8, %v4653_v37, %v4657_v16  ;;  %v2602_v14 = vsel %vm679_vm8, %v4657_v16, %v4658_v23  ;;  %v2445_v23 = vsel %vm517_vm10, %v6534_v10, %v6742_v28 }
 0x319   :  { %4755 = vrot.lane.b32.xlu2 %v7618_v55, %s4925_s19 }
 0x31a   :  { %2987 = vrot.lane.b32.xlu0 %v6546_v7, %s4925_s19 }
 0x31b   :  { %v6797_v13 = vpop.permute.xlu2 %2667  ;;  %4750 = vrot.lane.b32.xlu1 %v6677_v59, %s4928_s22  ;;  %v4759_v59 = vpack.i.bf16 %v6506_v44, %v6509_v9 }
 0x31c   :  { %v4666_v41 = vpop.permute.xlu0 %4665 }
 0x31d   :  { %v4671_v20 = vpop.permute.xlu1 %4670  ;;  %v4668_v31 = vunpack.i.h.bf16 %v4666_v41  ;;  %v4667_v11 = vunpack.i.l.bf16 %v4666_v41  ;;  %v2600_v41 = vsel %vm679_vm8, %v4648_v60, %v4652_v35 }
 0x31e   :  { %v4673_v32 = vunpack.i.h.bf16 %v4671_v20  ;;  %v4672_v22 = vunpack.i.l.bf16 %v4671_v20  ;;  %v2599_v20 = vsel %vm679_vm8, %v4647_v61, %v4648_v60 }
 0x31f   :  { %v2604_v45 = vsel %vm679_vm8, %v4663_v2, %v4667_v11  ;;  %v4637_v2 = vunpack.i.l.bf16 %v6761_v52 }
 0x320   :  { %v2605_v58 = vsel %vm679_vm8, %v4668_v31, %v4672_v22  ;;  %v2606_v63 = vsel %vm679_vm8, %v4672_v22, %v4673_v32  ;;  %v4638_v32 = vunpack.i.h.bf16 %v6761_v52  ;;  %v2526_v22 = vsel %vm598_vm9, %v2516_v51, %v4643_v8  ;;  %v7651_v8 = vld [vmem:[#allocation18_spill] sm:$0xff] }
 0x321   :  { %2975 = vrot.lane.b32.xlu2 %v6525_v24, %s4925_s19  ;;  %3548 = vmatpush.msrb.mxu0 %v2605_v58  ;;  %v2525_v31 = vsel %vm598_vm9, %v2514_v29, %v2516_v51  ;;  %v2523_v51 = vsel %vm598_vm9, %v6773_v26, %v6771_v0  ;;  %v2521_v52 = vsel %vm598_vm9, %v6759_v42, %v6634_v27  ;;  %v4633_v58 = vunpack.i.h.bf16 %v6689_v3 }
 0x322   :  { %3635 = vmatpush.msra.mxu2 %v2606_v63  ;;  %2981 = vrot.lane.b32.xlu0 %v6554_v38, %s4925_s19  ;;  %v2522_v26 = vsel %vm598_vm9, %v6634_v27, %v4638_v32  ;;  %v2519_v42 = vsel %vm598_vm9, %v6740_v30, %v6573_v47  ;;  %v2520_v63 = vsel %vm598_vm9, %v6573_v47, %v4637_v2  ;;  %v6894_v47 = vld [vmem:[#allocation9 + $0x48] sm:$0xff] }
 0x323   :  { %v6814_v36 = vpop.permute.xlu2 %2739  ;;  %4760 = vrot.lane.b32.xlu1 %v4759_v59, %s4928_s22  ;;  %3549 = vmatpush.msrb.mxu0 %v2603_v39  ;;  %v2446_v3 = vsel %vm517_vm10, %v6742_v28, %v4633_v58 }
 0x324   :  { %3636 = vmatpush.msra.mxu2 %v2604_v45  ;;  %v6823_v15 = vpop.permute.xlu0 %2649  ;;  %3631 = vmatmul.f32.gmra.mxu3 %v6894_v47 }
 0x325   :  { %v6821_v62 = vpop.permute.xlu1 %4675  ;;  %3550 = vmatpush.msrb.mxu0 %v2601_v46  ;;  %3544 = vmatmul.f32.gmra.mxu2 %v6894_v47  ;;  %v2671_v60 = vsel %vm752_vm11, %v6765_v25, %v6823_v15 }
 0x326   :  { %3637 = vmatpush.msra.mxu2 %v2602_v14  ;;  %v7650_v14 = vld [vmem:[#allocation17_spill] sm:$0xff]  ;;  %v4677_v2 = vunpack.i.l.bf16 %v6821_v62 }
 0x327   :  { %3551 = vmatpush.msrb.mxu0 %v2599_v20  ;;  %v7652_v20 = vld [vmem:[#allocation15_spill] sm:$0xff] }
 0x328   :  { %3638 = vmatpush.msra.mxu2 %v2600_v41 }
 0x329   :  { %3155 = vrot.lane.b32.xlu2 %v6554_v38, %s4927_s21  ;;  %4220 = vmatpush.msk.msrb.mxu0 %vm5238_vm0, %v2525_v31  ;;  %v4678_v31 = vunpack.i.h.bf16 %v6821_v62 }
 0x32a   :  { %4244 = vmatpush.msk.msra.mxu2 %vm5242_vm1, %v2526_v22  ;;  %3161 = vrot.lane.b32.xlu0 %v6546_v7, %s4927_s21 }
 0x32b   :  { %v6849_v29 = vpop.permute.xlu2 %4690  ;;  %3163 = vrot.lane.b32.xlu1 %v6618_v6, %s4927_s21  ;;  %4221 = vmatpush.msk.msrb.mxu0 %vm5238_vm0, %v2523_v51 }
 0x32c   :  { %4245 = vmatpush.msk.msra.mxu2 %vm5242_vm1, %v2524_v49  ;;  %v6862_v0 = vpop.permute.xlu0 %2655  ;;  %v4693_v27 = vunpack.i.h.bf16 %v6849_v29 }
 0x32d   :  { %v2660_v11 = vpop.permute.xlu1 %2659  ;;  %4222 = vmatpush.msk.msrb.mxu0 %vm5238_vm0, %v2521_v52 }
 0x32e   :  { %4246 = vmatpush.msk.msra.mxu2 %vm5242_vm1, %v2522_v26  ;;  %v2674_v26 = vsel %vm752_vm11, %v6862_v0, %v4678_v31 }
 0x32f   :  { %4223 = vmatpush.msk.msrb.mxu0 %vm5238_vm0, %v2519_v42  ;;  %v2672_v42 = vsel %vm752_vm11, %v6823_v15, %v4677_v2  ;;  %v7024_v15 = vld [vmem:[#allocation9 + $0x40] sm:$0xff] }
 0x330   :  { %4247 = vmatpush.msk.msra.mxu2 %vm5242_vm1, %v2520_v63  ;;  %v4692_v63 = vunpack.i.l.bf16 %v6849_v29 }
 0x331   :  { %3151 = vrot.lane.b32.xlu2 %v6528_v50, %s4927_s21  ;;  %4224 = vmatpush.msk.msrb.mxu0 %vm5286_vm3, %v2445_v23 }
 0x332   :  { %4248 = vmatpush.msk.msra.mxu2 %vm5295_vm5, %v2446_v3  ;;  %3157 = vrot.lane.b32.xlu0 %v6556_v43, %s4927_s21 }
 0x333   :  { %v6896_v30 = vpop.permute.xlu2 %2755  ;;  %3149 = vrot.lane.b32.xlu1 %v6525_v24, %s4927_s21  ;;  %4225 = vmatpush.msk.msrb.mxu0 %vm5286_vm3, %v6697_v57  ;;  %v2675_v57 = vsel %vm752_vm11, %v2660_v11, %v6786_v17 }
 0x334   :  { %v6904_v10 = vsel %vm181_vm7, %v4693_v27, %v6896_v30  ;;  %4249 = vmatpush.msk.msra.mxu2 %vm5295_vm5, %v6706_v40  ;;  %v4681_v16 = vpop.permute.xlu0 %4680  ;;  %v2673_v40 = vsel %vm752_vm11, %v6777_v5, %v6862_v0  ;;  %v7648_v5 = vld [vmem:[#allocation21_spill] sm:$0xff] }
 0x335   :  { %v2666_v28 = vpop.permute.xlu1 %2665  ;;  %4226 = vmatpush.msk.msrb.mxu0 %vm5286_vm3, %v6656_v4  ;;  %v7645_v4 = vld [vmem:[#allocation22_spill] sm:$0xff]  ;;  %v4683_v39 = vunpack.i.h.bf16 %v4681_v16  ;;  %v4682_v25 = vunpack.i.l.bf16 %v4681_v16  ;;  %v7032_v16 = vld [vmem:[#allocation9 + $0x38] sm:$0xff] }
 0x336   :  { %v2677_v37 = vsel %vm752_vm11, %v2666_v28, %v6797_v13  ;;  %4250 = vmatpush.msk.msra.mxu2 %vm5295_vm5, %v6653_v1  ;;  %v7644_v1 = vld [vmem:[#allocation19_spill] sm:$0xff] }
 0x337   :  { %4228 = vmatpush.msk.msrb.mxu1 %vm5286_vm3, %v2677_v37  ;;  %4227 = vmatpush.msk.msrb.mxu0 %vm5286_vm3, %v6595_v12  ;;  %v6950_v12 = vld [vmem:[#allocation9 + $0x10] sm:$0xff]  ;;  %v2678_v32 = vsel %vm752_vm11, %v6797_v13, %v4683_v39  ;;  %v2676_v51 = vsel %vm752_vm11, %v6786_v17, %v4682_v25  ;;  %v6991_v13 = vld [vmem:[#allocation9 + $0x28] sm:$0xff]  ;;  %v7005_v17 = vld [vmem:[#allocation9 + $0x20] sm:$0xff]  ;;  %7656 = vst [vmem:[#allocation19_spill] sm:$0xff] %v7024_v15 }
 0x338   :  { %4251 = vmatpush.msk.msra.mxu2 %vm5295_vm5, %v6592_v53  ;;  %v7646_v53 = vld [vmem:[#allocation20_spill] sm:$0xff]  ;;  %7647 = vst [vmem:[#allocation25_spill] sm:$0xff] %v6950_v12 }
 0x339   :  { %3081 = vrot.lane.b32.xlu2 %v6546_v7, %s4926_s20  ;;  %4229 = vmatpush.msk.msrb.mxu1 %vm5286_vm3, %v2675_v57  ;;  %7654 = vst [vmem:[#allocation23_spill] sm:$0xff] %v6991_v13 }
 0x33a   :  { %3560 = vmatpush.msrb.mxu0 %v7644_v1  ;;  %3647 = vmatpush.msra.mxu2 %v7645_v4 }
 0x33b   :  { %v6941_v59 = vpop.permute.xlu2 %4700  ;;  %3145 = vrot.lane.b32.xlu1 %v6506_v44, %s4927_s21  ;;  %3143 = vrot.lane.b32.xlu0 %v6509_v9, %s4927_s21 }
 0x33c   :  { %3561 = vmatpush.msrb.mxu0 %v7646_v53  ;;  %4230 = vmatpush.msk.msrb.mxu1 %vm5286_vm3, %v2673_v40  ;;  %v4686_v35 = vpop.permute.xlu0 %4685  ;;  %v4702_v1 = vunpack.i.l.bf16 %v6941_v59  ;;  %v7052_v53 = vld [vmem:[#allocation9 + $0x50] sm:$0xff] }
 0x33d   :  { %3648 = vmatpush.msra.mxu2 %v7648_v5  ;;  %v2738_v61 = vpop.permute.xlu1 %2737  ;;  %v4687_v46 = vunpack.i.l.bf16 %v4686_v35  ;;  %v4688_v49 = vunpack.i.h.bf16 %v4686_v35  ;;  %7659 = vst [vmem:[#allocation21_spill] sm:$0xff] %v7052_v53  ;;  %v4703_v35 = vunpack.i.h.bf16 %v6941_v59 }
 0x33e   :  { %v6958_v45 = vsel %vm181_vm7, %v2738_v61, %v6814_v36  ;;  %3562 = vmatpush.msrb.mxu0 %v7650_v14  ;;  %4231 = vmatpush.msk.msrb.mxu1 %vm5286_vm3, %v2671_v60  ;;  %v7653_v36 = vld [vmem:[#allocation16_spill] sm:$0xff] }
 0x33f   :  { %7649 = vst [vmem:[#allocation24_spill] sm:$0xff] %v6958_v45  ;;  %3649 = vmatpush.msra.mxu2 %v7651_v8  ;;  %4096 = vmatmul.msk.f32.vlgmr.msrb.gmra.mxu1 %vm1598_vm12, %v6950_v12  ;;  %v6970_v41 = vsel %vm181_vm7, %v4687_v46, %v2738_v61 }
 0x340   :  { %3563 = vmatpush.msrb.mxu0 %v7652_v20 }
 0x341   :  { %3650 = vmatpush.msra.mxu2 %v7653_v36  ;;  %3077 = vrot.lane.b32.xlu2 %v6556_v43, %s4926_s20 }
 0x342   :  { %3564 = vmatmul.f32.vlgmr.msrb.gmra.mxu0 %v6964_v19  ;;  %3651 = vmatmul.f32.vlgmr.msra.gmra.mxu2 %v6964_v19 }
 0x343   :  { %4252 = vmatpush.msk.msra.mxu0 %vm5295_vm5, %v2678_v32  ;;  %v6981_v22 = vpop.permute.xlu2 %4715  ;;  %3075 = vrot.lane.b32.xlu1 %v6554_v38, %s4926_s20  ;;  %v7099_v32 = vld [vmem:[#allocation9 + $0x58] sm:$0xff] }
 0x344   :  { %3083 = vrot.lane.b32.xlu0 %v6618_v6, %s4926_s20  ;;  %v2744_v11 = vpop.permute.xlu0 %2743  ;;  %v4717_v39 = vunpack.i.l.bf16 %v6981_v22  ;;  %7661 = vst [vmem:[#allocation18_spill] sm:$0xff] %v7099_v32 }
 0x345   :  { %4253 = vmatpush.msk.msra.mxu0 %vm5295_vm5, %v2676_v51  ;;  %v2746_v52 = vpop.permute.xlu1 %2745  ;;  %v6998_v58 = vsel %vm181_vm7, %v4688_v49, %v2744_v11 }
 0x346   :  { %v7001_v62 = vsel %vm181_vm7, %v2744_v11, %v2746_v52 }
 0x347   :  { %7655 = vst [vmem:[#allocation14_spill] sm:$0xff] %v7001_v62  ;;  %4254 = vmatpush.msk.msra.mxu0 %vm5295_vm5, %v2674_v26  ;;  %4097 = vmatmul.msk.f32.gmra.mxu1 %vm1598_vm12, %v6991_v13 }
 0x349   :  { %4255 = vmatpush.msk.msra.mxu0 %vm5295_vm5, %v2672_v42  ;;  %3063 = vrot.lane.b32.xlu2 %v6509_v9, %s4926_s20 }
 0x34a   :  { %3567 = vmatmul.f32.gmra.mxu0 %v7005_v17  ;;  %3654 = vmatmul.f32.gmra.mxu2 %v7005_v17 }
 0x34b   :  { %v7017_v0 = vpop.permute.xlu2 %2889  ;;  %3071 = vrot.lane.b32.xlu1 %v6528_v50, %s4926_s20 }
 0x34c   :  { %3069 = vrot.lane.b32.xlu0 %v6525_v24, %s4926_s20  ;;  %v2750_v23 = vpop.permute.xlu0 %2749 }
 0x34d   :  { %v2752_v27 = vpop.permute.xlu1 %2751  ;;  %v7027_v3 = vsel %vm181_vm7, %v4692_v63, %v2750_v23 }
 0x34e   :  { %v7030_v28 = vsel %vm181_vm7, %v2750_v23, %v2752_v27 }
 0x34f   :  { %7657 = vst [vmem:[#allocation22_spill] sm:$0xff] %v7030_v28  ;;  %4098 = vmatmul.msk.f32.gmra.mxu1 %vm1598_vm12, %v7024_v15 }
 0x351   :  { %4765 = vrot.lane.b32.xlu2 %v7618_v55, %s4928_s22 }
 0x352   :  { %3570 = vmatmul.f32.gmra.mxu0 %v7032_v16  ;;  %3657 = vmatmul.f32.gmra.mxu2 %v7032_v16 }
 0x353   :  { %v2898_v29 = vpop.permute.xlu2 %2897  ;;  %2989 = vrot.lane.b32.xlu1 %v6618_v6, %s4925_s19 }
 0x354   :  { %3065 = vrot.lane.b32.xlu0 %v6506_v44, %s4926_s20  ;;  %v2758_v57 = vpop.permute.xlu0 %2757 }
 0x355   :  { %v7044_v37 = vpop.permute.xlu1 %4695  ;;  %v7050_v40 = vsel %vm181_vm7, %v6896_v30, %v2758_v57 }
 0x356   :  { %v7591_v4 = vunpack.i.h.bf16 %v7044_v37  ;;  %7658 = vst [vmem:[#allocation20_spill] sm:$0xff] %v7050_v40  ;;  %v7241_v40 = vld [vmem:[%s7571_s6 + $0x18] sm:$0xff] }
 0x357   :  { %4099 = vmatmul.msk.f32.gmra.mxu1 %vm1598_vm12, %v7099_v32 }
 0x358   :  { %v7057_v60 = vsel %vm262_vm6, %v7591_v4, %v4702_v1  ;;  %v7171_v4 = vld [vmem:[%s7570_s5 + $0x10] sm:$0xff] }
 0x359   :  { %7660 = vst [vmem:[#allocation17_spill] sm:$0xff] %v7057_v60  ;;  %4770 = vrot.lane.b32.xlu2 %v7618_v55, %s4928_s22 }
 0x35a   :  { %3573 = vmatmul.f32.gmra.mxu0 %v7052_v53  ;;  %3660 = vmatmul.f32.gmra.mxu2 %v7052_v53 }
 0x35b   :  { %v2904_v5 = vpop.permute.xlu2 %2903  ;;  %2977 = vrot.lane.b32.xlu1 %v6528_v50, %s4925_s19 }
 0x35c   :  { %2983 = vrot.lane.b32.xlu0 %v6556_v43, %s4925_s19  ;;  %v7069_v61 = vpop.permute.xlu0 %4705 }
 0x35d   :  { %v7067_v30 = vpop.permute.xlu1 %4710  ;;  %v7590_v14 = vunpack.i.l.bf16 %v7069_v61 }
 0x35e   :  { %v7592_v46 = vunpack.i.h.bf16 %v7067_v30 }
 0x35f   :  { %v7078_v8 = vsel %vm262_vm6, %v4703_v35, %v7590_v14 }
 0x360   :  { %v7083_v25 = vsel %vm262_vm6, %v7592_v46, %v4717_v39  ;;  %v7179_v46 = vld [vmem:[%s7570_s5 + $0x8] sm:$0xff]  ;;  %v3875_v39 = vld [vmem:[%s7570_s5] sm:$0xff] }
 0x361   :  { %4780 = vrot.lane.b32.xlu2 %v7618_v55, %s4927_s21 }
 0x362   :  { %4100 = vmatmul.msk.f32.vlgmr.msra.gmra.mxu0 %vm1598_vm12, %v6950_v12 }
 0x363   :  { %v7089_v59 = vpop.permute.xlu2 %4735  ;;  %4775 = vrot.lane.b32.xlu1 %v7618_v55, %s4927_s21 }
 0x364   :  { %2971 = vrot.lane.b32.xlu0 %v6506_v44, %s4925_s19  ;;  %v7097_v36 = vpop.permute.xlu0 %4720 }
 0x365   :  { %v7095_v20 = vpop.permute.xlu1 %4725 }
 0x369   :  { %3313 = vrot.lane.b32.xlu2 %v6546_v7, %s4929_s23 }
 0x36a   :  { %4101 = vmatmul.msk.f32.gmra.mxu0 %vm1598_vm12, %v6991_v13 }
 0x36b   :  { %v7107_v31 = vpop.permute.xlu2 %4745  ;;  %4790 = vrot.lane.b32.xlu1 %v7618_v55, %s4926_s20 }
 0x36c   :  { %4785 = vrot.lane.b32.xlu0 %v7618_v55, %s4926_s20  ;;  %v2892_v49 = vpop.permute.xlu0 %2891 }
 0x36d   :  { %v7113_v2 = vpop.permute.xlu1 %2895  ;;  %v7121_v52 = vsel %vm339_vm4, %v7017_v0, %v2892_v49  ;;  %v4747_v49 = vunpack.i.l.bf16 %v7107_v31 }
 0x36e   :  { %v7117_v51 = vsel %vm339_vm4, %v7113_v2, %v2898_v29 }
 0x371   :  { %3307 = vrot.lane.b32.xlu2 %v6554_v38, %s4929_s23 }
 0x372   :  { %4102 = vmatmul.msk.f32.gmra.mxu0 %vm1598_vm12, %v7024_v15 }
 0x373   :  { %v4756_v11 = vpop.permute.xlu2 %4755  ;;  %4795 = vrot.lane.b32.xlu1 %v7618_v55, %s4929_s23 }
 0x374   :  { %3315 = vrot.lane.b32.xlu0 %v6618_v6, %s4929_s23  ;;  %v7133_v42 = vpop.permute.xlu0 %4730  ;;  %v4757_v62 = vunpack.i.l.bf16 %v4756_v11  ;;  %v4737_v6 = vunpack.i.l.bf16 %v7089_v59 }
 0x375   :  { %v7131_v26 = vpop.permute.xlu1 %2901 }
 0x376   :  { %v7137_v63 = vsel %vm339_vm4, %v7131_v26, %v2904_v5 }
 0x379   :  { %3303 = vrot.lane.b32.xlu2 %v6528_v50, %s4929_s23 }
 0x37a   :  { %4103 = vmatmul.msk.f32.gmra.mxu0 %vm1598_vm12, %v7099_v32  ;;  %v7662_v32 = vunpack.i.h.bf16 %v7107_v31 }
 0x37b   :  { %v7143_v27 = vpop.permute.xlu2 %2975  ;;  %3301 = vrot.lane.b32.xlu1 %v6525_v24, %s4929_s23 }
 0x37c   :  { %3309 = vrot.lane.b32.xlu0 %v6556_v43, %s4929_s23  ;;  %v2908_v29 = vpop.permute.xlu0 %2907  ;;  %v3251_v15 = vsel %vm679_vm8, %v4747_v49, %v7662_v32  ;;  %v7203_v32 = vld [vmem:[%s7571_s6 + $0x8] sm:$0xff]  ;;  %v7213_v49 = vld [vmem:[%s7571_s6] sm:$0xff] }
 0x37d   :  { %v2910_v23 = vpop.permute.xlu1 %2909 }
 0x37e   :  { %v7150_v57 = vsel %vm339_vm4, %v2908_v29, %v2910_v23 }
 0x381   :  { %3297 = vrot.lane.b32.xlu2 %v6506_v44, %s4929_s23 }
 0x383   :  { %v7154_v1 = vpop.permute.xlu2 %3155  ;;  %3295 = vrot.lane.b32.xlu1 %v6509_v9, %s4929_s23 }
 0x384   :  { %4800 = vrot.lane.b32.xlu0 %v7618_v55, %s4929_s23  ;;  %v7162_v35 = vpop.permute.xlu0 %2969 }
 0x385   :  { %v7160_v5 = vpop.permute.xlu1 %4740 }
 0x386   :  { %v7599_v23 = vunpack.i.h.bf16 %v7160_v5  ;;  %v4742_v14 = vunpack.i.l.bf16 %v7160_v5 }
 0x388   :  { %v3253_v55 = vsel %vm679_vm8, %v4742_v14, %v7599_v23  ;;  %v4738_v14 = vunpack.i.h.bf16 %v7089_v59  ;;  %v4733_v59 = vunpack.i.h.bf16 %v7133_v42 }
 0x389   :  { %3891 = vperm.xlu2 %4563, %v7171_v4   ;;  %3722 = vmatpush.msra.mxu3 %v3253_v55 }
 0x38b   :  { %v7188_v13 = vpop.permute.xlu2 %3151  ;;  %3886 = vperm.xlu1 %4562, %v7179_v46   ;;  %3723 = vmatpush.msra.mxu3 %v3251_v15 }
 0x38c   :  { %3881 = vperm.xlu0 %4561, %v3875_v39   ;;  %v7194_v12 = vpop.permute.xlu0 %2987 }
 0x38d   :  { %v7192_v23 = vpop.permute.xlu1 %4750  ;;  %v2997_v45 = vsel %vm420_vm2, %v4738_v14, %v7194_v12  ;;  %v3878_v14 = vld [vmem:[%s7570_s5 + $0x18] sm:$0xff] }
 0x38e   :  { %v7604_v55 = vunpack.i.h.bf16 %v7192_v23  ;;  %v4752_v44 = vunpack.i.l.bf16 %v7192_v23  ;;  %4256 = vmatpush.msk.msra.mxu1 %vm5238_vm0, %v2997_v45  ;;  %v4758_v45 = vunpack.i.h.bf16 %v4756_v11 }
 0x390   :  { %v3249_v15 = vsel %vm679_vm8, %v4752_v44, %v7604_v55  ;;  %v2993_v11 = vsel %vm420_vm2, %v4758_v45, %v7143_v27  ;;  %v4732_v45 = vunpack.i.l.bf16 %v7133_v42  ;;  %v4728_v42 = vunpack.i.h.bf16 %v7095_v20 }
 0x391   :  { %3918 = vperm.xlu2 %4563, %v7203_v32   ;;  %3724 = vmatpush.msra.mxu3 %v3249_v15 }
 0x392   :  { %v2915_v60 = vsel %vm339_vm4, %v4732_v45, %v7131_v26  ;;  %v4697_v45 = vunpack.i.l.bf16 %v7044_v37 }
 0x393   :  { %v7219_v50 = vpop.permute.xlu2 %3081  ;;  %3913 = vperm.xlu1 %4562, %v7213_v49  }
 0x394   :  { %3896 = vperm.xlu0 %4561, %v3878_v14   ;;  %v7224_v55 = vpop.permute.xlu0 %2981 }
 0x395   :  { %v7222_v44 = vpop.permute.xlu1 %4760  ;;  %v2995_v15 = vsel %vm420_vm2, %v4757_v62, %v7224_v55  ;;  %v3909_v62 = vld [vmem:[%s7571_s6 + $0x10] sm:$0xff]  ;;  %s4931_s6 = smov [#allocation10]  }
 0x396   :  { %v7609_v43 = vunpack.i.h.bf16 %v7222_v44  ;;  %v4762_v28 = vunpack.i.l.bf16 %v7222_v44  ;;  %4257 = vmatpush.msk.msra.mxu1 %vm5238_vm0, %v2995_v15  ;;  %s4064_s29 = sshll.u32 %s4931_s6, 4  ;;  %s4065_s29 = int_to_ptr.vmem [resolvable:$true] %s4064_s29 }
 0x398   :  { %v3247_v53 = vsel %vm679_vm8, %v4762_v28, %v7609_v43  ;;  %4258 = vmatpush.msk.msra.mxu1 %vm5238_vm0, %v2993_v11  ;;  %v2991_v28 = vsel %vm420_vm2, %v4737_v6, %v7162_v35  ;;  %v4727_v6 = vunpack.i.l.bf16 %v7095_v20  ;;  %v4712_v20 = vunpack.i.l.bf16 %v7067_v30 }
 0x399   :  { %3977 = vperm.xlu2 %4563, %v3875_v39   ;;  %3725 = vmatpush.msra.mxu3 %v3247_v53  ;;  %v2917_v39 = vsel %vm339_vm4, %v4733_v59, %v2908_v29  ;;  %v4722_v29 = vunpack.i.l.bf16 %v7097_v36  ;;  %v2913_v59 = vsel %vm339_vm4, %v4728_v42, %v7113_v2 }
 0x39a   :  { %4259 = vmatpush.msk.msra.mxu1 %vm5238_vm0, %v2991_v28  ;;  %v2911_v26 = vsel %vm339_vm4, %v4727_v6, %v7017_v0 }
 0x39b   :  { %v7252_v15 = vpop.permute.xlu2 %3077  ;;  %3928 = vperm.xlu1 %4562, %v7241_v40  }
 0x39c   :  { %3923 = vperm.xlu0 %4561, %v3909_v62   ;;  %v3162_v43 = vpop.permute.xlu0 %3161  ;;  %4260 = vmatpush.msk.msra.mxu1 %vm5286_vm3, %v2917_v39  ;;  %v7664_v39 = vunpack.i.h.bf16 %v7044_v37 }
 0x39d   :  { %v7258_v11 = vpop.permute.xlu1 %3163 }
 0x39e   :  { %v3173_v53 = vsel %vm598_vm9, %v3162_v43, %v7258_v11  ;;  %4261 = vmatpush.msk.msra.mxu1 %vm5286_vm3, %v2915_v60  ;;  %v4718_v43 = vunpack.i.h.bf16 %v6981_v22 }
 0x39f   :  { %4268 = vmatpush.msk.msra.mxu3 %vm5238_vm0, %v3173_v53 }
 0x3a0   :  { %4262 = vmatpush.msk.msra.mxu1 %vm5286_vm3, %v2913_v59  ;;  %v2845_v2 = vsel %vm262_vm6, %v4718_v43, %v4722_v29  ;;  %v7666_v43 = vunpack.i.h.bf16 %v7107_v31 }
 0x3a1   :  { %3992 = vperm.xlu2 %4563, %v3878_v14  }
 0x3a2   :  { %4263 = vmatpush.msk.msra.mxu1 %vm5286_vm3, %v2911_v26 }
 0x3a3   :  { %v7281_v60 = vpop.permute.xlu2 %3063  ;;  %3987 = vperm.xlu1 %4562, %v7171_v4   ;;  %v7663_v4 = vunpack.i.h.bf16 %v7067_v30 }
 0x3a4   :  { %3982 = vperm.xlu0 %4561, %v7179_v46   ;;  %v7290_v22 = vpop.permute.xlu0 %3157  ;;  %3701 = vmatpush.msra.mxu1 %v2845_v2 }
 0x3a5   :  { %v3150_v14 = vpop.permute.xlu1 %3149  ;;  %v3171_v0 = vsel %vm598_vm9, %v7154_v1, %v7290_v22  ;;  %v2843_v28 = vsel %vm262_vm6, %v4712_v20, %v7663_v4  ;;  %v2839_v1 = vsel %vm262_vm6, %v4697_v45, %v7664_v39 }
 0x3a6   :  { %3702 = vmatpush.msra.mxu1 %v2843_v28  ;;  %4269 = vmatpush.msk.msra.mxu3 %vm5238_vm0, %v3171_v0  ;;  %v3169_v46 = vsel %vm598_vm9, %v3150_v14, %v7188_v13 }
 0x3a8   :  { %3703 = vmatpush.msra.mxu1 %v7078_v8  ;;  %4270 = vmatpush.msk.msra.mxu3 %vm5238_vm0, %v3169_v46 }
 0x3a9   :  { %4019 = vperm.xlu2 %4563, %v3909_v62  }
 0x3aa   :  { %3704 = vmatpush.msra.mxu1 %v2839_v1 }
 0x3ab   :  { %v4766_v30 = vpop.permute.xlu2 %4765  ;;  %4014 = vperm.xlu1 %4562, %v7203_v32  }
 0x3ac   :  { %4009 = vperm.xlu0 %4561, %v7213_v49   ;;  %4264 = vmatpush.msk.msra.mxu1 %vm5238_vm0, %v6904_v10  ;;  %v4767_v62 = vunpack.i.l.bf16 %v4766_v30  ;;  %v4768_v37 = vunpack.i.h.bf16 %v4766_v30  ;;  %v7665_v10 = vunpack.i.h.bf16 %v7160_v5  ;;  %v7668_v5 = vunpack.i.h.bf16 %v7222_v44 }
 0x3ad   :  { %v7311_v42 = vpop.permute.xlu1 %3145  ;;  %v3144_v6 = vpop.permute.xlu0 %3143 }
 0x3ae   :  { %v3167_v8 = vsel %vm598_vm9, %v3144_v6, %v7311_v42  ;;  %4265 = vmatpush.msk.msra.mxu1 %vm5238_vm0, %v7027_v3  ;;  %v3254_v49 = vsel %vm679_vm8, %v7665_v10, %v4767_v62  ;;  %v3252_v20 = vsel %vm679_vm8, %v7666_v43, %v4768_v37 }
 0x3af   :  { %4271 = vmatpush.msk.msra.mxu3 %vm5238_vm0, %v3167_v8 }
 0x3b0   :  { %4266 = vmatpush.msk.msra.mxu1 %vm5238_vm0, %v6998_v58 }
 0x3b2   :  { %4267 = vmatpush.msk.msra.mxu1 %vm5238_vm0, %v6970_v41  ;;  %v7667_v41 = vunpack.i.h.bf16 %v7192_v23 }
 0x3b3   :  { %v4771_v32 = vpop.permute.xlu2 %4770  ;;  %3709 = vmatmul.f32.vlgmr.msra.gmra.mxu1 %v6793_v18 }
 0x3b4   :  { %v4772_v53 = vunpack.i.l.bf16 %v4771_v32  ;;  %4024 = vperm.xlu0 %4561, %v7241_v40   ;;  %3809 = vmatpush.msrb.mxu1 %v3254_v49  ;;  %v4773_v3 = vunpack.i.h.bf16 %v4771_v32 }
 0x3b5   :  { %v3076_v59 = vpop.permute.xlu1 %3075 }
 0x3b6   :  { %v7337_v58 = vpop.permute.xlu0 %3083  ;;  %3810 = vmatpush.msrb.mxu1 %v3252_v20  ;;  %v3250_v40 = vsel %vm679_vm8, %v7667_v41, %v4772_v53  ;;  %v3091_v31 = vsel %vm517_vm10, %v3076_v59, %v7252_v15  ;;  %v3248_v26 = vsel %vm679_vm8, %v7668_v5, %v4773_v3  ;;  %v4723_v3 = vunpack.i.h.bf16 %v7097_v36 }
 0x3b7   :  { %v3093_v33 = vsel %vm517_vm10, %v7219_v50, %v7337_v58  ;;  %v7354_v50 = vpop.f32.mrf.mxu2 }
 0x3b8   :  { %4272 = vmatpush.msk.msra.mxu3 %vm5286_vm3, %v3093_v33  ;;  %3811 = vmatpush.msrb.mxu1 %v3250_v40  ;;  %v7452_v40 = vpop.f32.mrf.mxu3 }
 0x3ba   :  { %4273 = vmatpush.msk.msra.mxu3 %vm5286_vm3, %v3091_v31  ;;  %3812 = vmatpush.msrb.mxu1 %v3248_v26 }
 0x3bb   :  { %3712 = vmatmul.f32.gmra.mxu1 %v6809_v48  ;;  %v4781_v45 = vpop.permute.xlu2 %4780 }
 0x3bc   :  { %v4782_v10 = vunpack.i.l.bf16 %v4781_v45  ;;  %v4783_v49 = vunpack.i.h.bf16 %v4781_v45 }
 0x3bd   :  { %v7356_v23 = vpop.permute.xlu1 %3071 }
 0x3be   :  { %v3070_v2 = vpop.permute.xlu0 %3069 }
 0x3bf   :  { %v3089_v14 = vsel %vm517_vm10, %v3070_v2, %v7356_v23  ;;  %v7363_v44 = vpop.f32.mrf.mxu0  ;;  %v7366_v4 = vpop.f32.mrf.mxu2 }
 0x3c0   :  { %4274 = vmatpush.msk.msra.mxu3 %vm5286_vm3, %v3089_v14  ;;  %v3566_v54 = vadd.f32 %v7363_v44, %v7354_v50 }
 0x3c3   :  { %3715 = vmatmul.f32.gmra.mxu1 %v6841_v21  ;;  %v7383_v30 = vpop.permute.xlu2 %3313 }
 0x3c5   :  { %v2990_v0 = vpop.permute.xlu1 %2989 }
 0x3c6   :  { %v2998_v28 = vsel %vm420_vm2, %v7194_v12, %v2990_v0  ;;  %v7370_v46 = vpop.permute.xlu0 %3065 }
 0x3c7   :  { %v3087_v39 = vsel %vm517_vm10, %v7281_v60, %v7370_v46  ;;  %4280 = vmatpush.msk.msrb.mxu0 %vm5242_vm1, %v2998_v28  ;;  %v7380_v1 = vpop.f32.mrf.mxu0  ;;  %v7389_v8 = vpop.f32.mrf.mxu2  ;;  %v7671_v28 = vld [vmem:[#allocation20_spill] sm:$0xff] }
 0x3c8   :  { %4275 = vmatpush.msk.msra.mxu3 %vm5286_vm3, %v3087_v39  ;;  %v7672_v39 = vld [vmem:[#allocation21_spill] sm:$0xff] }
 0x3ca   :  { %3734 = vmatpush.msra.mxu3 %v6546_v7 }
 0x3cb   :  { %3718 = vmatmul.f32.gmra.mxu1 %v6894_v47  ;;  %v7401_v32 = vpop.permute.xlu2 %3307 }
 0x3cc   :  { %3735 = vmatpush.msra.mxu3 %v6554_v38 }
 0x3cd   :  { %v2978_v12 = vpop.permute.xlu1 %2977 }
 0x3ce   :  { %v2984_v6 = vpop.permute.xlu0 %2983  ;;  %3736 = vmatpush.msra.mxu3 %v6525_v24  ;;  %v2994_v7 = vsel %vm420_vm2, %v7143_v27, %v2978_v12  ;;  %v7673_v12 = vld [vmem:[#allocation29_spill] sm:$0xff] }
 0x3cf   :  { %v2996_v60 = vsel %vm420_vm2, %v7224_v55, %v2984_v6  ;;  %v7399_v38 = vpop.f32.mrf.mxu0  ;;  %v7412_v53 = vpop.f32.mrf.mxu2  ;;  %v7674_v6 = vld [vmem:[#allocation22_spill] sm:$0xff] }
 0x3d0   :  { %3737 = vmatpush.msra.mxu3 %v6509_v9  ;;  %4281 = vmatpush.msk.msrb.mxu0 %vm5242_vm1, %v2996_v60 }
 0x3d1   :  { %3738 = vmatmul.f32.vlgmr.msra.gmra.mxu3 %v6964_v19 }
 0x3d2   :  { %4282 = vmatpush.msk.msrb.mxu0 %vm5242_vm1, %v2994_v7  ;;  %v7675_v7 = vld [vmem:[#allocation28_spill] sm:$0xff] }
 0x3d3   :  { %v7442_v33 = vpop.permute.xlu2 %3303 }
 0x3d5   :  { %v4776_v24 = vpop.permute.xlu1 %4775 }
 0x3d6   :  { %v4778_v62 = vunpack.i.h.bf16 %v4776_v24  ;;  %v4777_v55 = vunpack.i.l.bf16 %v4776_v24  ;;  %v2972_v37 = vpop.permute.xlu0 %2971 }
 0x3d7   :  { %v2992_v9 = vsel %vm420_vm2, %v7162_v35, %v2972_v37  ;;  %v7434_v43 = vpop.f32.mrf.mxu0  ;;  %v7456_v31 = vpop.f32.mrf.mxu2  ;;  %v7676_v37 = vld [vmem:[#allocation14_spill] sm:$0xff] }
 0x3d8   :  { %4283 = vmatpush.msk.msrb.mxu0 %vm5242_vm1, %v2992_v9  ;;  %v3174_v27 = vsel %vm598_vm9, %v7258_v11, %v4777_v55  ;;  %v3172_v35 = vsel %vm598_vm9, %v7290_v22, %v4778_v62  ;;  %v3170_v11 = vsel %vm598_vm9, %v7188_v13, %v4782_v10  ;;  %v3168_v22 = vsel %vm598_vm9, %v7311_v42, %v4783_v49  ;;  %v7678_v49 = vld [vmem:[#allocation24_spill] sm:$0xff] }
 0x3d9   :  { %4292 = vmatpush.msk.msrb.mxu1 %vm5242_vm1, %v3174_v27  ;;  %3741 = vmatmul.f32.gmra.mxu3 %v7005_v17  ;;  %v4708_v13 = vunpack.i.h.bf16 %v7069_v61  ;;  %v7677_v27 = vld [vmem:[#allocation27_spill] sm:$0xff] }
 0x3da   :  { %4284 = vmatpush.msk.msrb.mxu0 %vm5295_vm5, %v7150_v57 }
 0x3db   :  { %4293 = vmatpush.msk.msrb.mxu1 %vm5242_vm1, %v3172_v35 }
 0x3dc   :  { %4285 = vmatpush.msk.msrb.mxu0 %vm5295_vm5, %v7137_v63 }
 0x3dd   :  { %v4791_v59 = vpop.permute.xlu1 %4790  ;;  %4294 = vmatpush.msk.msrb.mxu1 %vm5242_vm1, %v3170_v11  ;;  %v7679_v11 = vld [vmem:[#allocation26_spill] sm:$0xff] }
 0x3de   :  { %v4786_v57 = vpop.permute.xlu0 %4785  ;;  %4286 = vmatpush.msk.msrb.mxu0 %vm5295_vm5, %v7117_v51  ;;  %v4792_v41 = vunpack.i.l.bf16 %v4791_v59  ;;  %v2846_v51 = vsel %vm262_vm6, %v4722_v29, %v4723_v3  ;;  %v4793_v5 = vunpack.i.h.bf16 %v4791_v59  ;;  %v7669_v29 = vunpack.i.l.bf16 %v7069_v61  ;;  %v7670_v61 = vld [vmem:[#allocation17_spill] sm:$0xff] }
 0x3df   :  { %v4788_v63 = vunpack.i.h.bf16 %v4786_v57  ;;  %v4787_v20 = vunpack.i.l.bf16 %v4786_v57  ;;  %4295 = vmatpush.msk.msrb.mxu1 %vm5242_vm1, %v3168_v22  ;;  %v3681_v0 = vpop.f32.mrf.mxu0  ;;  %v3655_v62 = vpop.f32.mrf.mxu2  ;;  %v3569_v57 = vadd.f32 %v7380_v1, %v7366_v4  ;;  %v3653_v1 = vadd.f32 %v7456_v31, %v7452_v40  ;;  %v7681_v31 = vld [vmem:[#allocation23_spill] sm:$0xff] }
 0x3e0   :  { %4287 = vmatpush.msk.msrb.mxu0 %vm5295_vm5, %v7121_v52  ;;  %v3090_v26 = vsel %vm517_vm10, %v7356_v23, %v4792_v41  ;;  %v3088_v23 = vsel %vm517_vm10, %v7370_v46, %v4793_v5  ;;  %v3626_v46 = vpop.f32.mrf.mxu3 }
 0x3e1   :  { %v3094_v42 = vsel %vm517_vm10, %v7337_v58, %v4787_v20  ;;  %3744 = vmatmul.f32.gmra.mxu3 %v7032_v16  ;;  %v3092_v52 = vsel %vm517_vm10, %v7252_v15, %v4788_v63  ;;  %v2842_v58 = vsel %vm262_vm6, %v7669_v29, %v4708_v13  ;;  %v7470_v15 = vpop.f32.mrf.mxu1  ;;  %v3656_v22 = vadd.f32 %v3655_v62, %v3626_v46  ;;  %v3868_v62 = vld [vmem:[#allocation4 + $0x8] sm:$0xff] }
 0x3e2   :  { %3788 = vmatpush.msrb.mxu0 %v2846_v51  ;;  %4296 = vmatpush.msk.msrb.mxu1 %vm5295_vm5, %v3094_v42  ;;  %v7680_v42 = vld [vmem:[#allocation25_spill] sm:$0xff]  ;;  %v3595_v50 = vadd.f32 %v7470_v15, %v3566_v54  ;;  %v3682_v44 = vadd.f32 %v3681_v0, %v3653_v1 }
 0x3e4   :  { %3789 = vmatpush.msrb.mxu0 %v7083_v25  ;;  %4297 = vmatpush.msk.msrb.mxu1 %vm5295_vm5, %v3092_v52 }
 0x3e5   :  { %v4796_v36 = vpop.permute.xlu1 %4795 }
 0x3e6   :  { %v4797_v2 = vunpack.i.l.bf16 %v4796_v36  ;;  %v3316_v14 = vpop.permute.xlu0 %3315  ;;  %3790 = vmatpush.msrb.mxu0 %v2842_v58  ;;  %4298 = vmatpush.msk.msrb.mxu1 %vm5295_vm5, %v3090_v26  ;;  %v4798_v60 = vunpack.i.h.bf16 %v4796_v36 }
 0x3e7   :  { %v3325_v25 = vsel %vm752_vm11, %v7383_v30, %v3316_v14  ;;  %v3298_v30 = vpop.permute.xlu2 %3297  ;;  %v3684_v3 = vpop.f32.mrf.mxu0 }
 0x3e8   :  { %v3326_v45 = vsel %vm752_vm11, %v3316_v14, %v4797_v2  ;;  %4276 = vmatpush.msk.msrb.mxu2 %vm5286_vm3, %v3325_v25  ;;  %3791 = vmatpush.msrb.mxu0 %v7670_v61  ;;  %v3629_v51 = vpop.f32.mrf.mxu3  ;;  %v3685_v5 = vadd.f32 %v3684_v3, %v3656_v22  ;;  %v3870_v14 = vld [vmem:[#allocation4 + $0x18] sm:$0xff]  ;;  %v3873_v22 = vld [vmem:[#allocation4 + $0x30] sm:$0xff] }
 0x3e9   :  { %4299 = vmatpush.msk.msrb.mxu1 %vm5295_vm5, %v3088_v23  ;;  %4300 = vmatpush.msk.msrb.mxu3 %vm5295_vm5, %v3326_v45 }
 0x3ea   :  { %4288 = vmatpush.msk.msrb.mxu0 %vm5242_vm1, %v7671_v28  ;;  %3747 = vmatmul.f32.gmra.mxu3 %v7672_v39  ;;  %v3575_v28 = vadd.f32 %v7434_v43, %v7412_v53 }
 0x3eb   :  { %3821 = vmatpush.msrb.mxu1 %v7673_v12 }
 0x3ec   :  { %4289 = vmatpush.msk.msrb.mxu0 %vm5242_vm1, %v7674_v6 }
 0x3ed   :  { %3822 = vmatpush.msrb.mxu1 %v7675_v7  ;;  %v3302_v24 = vpop.permute.xlu1 %3301 }
 0x3ee   :  { %v3310_v55 = vpop.permute.xlu0 %3309  ;;  %4290 = vmatpush.msk.msrb.mxu0 %vm5242_vm1, %v7676_v37  ;;  %v3321_v35 = vsel %vm752_vm11, %v3302_v24, %v7442_v33 }
 0x3ef   :  { %v3323_v9 = vsel %vm752_vm11, %v7401_v32, %v3310_v55  ;;  %v3324_v10 = vsel %vm752_vm11, %v3310_v55, %v4798_v60  ;;  %3823 = vmatpush.msrb.mxu1 %v7677_v27  ;;  %v3597_v32 = vpop.f32.mrf.mxu1  ;;  %v7512_v59 = vpop.permute.xlu2 %3891  ;;  %v3572_v60 = vadd.f32 %v7399_v38, %v7389_v8 }
 0x3f0   :  { %4277 = vmatpush.msk.msrb.mxu2 %vm5286_vm3, %v3323_v9  ;;  %4291 = vmatpush.msk.msrb.mxu0 %vm5242_vm1, %v7678_v49  ;;  %v3598_v52 = vadd.f32 %v3597_v32, %v3569_v57  ;;  %v3632_v56 = vpop.f32.mrf.mxu3  ;;  %v7682_v49 = vld [vmem:[#allocation19_spill] sm:$0xff] }
 0x3f1   :  { %3824 = vmatpush.msrb.mxu1 %v7679_v11  ;;  %4301 = vmatpush.msk.msrb.mxu3 %vm5295_vm5, %v3324_v10 }
 0x3f2   :  { %4278 = vmatpush.msk.msrb.mxu2 %vm5286_vm3, %v3321_v35  ;;  %3796 = vmatmul.f32.vlgmr.msrb.gmra.mxu0 %v6793_v18  ;;  %v3658_v18 = vpop.f32.mrf.mxu2 }
 0x3f3   :  { %3825 = vmatmul.f32.vlgmr.msrb.gmra.mxu1 %v6964_v19  ;;  %v3659_v7 = vadd.f32 %v3658_v18, %v3629_v51  ;;  %v3871_v51 = vld [vmem:[#allocation4 + $0x20] sm:$0xff] }
 0x3f5   :  { %v3296_v34 = vpop.permute.xlu1 %3295 }
 0x3f6   :  { %v3319_v63 = vsel %vm752_vm11, %v3296_v34, %v3298_v30  ;;  %v4801_v20 = vpop.permute.xlu0 %4800 }
 0x3f7   :  { %v4803_v13 = vunpack.i.h.bf16 %v4801_v20  ;;  %v4802_v41 = vunpack.i.l.bf16 %v4801_v20  ;;  %4279 = vmatpush.msk.msrb.mxu2 %vm5286_vm3, %v3319_v63  ;;  %v3600_v36 = vpop.f32.mrf.mxu1  ;;  %v3919_v2 = vpop.permute.xlu2 %3918  ;;  %v3874_v63 = vld [vmem:[#allocation4 + $0x38] sm:$0xff] }
 0x3f8   :  { %4104 = vmatmul.msk.f32.vlgmr.msrb.gmra.mxu2 %vm1598_vm12, %v7680_v42  ;;  %v3601_v8 = vadd.f32 %v3600_v36, %v3572_v60 }
 0x3f9   :  { %v3322_v19 = vsel %vm752_vm11, %v7442_v33, %v4802_v41  ;;  %v3320_v4 = vsel %vm752_vm11, %v3298_v30, %v4803_v13  ;;  %v3687_v33 = vpop.f32.mrf.mxu0 }
 0x3fa   :  { %4302 = vmatpush.msk.msrb.mxu3 %vm5295_vm5, %v3322_v19  ;;  %3799 = vmatmul.f32.gmra.mxu0 %v6809_v48  ;;  %v3661_v45 = vpop.f32.mrf.mxu2  ;;  %v3688_v38 = vadd.f32 %v3687_v33, %v3659_v7  ;;  %v3903_v34 = vmul.f32 %v7512_v59, %v3601_v8 }
 0x3fb   :  { %3828 = vmatmul.f32.gmra.mxu1 %v7005_v17  ;;  %v3869_v17 = vld [vmem:[#allocation4 + $0x10] sm:$0xff]  ;;  %v3662_v30 = vadd.f32 %v3661_v45, %v3632_v56 }
 0x3fc   :  { %4303 = vmatpush.msk.msrb.mxu3 %vm5295_vm5, %v3320_v4  ;;  %v3904_v57 = vmul.f32 %v7512_v59, %v3688_v38  ;;  %v3965_v38 = vld [vmem:[#allocation4 + $0x50] sm:$0xff] }
 0x3fd   :  { %4108 = vmatmul.msk.f32.vlgmr.msrb.gmra.mxu3 %vm1598_vm12, %v7680_v42  ;;  %v3887_v29 = vpop.permute.xlu1 %3886 }
 0x3fe   :  { %v3901_v48 = vmul.f32 %v3887_v29, %v3598_v52  ;;  %v3902_v58 = vmul.f32 %v3887_v29, %v3685_v5  ;;  %v3882_v26 = vpop.permute.xlu0 %3881  ;;  %v7683_v5 = vld [vmem:[#allocation18_spill] sm:$0xff] }
 0x3ff   :  { %v3899_v0 = vmul.f32 %v3882_v26, %v3595_v50  ;;  %v3900_v6 = vmul.f32 %v3882_v26, %v3682_v44  ;;  %v3603_v46 = vpop.f32.mrf.mxu1  ;;  %v3978_v56 = vpop.permute.xlu2 %3977 }
 0x400   :  { %v3933_v25 = vadd.f32 %v3919_v2, %v3901_v48  ;;  %v3934_v40 = vadd.f32 %v3919_v2, %v3902_v58  ;;  %4105 = vmatmul.msk.f32.gmra.mxu2 %vm1598_vm12, %v7681_v31  ;;  %v3604_v37 = vadd.f32 %v3603_v46, %v3575_v28 }
 0x401   :  { %v3690_v24 = vpop.f32.mrf.mxu0 }
 0x402   :  { %v3941_v61 = vadd.f32 %v3933_v25, %v3869_v17  ;;  %v3942_v23 = vadd.f32 %v3934_v40, %v3870_v14  ;;  %3802 = vmatmul.f32.gmra.mxu0 %v6841_v21  ;;  %v3867_v21 = vld [vmem:[#allocation4] sm:$0xff]  ;;  %v3691_v9 = vadd.f32 %v3690_v24, %v3662_v30 }
 0x403   :  { %3831 = vmatmul.f32.gmra.mxu1 %v7032_v16 }
 0x404   :  { %v3949_v12 = vmax.f32 %v3941_v61, 0.0  ;;  %v3950_v15 = vmax.f32 %v3942_v23, 0.0 }
 0x405   :  { %4109 = vmatmul.msk.f32.gmra.mxu3 %vm1598_vm12, %v7681_v31  ;;  %v3914_v55 = vpop.permute.xlu1 %3913 }
 0x406   :  { %3957 = vst [vmem:[#allocation10 + $0x10] sm:$0xff] %v3949_v12  ;;  %v3931_v53 = vadd.f32 %v3914_v55, %v3899_v0  ;;  %v3932_v43 = vadd.f32 %v3914_v55, %v3900_v6  ;;  %v3897_v16 = vpop.permute.xlu0 %3896  ;;  %v3963_v6 = vld [vmem:[#allocation4 + $0x40] sm:$0xff] }
 0x407   :  { %3958 = vst [vmem:[#allocation10 + $0x18] sm:$0xff] %v3950_v15  ;;  %v3905_v32 = vmul.f32 %v3897_v16, %v3604_v37  ;;  %v3906_v3 = vmul.f32 %v3897_v16, %v3691_v9  ;;  %v3993_v37 = vpop.permute.xlu2 %3992 }
 0x408   :  { %v3939_v10 = vadd.f32 %v3931_v53, %v3867_v21  ;;  %v3940_v27 = vadd.f32 %v3932_v43, %v3868_v62  ;;  %4106 = vmatmul.msk.f32.gmra.mxu2 %vm1598_vm12, %v7682_v49  ;;  %v3964_v43 = vld [vmem:[#allocation4 + $0x48] sm:$0xff] }
 0x40a   :  { %v3947_v35 = vmax.f32 %v3939_v10, 0.0  ;;  %v3948_v11 = vmax.f32 %v3940_v27, 0.0  ;;  %3805 = vmatmul.f32.gmra.mxu0 %v6894_v47  ;;  %v3872_v47 = vld [vmem:[#allocation4 + $0x28] sm:$0xff] }
 0x40b   :  { %3834 = vmatmul.f32.gmra.mxu1 %v7672_v39 }
 0x40c   :  { %3955 = vst [vmem:[#allocation10] sm:$0xff] %v3947_v35 }
 0x40d   :  { %3956 = vst [vmem:[#allocation10 + $0x8] sm:$0xff] %v3948_v11  ;;  %4110 = vmatmul.msk.f32.gmra.mxu3 %vm1598_vm12, %v7682_v49  ;;  %v3929_v20 = vpop.permute.xlu1 %3928 }
 0x40e   :  { %v3937_v13 = vadd.f32 %v3929_v20, %v3905_v32  ;;  %v3938_v41 = vadd.f32 %v3929_v20, %v3906_v3  ;;  %v3924_v18 = vpop.permute.xlu0 %3923 }
 0x40f   :  { %v3935_v39 = vadd.f32 %v3924_v18, %v3903_v34  ;;  %v3936_v42 = vadd.f32 %v3924_v18, %v3904_v57 }
 0x410   :  { %v3945_v19 = vadd.f32 %v3937_v13, %v3873_v22  ;;  %v3946_v52 = vadd.f32 %v3938_v41, %v3874_v63  ;;  %4107 = vmatmul.msk.f32.gmra.mxu2 %vm1598_vm12, %v7683_v5 }
 0x411   :  { %v3943_v59 = vadd.f32 %v3935_v39, %v3871_v51  ;;  %v3944_v4 = vadd.f32 %v3936_v42, %v3872_v47  ;;  %v3966_v51 = vld [vmem:[#allocation4 + $0x58] sm:$0xff] }
 0x412   :  { %v3953_v54 = vmax.f32 %v3945_v19, 0.0  ;;  %v3954_v1 = vmax.f32 %v3946_v52, 0.0  ;;  %v4020_v19 = vpop.permute.xlu2 %4019 }
 0x413   :  { %v3951_v36 = vmax.f32 %v3943_v59, 0.0  ;;  %v3952_v33 = vmax.f32 %v3944_v4, 0.0 }
 0x414   :  { %3961 = vst [vmem:[#allocation10 + $0x30] sm:$0xff] %v3953_v54 }
 0x415   :  { %3962 = vst [vmem:[#allocation10 + $0x38] sm:$0xff] %v3954_v1  ;;  %4111 = vmatmul.msk.f32.gmra.mxu3 %vm1598_vm12, %v7683_v5  ;;  %v3988_v23 = vpop.permute.xlu1 %3987  ;;  %v3967_v5 = vld [vmem:[#allocation4 + $0x60] sm:$0xff] }
 0x416   :  { %3959 = vst [vmem:[#allocation10 + $0x20] sm:$0xff] %v3951_v36  ;;  %v3983_v25 = vpop.permute.xlu0 %3982 }
 0x417   :  { %3960 = vst [vmem:[#allocation10 + $0x28] sm:$0xff] %v3952_v33 }
 0x41d   :  { %v4015_v49 = vpop.permute.xlu1 %4014 }
 0x41e   :  { %v4010_v0 = vpop.permute.xlu0 %4009 }
 0x430   :  { %v3710_v29 = vpop.f32.mrf.mxu1 }
 0x438   :  { %v3713_v48 = vpop.f32.mrf.mxu1 }
 0x440   :  { %v3716_v26 = vpop.f32.mrf.mxu1 }
 0x448   :  { %v3719_v17 = vpop.f32.mrf.mxu1 }
 0x454   :  { %v3739_v58 = vpop.f32.mrf.mxu3 }
 0x455   :  { %v3740_v31 = vadd.f32 %v3739_v58, %v3710_v29 }
 0x45c   :  { %v3742_v2 = vpop.f32.mrf.mxu3 }
 0x45d   :  { %v3743_v24 = vadd.f32 %v3742_v2, %v3713_v48 }
 0x464   :  { %v3745_v14 = vpop.f32.mrf.mxu3 }
 0x465   :  { %v3746_v22 = vadd.f32 %v3745_v14, %v3716_v26  ;;  %v3968_v14 = vld [vmem:[#allocation4 + $0x68] sm:$0xff] }
 0x46d   :  { %v3748_v40 = vpop.f32.mrf.mxu3 }
 0x46e   :  { %v3749_v36 = vadd.f32 %v3748_v40, %v3719_v17 }
 0x46f   :  { %v3797_v50 = vpop.f32.mrf.mxu0 }
 0x470   :  { %v3826_v44 = vpop.f32.mrf.mxu1 }
 0x471   :  { %v3827_v28 = vadd.f32 %v3826_v44, %v3797_v50 }
 0x477   :  { %v3800_v30 = vpop.f32.mrf.mxu0 }
 0x478   :  { %v3829_v15 = vpop.f32.mrf.mxu1 }
 0x479   :  { %v3830_v10 = vadd.f32 %v3829_v15, %v3800_v30 }
 0x47b   :  { %v3768_v45 = vpop.f32.mrf.mxu2 }
 0x47c   :  { %v3769_v61 = vadd.f32 %v3768_v45, %v3740_v31 }
 0x47e   :  { %v3995_v12 = vmul.f32 %v3978_v56, %v3769_v61  ;;  %v3969_v61 = vld [vmem:[#allocation4 + $0x70] sm:$0xff] }
 0x47f   :  { %v3803_v35 = vpop.f32.mrf.mxu0 }
 0x480   :  { %v4027_v46 = vadd.f32 %v4010_v0, %v3995_v12  ;;  %v3855_v60 = vpop.f32.mrf.mxu3  ;;  %v3832_v3 = vpop.f32.mrf.mxu1 }
 0x481   :  { %v3856_v7 = vadd.f32 %v3855_v60, %v3827_v28  ;;  %v3833_v39 = vadd.f32 %v3832_v3, %v3803_v35 }
 0x482   :  { %v4035_v21 = vadd.f32 %v4027_v46, %v3963_v6 }
 0x483   :  { %v3996_v62 = vmul.f32 %v3978_v56, %v3856_v7  ;;  %v3771_v55 = vpop.f32.mrf.mxu2  ;;  %v4025_v56 = vpop.permute.xlu0 %4024 }
 0x484   :  { %v4043_v53 = vmax.f32 %v4035_v21, 0.0  ;;  %v3772_v16 = vadd.f32 %v3771_v55, %v3743_v24 }
 0x485   :  { %v4028_v9 = vadd.f32 %v4010_v0, %v3996_v62 }
 0x486   :  { %4052 = vst [vmem:[#allocation10 + $0x40] sm:$0xff] %v4043_v53  ;;  %v3997_v27 = vmul.f32 %v3983_v25, %v3772_v16 }
 0x487   :  { %v4036_v8 = vadd.f32 %v4028_v9, %v3964_v43  ;;  %v3806_v29 = vpop.f32.mrf.mxu0 }
 0x488   :  { %v4029_v11 = vadd.f32 %v4015_v49, %v3997_v27  ;;  %v3858_v32 = vpop.f32.mrf.mxu3  ;;  %v3835_v48 = vpop.f32.mrf.mxu1 }
 0x489   :  { %v4044_v34 = vmax.f32 %v4036_v8, 0.0  ;;  %v3859_v57 = vadd.f32 %v3858_v32, %v3830_v10 }
 0x48a   :  { %v4037_v63 = vadd.f32 %v4029_v11, %v3965_v38 }
 0x48b   :  { %4053 = vst [vmem:[#allocation10 + $0x48] sm:$0xff] %v4044_v34  ;;  %v3998_v20 = vmul.f32 %v3983_v25, %v3859_v57  ;;  %v3774_v13 = vpop.f32.mrf.mxu2  ;;  %v3836_v25 = vadd.f32 %v3835_v48, %v3806_v29 }
 0x48c   :  { %v4045_v41 = vmax.f32 %v4037_v63, 0.0  ;;  %v3775_v47 = vadd.f32 %v3774_v13, %v3746_v22 }
 0x48d   :  { %v4030_v18 = vadd.f32 %v4015_v49, %v3998_v20 }
 0x48e   :  { %4054 = vst [vmem:[#allocation10 + $0x50] sm:$0xff] %v4045_v41  ;;  %v3999_v42 = vmul.f32 %v3988_v23, %v3775_v47 }
 0x48f   :  { %v4038_v52 = vadd.f32 %v4030_v18, %v3966_v51 }
 0x490   :  { %v4031_v59 = vadd.f32 %v4020_v19, %v3999_v42  ;;  %v3861_v4 = vpop.f32.mrf.mxu3 }
 0x491   :  { %v4046_v54 = vmax.f32 %v4038_v52, 0.0  ;;  %v3862_v1 = vadd.f32 %v3861_v4, %v3833_v39 }
 0x492   :  { %v4039_v33 = vadd.f32 %v4031_v59, %v3967_v5 }
 0x493   :  { %4055 = vst [vmem:[#allocation10 + $0x58] sm:$0xff] %v4046_v54  ;;  %v4000_v58 = vmul.f32 %v3988_v23, %v3862_v1  ;;  %v3777_v26 = vpop.f32.mrf.mxu2  ;;  %v3970_v23 = vld [vmem:[#allocation4 + $0x78] sm:$0xff] }
 0x494   :  { %v4047_v2 = vmax.f32 %v4039_v33, 0.0  ;;  %v3778_v50 = vadd.f32 %v3777_v26, %v3749_v36 }
 0x495   :  { %v4032_v44 = vadd.f32 %v4020_v19, %v4000_v58 }
 0x496   :  { %4056 = vst [vmem:[#allocation10 + $0x60] sm:$0xff] %v4047_v2  ;;  %v4001_v31 = vmul.f32 %v3993_v37, %v3778_v50 }
 0x497   :  { %v4040_v45 = vadd.f32 %v4032_v44, %v3968_v14 }
 0x498   :  { %v4033_v28 = vadd.f32 %v4025_v56, %v4001_v31  ;;  %v3864_v30 = vpop.f32.mrf.mxu3 }
 0x499   :  { %v4048_v12 = vmax.f32 %v4040_v45, 0.0  ;;  %v3865_v17 = vadd.f32 %v3864_v30, %v3836_v25 }
 0x49a   :  { %v4041_v40 = vadd.f32 %v4033_v28, %v3969_v61 }
 0x49b   :  { %4057 = vst [vmem:[#allocation10 + $0x68] sm:$0xff] %v4048_v12  ;;  %v4002_v15 = vmul.f32 %v3993_v37, %v3865_v17 }
 0x49c   :  { %v4049_v0 = vmax.f32 %v4041_v40, 0.0 }
 0x49d   :  { %v4034_v6 = vadd.f32 %v4025_v56, %v4002_v15 }
 0x49e   :  { %4058 = vst [vmem:[#allocation10 + $0x70] sm:$0xff] %v4049_v0 }
 0x49f   :  { %v4042_v46 = vadd.f32 %v4034_v6, %v3970_v23 }
 0x4a1   :  { %v4050_v60 = vmax.f32 %v4042_v46, 0.0 }
 0x4a3   :  { %4059 = vst [vmem:[#allocation10 + $0x78] sm:$0xff] %v4050_v60 }
 0x4a4   :  { %4072 = dma.vmem_to_hbm [thread:$0]  %s4065_s29, 2048, %s4067_s9, [#allocation6], %s4919_s13, %s4919_s13, %s4920_s14  }
 0x4a5   :  { %4913 = dma.done.wait [#allocation6], 2048  }
 0x4a6   :  { %4914 = vsyncadd [#allocation6], 4294965248 }
 0x4a7   :  { %4077 = vsyncpa [#allocation5], 1 }
 0x4a8   :  { %4078 = vsyncpa [#allocation8], 1 }
 0x4a9   :  { %4079 = vsyncpa [#allocation6], 1 }

</bundles_post_ra>
